<compile_context>
chip_gen: v7x
topology: tpu7x:2x2x1
jax: 0.10.0
libtpu: 0.0.40
codegen_flags: <defaults>
</compile_context>

<pallas_src>
import functools

import numpy as np
import jax
import jax.numpy as jnp
from jax.experimental import pallas as pl
from jax.experimental.pallas import tpu as pltpu


# ----------------------------------------------------------------------------
# Pallas kernel (single invocation, everything resident in VMEM)
# ----------------------------------------------------------------------------
def _mid_ode_kernel(x_ref, w_rz_ref, w_hh_ode_ref, w_ih_ref, w_hh_ref,
                    b_ih_ref, b_hh_ref, out_ref,
                    *, euler_counts, bp, dp, delta_t):
    # Hoist all weights out of the loops (small; stay vreg/VMEM resident).
    w_rz = w_rz_ref[...]          # (DP, 2*DP)  [Whr | Whz]   GRU-ODE cell (no bias)
    w_hh_ode = w_hh_ode_ref[...]  # (DP,   DP)  Whh           GRU-ODE cell
    w_ih = w_ih_ref[...]          # (DP, 3*DP)  [Wir | Wiz | Win]  torch.nn.GRU
    w_hh = w_hh_ref[...]          # (DP, 3*DP)  [Whr | Whz | Whn]  torch.nn.GRU
    b_ih = b_ih_ref[...]          # (1, 3*DP)
    b_hh = b_hh_ref[...]          # (1, 3*DP)

    h = jnp.zeros((bp, dp), jnp.float32)          # hidden state, carried in vregs

    for t, n_euler in enumerate(euler_counts):    # Python-unrolled over time
        # ---- explicit Euler steps of FullGRUODECell_Autonomous --------------
        for _ in range(n_euler):                  # static, unrolled trip count
            rz = jax.nn.sigmoid(
                jnp.dot(h, w_rz, preferred_element_type=jnp.float32))
            r, z = rz[:, :dp], rz[:, dp:]
            u = jnp.tanh(
                jnp.dot(r * h, w_hh_ode, preferred_element_type=jnp.float32))
            h = h + delta_t * (1.0 - z) * (u - h)

        # ---- one step of torch.nn.GRU (gate order r, z, n) ------------------
        x_t = x_ref[pl.ds(t * bp, bp), :]         # static, (8,128)-aligned slice
        gi = jnp.dot(x_t, w_ih, preferred_element_type=jnp.float32) + b_ih
        gh = jnp.dot(h, w_hh, preferred_element_type=jnp.float32) + b_hh
        r = jax.nn.sigmoid(gi[:, :dp] + gh[:, :dp])
        z = jax.nn.sigmoid(gi[:, dp:2 * dp] + gh[:, dp:2 * dp])
        n = jnp.tanh(gi[:, 2 * dp:] + r * gh[:, 2 * dp:])
        h = (1.0 - z) * n + z * h

        # out[:, t, :] = current GRU output (== new hidden state for 1-step GRU)
        out_ref[pl.ds(t * bp, bp), :] = h


# ----------------------------------------------------------------------------
# Host-side glue
# ----------------------------------------------------------------------------
def _euler_step_counts(times_row, delta_t):
    """Exact replica of forward()'s `while current_time < obs_time - 1e-3*dt`."""
    current_time = float(times_row[0]) - 1.0
    counts = []
    for obs_time in times_row:
        n = 0
        while current_time < float(obs_time) - 0.001 * delta_t:
            current_time += delta_t
            n += 1
        counts.append(n)
    return tuple(counts)


def _pad2(w, rows, cols):
    w = jnp.asarray(w, jnp.float32)
    return jnp.zeros((rows, cols), jnp.float32).at[:w.shape[0], :w.shape[1]].set(w)


def _pad1(v, cols):
    v = jnp.asarray(v, jnp.float32)
    return jnp.zeros((cols,), jnp.float32).at[:v.shape[0]].set(v)


def mid_ode_forward(H, times, params, delta_t):
    """H: (B, S, D) with D == hidden_size == gru_input_size  ->  (B, S, D)."""
    B, S, D = H.shape
    Dh = params["Whr"].shape[0]
    assert D == Dh, "forward() requires feature dim == hidden_size (as in the PyTorch module)"

    BP = max(8, -(-B // 8) * 8)            # batch padded to sublane multiple
    DP = max(128, -(-Dh // 128) * 128)     # hidden/feature padded to lane width

    # Euler trip counts: control logic on the concrete `times` (only times[0]
    # is read, exactly as in the PyTorch forward).
    euler_counts = _euler_step_counts(np.asarray(times)[0], float(delta_t))

    # Time-major, zero-padded, lane-dense observation slab: (S*BP, DP).
    Hp = jnp.zeros((S, BP, DP), jnp.float32)
    Hp = Hp.at[:, :B, :D].set(jnp.transpose(H, (1, 0, 2)).astype(jnp.float32))
    x_flat = Hp.reshape(S * BP, DP)

    # Fused + zero-padded weights (padding keeps the math identical on the
    # real lanes; padded lanes of h remain exactly 0 throughout).
    w_rz = jnp.concatenate([_pad2(params["Whr"], DP, DP),
                            _pad2(params["Whz"], DP, DP)], axis=1)      # (DP, 2DP)
    w_hh_ode = _pad2(params["Whh"], DP, DP)                             # (DP, DP)
    w_ih = jnp.concatenate([_pad2(params["WihG"][g], DP, DP) for g in range(3)], axis=1)
    w_hh = jnp.concatenate([_pad2(params["WhhG"][g], DP, DP) for g in range(3)], axis=1)
    b_ih = jnp.concatenate([_pad1(params["bihG"][g], DP) for g in range(3)])[None, :]
    b_hh = jnp.concatenate([_pad1(params["bhhG"][g], DP) for g in range(3)])[None, :]

    vmem = pl.BlockSpec(memory_space=pltpu.MemorySpace.VMEM)
    kernel = functools.partial(_mid_ode_kernel,
                               euler_counts=euler_counts, bp=BP, dp=DP,
                               delta_t=float(delta_t))

    out_flat = pl.pallas_call(
        kernel,
        out_shape=jax.ShapeDtypeStruct((S * BP, DP), jnp.float32),
        in_specs=[vmem] * 7,
        out_specs=vmem,
    )(x_flat, w_rz, w_hh_ode, w_ih, w_hh, b_ih, b_hh)

    out = out_flat.reshape(S, BP, DP)[:, :B, :D]       # drop padding
    return jnp.transpose(out, (1, 0, 2))               # (B, S, D)


# ----------------------------------------------------------------------------
# Parameter construction (deterministic; matches the module's weight shapes)
# ----------------------------------------------------------------------------
def init_params(key, input_size, hidden_size, gru_input_size):
    # forward() requires these to match (reshape of GRU output into H's width).
    assert input_size == gru_input_size == hidden_size
    ks = jax.random.split(key, 8)

    def u(k, shape, fan_in):
        bound = 1.0 / np.sqrt(fan_in)
        return jax.random.uniform(k, shape, jnp.float32, -bound, bound)

    return {
        # FullGRUODECell_Autonomous: three bias-free Linear(hidden, hidden),
        # weights stored pre-transposed (y = h @ W).
        "Whr": u(ks[0], (hidden_size, hidden_size), hidden_size),
        "Whz": u(ks[1], (hidden_size, hidden_size), hidden_size),
        "Whh": u(ks[2], (hidden_size, hidden_size), hidden_size),
        # torch.nn.GRU(gru_input_size, hidden_size), gate order [r, z, n],
        # weights pre-transposed.
        "WihG": u(ks[3], (3, gru_input_size, hidden_size), hidden_size),
        "bihG": u(ks[4], (3, hidden_size), hidden_size),
        "WhhG": u(ks[5], (3, hidden_size, hidden_size), hidden_size),
        "bhhG": u(ks[6], (3, hidden_size), hidden_size),
    }


# ----------------------------------------------------------------------------
# Pure-JAX reference (mirrors the PyTorch forward) for a correctness check
# ----------------------------------------------------------------------------
def reference_forward(H, times, params, delta_t):
    B, S, _ = H.shape
    p = params
    h = jnp.zeros((B, p["Whr"].shape[0]), jnp.float32)
    counts = _euler_step_counts(np.asarray(times)[0], float(delta_t))
    outs = []
    for idx in range(S):
        for _ in range(counts[idx]):
            r = jax.nn.sigmoid(h @ p["Whr"])
            z = jax.nn.sigmoid(h @ p["Whz"])
            u = jnp.tanh((r * h) @ p["Whh"])
            h = h + delta_t * (1.0 - z) * (u - h)
        x = H[:, idx, :]
        i_r = x @ p["WihG"][0] + p["bihG"][0]
        i_z = x @ p["WihG"][1] + p["bihG"][1]
        i_n = x @ p["WihG"][2] + p["bihG"][2]
        h_r = h @ p["WhhG"][0] + p["bhhG"][0]
        h_z = h @ p["WhhG"][1] + p["bhhG"][1]
        h_n = h @ p["WhhG"][2] + p["bhhG"][2]
        r = jax.nn.sigmoid(i_r + h_r)
        z = jax.nn.sigmoid(i_z + h_z)
        n = jnp.tanh(i_n + r * h_n)
        h = (1.0 - z) * n + z * h
        outs.append(h)                      # out[:, idx, :] = current_out (out is zero-init)
    return jnp.stack(outs, axis=1)          # (B, S, hidden)


# ----------------------------------------------------------------------------
if __name__ == "__main__":
    # e.g. Mid_ODENetwork(24, 24, 6, 24, 48, 0.25): output_size / x_hidden are
    # unused by forward(); only input/hidden/gru_input (all 24) matter.
    input_size = hidden_size = gru_input_size = 24
    delta_t = 0.25
    B, S = 4, 8

    key = jax.random.PRNGKey(0)
    k_p, k_h = jax.random.split(key)
    params = init_params(k_p, input_size, hidden_size, gru_input_size)

    H = jax.random.normal(k_h, (B, S, input_size), jnp.float32)
    times = jnp.tile(jnp.arange(S, dtype=jnp.float32)[None, :] * 0.5, (B, 1))

    out = jax.block_until_ready(mid_ode_forward(H, times, params, delta_t))
    ref = jax.block_until_ready(reference_forward(H, times, params, delta_t))
    np.testing.assert_allclose(np.asarray(out), np.asarray(ref), rtol=2e-3, atol=2e-3)

    assert out.shape == (B, S, input_size)
    print("KERNEL_OK")
</pallas_src>

<mosaic_0001>
module attributes {stable_mosaic.version = 11 : i64} {
  func.func @_mid_ode_kernel(%arg0: memref<64x128xf32, #tpu.memory_space<vmem>>, %arg1: memref<128x256xf32, #tpu.memory_space<vmem>>, %arg2: memref<128x128xf32, #tpu.memory_space<vmem>>, %arg3: memref<128x384xf32, #tpu.memory_space<vmem>>, %arg4: memref<128x384xf32, #tpu.memory_space<vmem>>, %arg5: memref<1x384xf32, #tpu.memory_space<vmem>>, %arg6: memref<1x384xf32, #tpu.memory_space<vmem>>, %arg7: memref<64x128xf32, #tpu.memory_space<vmem>>) attributes {dimension_semantics = [], scalar_prefetch = 0 : i64, scratch_operands = 0 : i64, tpu.core_type = #tpu.core_type<tc>} {
    %c0 = arith.constant 0 : index
    %c0_0 = arith.constant 0 : index
    %0 = vector.load %arg1[%c0, %c0_0] : memref<128x256xf32, #tpu.memory_space<vmem>>, vector<128x256xf32>
    %c0_1 = arith.constant 0 : index
    %c0_2 = arith.constant 0 : index
    %1 = vector.load %arg2[%c0_1, %c0_2] : memref<128x128xf32, #tpu.memory_space<vmem>>, vector<128x128xf32>
    %c0_3 = arith.constant 0 : index
    %c0_4 = arith.constant 0 : index
    %2 = vector.load %arg3[%c0_3, %c0_4] : memref<128x384xf32, #tpu.memory_space<vmem>>, vector<128x384xf32>
    %c0_5 = arith.constant 0 : index
    %c0_6 = arith.constant 0 : index
    %3 = vector.load %arg4[%c0_5, %c0_6] : memref<128x384xf32, #tpu.memory_space<vmem>>, vector<128x384xf32>
    %c0_7 = arith.constant 0 : index
    %c0_8 = arith.constant 0 : index
    %4 = vector.load %arg5[%c0_7, %c0_8] : memref<1x384xf32, #tpu.memory_space<vmem>>, vector<1x384xf32>
    %c0_9 = arith.constant 0 : index
    %c0_10 = arith.constant 0 : index
    %5 = vector.load %arg6[%c0_9, %c0_10] : memref<1x384xf32, #tpu.memory_space<vmem>>, vector<1x384xf32>
    %cst = arith.constant 0.000000e+00 : f32
    %6 = vector.broadcast %cst : f32 to vector<8x128xf32>
    %cst_11 = arith.constant dense<0.000000e+00> : vector<8x256xf32>
    %7 = tpu.matmul %6, %0, %cst_11 {dimension_numbers = #tpu.dot_dimension_numbers<[1], [0], [0], [1], [0, 0, 1, 1], [], []>} : vector<8x128xf32>, vector<128x256xf32>, vector<8x256xf32> -> vector<8x256xf32>
    %8 = arith.negf %7 : vector<8x256xf32>
    %9 = math.exp %8 : vector<8x256xf32>
    %cst_12 = arith.constant 1.000000e+00 : f32
    %10 = vector.broadcast %cst_12 : f32 to vector<8x256xf32>
    %11 = arith.addf %10, %9 : vector<8x256xf32>
    %12 = arith.divf %10, %11 : vector<8x256xf32>
    %13 = vector.extract_strided_slice %12 {offsets = [0, 0], sizes = [8, 128], strides = [1, 1]} : vector<8x256xf32> to vector<8x128xf32>
    %14 = vector.extract_strided_slice %12 {offsets = [0, 128], sizes = [8, 128], strides = [1, 1]} : vector<8x256xf32> to vector<8x128xf32>
    %15 = arith.mulf %13, %6 : vector<8x128xf32>
    %cst_13 = arith.constant dense<0.000000e+00> : vector<8x128xf32>
    %16 = tpu.matmul %15, %1, %cst_13 {dimension_numbers = #tpu.dot_dimension_numbers<[1], [0], [0], [1], [0, 0, 1, 1], [], []>} : vector<8x128xf32>, vector<128x128xf32>, vector<8x128xf32> -> vector<8x128xf32>
    %17 = math.tanh %16 : vector<8x128xf32>
    %cst_14 = arith.constant 1.000000e+00 : f32
    %18 = vector.broadcast %cst_14 : f32 to vector<8x128xf32>
    %19 = arith.subf %18, %14 : vector<8x128xf32>
    %cst_15 = arith.constant 2.500000e-01 : f32
    %20 = vector.broadcast %cst_15 : f32 to vector<8x128xf32>
    %21 = arith.mulf %20, %19 : vector<8x128xf32>
    %22 = arith.subf %17, %6 : vector<8x128xf32>
    %23 = arith.mulf %21, %22 : vector<8x128xf32>
    %24 = arith.addf %6, %23 : vector<8x128xf32>
    %cst_16 = arith.constant dense<0.000000e+00> : vector<8x256xf32>
    %25 = tpu.matmul %24, %0, %cst_16 {dimension_numbers = #tpu.dot_dimension_numbers<[1], [0], [0], [1], [0, 0, 1, 1], [], []>} : vector<8x128xf32>, vector<128x256xf32>, vector<8x256xf32> -> vector<8x256xf32>
    %26 = arith.negf %25 : vector<8x256xf32>
    %27 = math.exp %26 : vector<8x256xf32>
    %cst_17 = arith.constant 1.000000e+00 : f32
    %28 = vector.broadcast %cst_17 : f32 to vector<8x256xf32>
    %29 = arith.addf %28, %27 : vector<8x256xf32>
    %30 = arith.divf %28, %29 : vector<8x256xf32>
    %31 = vector.extract_strided_slice %30 {offsets = [0, 0], sizes = [8, 128], strides = [1, 1]} : vector<8x256xf32> to vector<8x128xf32>
    %32 = vector.extract_strided_slice %30 {offsets = [0, 128], sizes = [8, 128], strides = [1, 1]} : vector<8x256xf32> to vector<8x128xf32>
    %33 = arith.mulf %31, %24 : vector<8x128xf32>
    %cst_18 = arith.constant dense<0.000000e+00> : vector<8x128xf32>
    %34 = tpu.matmul %33, %1, %cst_18 {dimension_numbers = #tpu.dot_dimension_numbers<[1], [0], [0], [1], [0, 0, 1, 1], [], []>} : vector<8x128xf32>, vector<128x128xf32>, vector<8x128xf32> -> vector<8x128xf32>
    %35 = math.tanh %34 : vector<8x128xf32>
    %cst_19 = arith.constant 1.000000e+00 : f32
    %36 = vector.broadcast %cst_19 : f32 to vector<8x128xf32>
    %37 = arith.subf %36, %32 : vector<8x128xf32>
    %cst_20 = arith.constant 2.500000e-01 : f32
    %38 = vector.broadcast %cst_20 : f32 to vector<8x128xf32>
    %39 = arith.mulf %38, %37 : vector<8x128xf32>
    %40 = arith.subf %35, %24 : vector<8x128xf32>
    %41 = arith.mulf %39, %40 : vector<8x128xf32>
    %42 = arith.addf %24, %41 : vector<8x128xf32>
    %cst_21 = arith.constant dense<0.000000e+00> : vector<8x256xf32>
    %43 = tpu.matmul %42, %0, %cst_21 {dimension_numbers = #tpu.dot_dimension_numbers<[1], [0], [0], [1], [0, 0, 1, 1], [], []>} : vector<8x128xf32>, vector<128x256xf32>, vector<8x256xf32> -> vector<8x256xf32>
    %44 = arith.negf %43 : vector<8x256xf32>
    %45 = math.exp %44 : vector<8x256xf32>
    %cst_22 = arith.constant 1.000000e+00 : f32
    %46 = vector.broadcast %cst_22 : f32 to vector<8x256xf32>
    %47 = arith.addf %46, %45 : vector<8x256xf32>
    %48 = arith.divf %46, %47 : vector<8x256xf32>
    %49 = vector.extract_strided_slice %48 {offsets = [0, 0], sizes = [8, 128], strides = [1, 1]} : vector<8x256xf32> to vector<8x128xf32>
    %50 = vector.extract_strided_slice %48 {offsets = [0, 128], sizes = [8, 128], strides = [1, 1]} : vector<8x256xf32> to vector<8x128xf32>
    %51 = arith.mulf %49, %42 : vector<8x128xf32>
    %cst_23 = arith.constant dense<0.000000e+00> : vector<8x128xf32>
    %52 = tpu.matmul %51, %1, %cst_23 {dimension_numbers = #tpu.dot_dimension_numbers<[1], [0], [0], [1], [0, 0, 1, 1], [], []>} : vector<8x128xf32>, vector<128x128xf32>, vector<8x128xf32> -> vector<8x128xf32>
    %53 = math.tanh %52 : vector<8x128xf32>
    %cst_24 = arith.constant 1.000000e+00 : f32
    %54 = vector.broadcast %cst_24 : f32 to vector<8x128xf32>
    %55 = arith.subf %54, %50 : vector<8x128xf32>
    %cst_25 = arith.constant 2.500000e-01 : f32
    %56 = vector.broadcast %cst_25 : f32 to vector<8x128xf32>
    %57 = arith.mulf %56, %55 : vector<8x128xf32>
    %58 = arith.subf %53, %42 : vector<8x128xf32>
    %59 = arith.mulf %57, %58 : vector<8x128xf32>
    %60 = arith.addf %42, %59 : vector<8x128xf32>
    %cst_26 = arith.constant dense<0.000000e+00> : vector<8x256xf32>
    %61 = tpu.matmul %60, %0, %cst_26 {dimension_numbers = #tpu.dot_dimension_numbers<[1], [0], [0], [1], [0, 0, 1, 1], [], []>} : vector<8x128xf32>, vector<128x256xf32>, vector<8x256xf32> -> vector<8x256xf32>
    %62 = arith.negf %61 : vector<8x256xf32>
    %63 = math.exp %62 : vector<8x256xf32>
    %cst_27 = arith.constant 1.000000e+00 : f32
    %64 = vector.broadcast %cst_27 : f32 to vector<8x256xf32>
    %65 = arith.addf %64, %63 : vector<8x256xf32>
    %66 = arith.divf %64, %65 : vector<8x256xf32>
    %67 = vector.extract_strided_slice %66 {offsets = [0, 0], sizes = [8, 128], strides = [1, 1]} : vector<8x256xf32> to vector<8x128xf32>
    %68 = vector.extract_strided_slice %66 {offsets = [0, 128], sizes = [8, 128], strides = [1, 1]} : vector<8x256xf32> to vector<8x128xf32>
    %69 = arith.mulf %67, %60 : vector<8x128xf32>
    %cst_28 = arith.constant dense<0.000000e+00> : vector<8x128xf32>
    %70 = tpu.matmul %69, %1, %cst_28 {dimension_numbers = #tpu.dot_dimension_numbers<[1], [0], [0], [1], [0, 0, 1, 1], [], []>} : vector<8x128xf32>, vector<128x128xf32>, vector<8x128xf32> -> vector<8x128xf32>
    %71 = math.tanh %70 : vector<8x128xf32>
    %cst_29 = arith.constant 1.000000e+00 : f32
    %72 = vector.broadcast %cst_29 : f32 to vector<8x128xf32>
    %73 = arith.subf %72, %68 : vector<8x128xf32>
    %cst_30 = arith.constant 2.500000e-01 : f32
    %74 = vector.broadcast %cst_30 : f32 to vector<8x128xf32>
    %75 = arith.mulf %74, %73 : vector<8x128xf32>
    %76 = arith.subf %71, %60 : vector<8x128xf32>
    %77 = arith.mulf %75, %76 : vector<8x128xf32>
    %78 = arith.addf %60, %77 : vector<8x128xf32>
    %c0_31 = arith.constant 0 : index
    %c0_32 = arith.constant 0 : index
    %79 = vector.load %arg0[%c0_31, %c0_32] : memref<64x128xf32, #tpu.memory_space<vmem>>, vector<8x128xf32>
    %cst_33 = arith.constant dense<0.000000e+00> : vector<8x384xf32>
    %80 = tpu.matmul %79, %2, %cst_33 {dimension_numbers = #tpu.dot_dimension_numbers<[1], [0], [0], [1], [0, 0, 1, 1], [], []>} : vector<8x128xf32>, vector<128x384xf32>, vector<8x384xf32> -> vector<8x384xf32>
    %81 = vector.broadcast %4 : vector<1x384xf32> to vector<8x384xf32>
    %82 = arith.addf %80, %81 : vector<8x384xf32>
    %cst_34 = arith.constant dense<0.000000e+00> : vector<8x384xf32>
    %83 = tpu.matmul %78, %3, %cst_34 {dimension_numbers = #tpu.dot_dimension_numbers<[1], [0], [0], [1], [0, 0, 1, 1], [], []>} : vector<8x128xf32>, vector<128x384xf32>, vector<8x384xf32> -> vector<8x384xf32>
    %84 = vector.broadcast %5 : vector<1x384xf32> to vector<8x384xf32>
    %85 = arith.addf %83, %84 : vector<8x384xf32>
    %86 = vector.extract_strided_slice %82 {offsets = [0, 0], sizes = [8, 128], strides = [1, 1]} : vector<8x384xf32> to vector<8x128xf32>
    %87 = vector.extract_strided_slice %85 {offsets = [0, 0], sizes = [8, 128], strides = [1, 1]} : vector<8x384xf32> to vector<8x128xf32>
    %88 = arith.addf %86, %87 : vector<8x128xf32>
    %89 = arith.negf %88 : vector<8x128xf32>
    %90 = math.exp %89 : vector<8x128xf32>
    %cst_35 = arith.constant 1.000000e+00 : f32
    %91 = vector.broadcast %cst_35 : f32 to vector<8x128xf32>
    %92 = arith.addf %91, %90 : vector<8x128xf32>
    %93 = arith.divf %91, %92 : vector<8x128xf32>
    %94 = vector.extract_strided_slice %82 {offsets = [0, 128], sizes = [8, 128], strides = [1, 1]} : vector<8x384xf32> to vector<8x128xf32>
    %95 = vector.extract_strided_slice %85 {offsets = [0, 128], sizes = [8, 128], strides = [1, 1]} : vector<8x384xf32> to vector<8x128xf32>
    %96 = arith.addf %94, %95 : vector<8x128xf32>
    %97 = arith.negf %96 : vector<8x128xf32>
    %98 = math.exp %97 : vector<8x128xf32>
    %cst_36 = arith.constant 1.000000e+00 : f32
    %99 = vector.broadcast %cst_36 : f32 to vector<8x128xf32>
    %100 = arith.addf %99, %98 : vector<8x128xf32>
    %101 = arith.divf %99, %100 : vector<8x128xf32>
    %102 = vector.extract_strided_slice %82 {offsets = [0, 256], sizes = [8, 128], strides = [1, 1]} : vector<8x384xf32> to vector<8x128xf32>
    %103 = vector.extract_strided_slice %85 {offsets = [0, 256], sizes = [8, 128], strides = [1, 1]} : vector<8x384xf32> to vector<8x128xf32>
    %104 = arith.mulf %93, %103 : vector<8x128xf32>
    %105 = arith.addf %102, %104 : vector<8x128xf32>
    %106 = math.tanh %105 : vector<8x128xf32>
    %cst_37 = arith.constant 1.000000e+00 : f32
    %107 = vector.broadcast %cst_37 : f32 to vector<8x128xf32>
    %108 = arith.subf %107, %101 : vector<8x128xf32>
    %109 = arith.mulf %108, %106 : vector<8x128xf32>
    %110 = arith.mulf %101, %78 : vector<8x128xf32>
    %111 = arith.addf %109, %110 : vector<8x128xf32>
    %c0_38 = arith.constant 0 : index
    %c0_39 = arith.constant 0 : index
    %112 = vector.load %arg7[%c0_38, %c0_39] : memref<64x128xf32, #tpu.memory_space<vmem>>, vector<8x128xf32>
    tpu.vector_store %arg7[%c0_38, %c0_39], %111 {strides = array<i32>} : memref<64x128xf32, #tpu.memory_space<vmem>>, vector<8x128xf32>,
    %cst_40 = arith.constant dense<0.000000e+00> : vector<8x256xf32>
    %113 = tpu.matmul %111, %0, %cst_40 {dimension_numbers = #tpu.dot_dimension_numbers<[1], [0], [0], [1], [0, 0, 1, 1], [], []>} : vector<8x128xf32>, vector<128x256xf32>, vector<8x256xf32> -> vector<8x256xf32>
    %114 = arith.negf %113 : vector<8x256xf32>
    %115 = math.exp %114 : vector<8x256xf32>
    %cst_41 = arith.constant 1.000000e+00 : f32
    %116 = vector.broadcast %cst_41 : f32 to vector<8x256xf32>
    %117 = arith.addf %116, %115 : vector<8x256xf32>
    %118 = arith.divf %116, %117 : vector<8x256xf32>
    %119 = vector.extract_strided_slice %118 {offsets = [0, 0], sizes = [8, 128], strides = [1, 1]} : vector<8x256xf32> to vector<8x128xf32>
    %120 = vector.extract_strided_slice %118 {offsets = [0, 128], sizes = [8, 128], strides = [1, 1]} : vector<8x256xf32> to vector<8x128xf32>
    %121 = arith.mulf %119, %111 : vector<8x128xf32>
    %cst_42 = arith.constant dense<0.000000e+00> : vector<8x128xf32>
    %122 = tpu.matmul %121, %1, %cst_42 {dimension_numbers = #tpu.dot_dimension_numbers<[1], [0], [0], [1], [0, 0, 1, 1], [], []>} : vector<8x128xf32>, vector<128x128xf32>, vector<8x128xf32> -> vector<8x128xf32>
    %123 = math.tanh %122 : vector<8x128xf32>
    %cst_43 = arith.constant 1.000000e+00 : f32
    %124 = vector.broadcast %cst_43 : f32 to vector<8x128xf32>
    %125 = arith.subf %124, %120 : vector<8x128xf32>
    %cst_44 = arith.constant 2.500000e-01 : f32
    %126 = vector.broadcast %cst_44 : f32 to vector<8x128xf32>
    %127 = arith.mulf %126, %125 : vector<8x128xf32>
    %128 = arith.subf %123, %111 : vector<8x128xf32>
    %129 = arith.mulf %127, %128 : vector<8x128xf32>
    %130 = arith.addf %111, %129 : vector<8x128xf32>
    %cst_45 = arith.constant dense<0.000000e+00> : vector<8x256xf32>
    %131 = tpu.matmul %130, %0, %cst_45 {dimension_numbers = #tpu.dot_dimension_numbers<[1], [0], [0], [1], [0, 0, 1, 1], [], []>} : vector<8x128xf32>, vector<128x256xf32>, vector<8x256xf32> -> vector<8x256xf32>
    %132 = arith.negf %131 : vector<8x256xf32>
    %133 = math.exp %132 : vector<8x256xf32>
    %cst_46 = arith.constant 1.000000e+00 : f32
    %134 = vector.broadcast %cst_46 : f32 to vector<8x256xf32>
    %135 = arith.addf %134, %133 : vector<8x256xf32>
    %136 = arith.divf %134, %135 : vector<8x256xf32>
    %137 = vector.extract_strided_slice %136 {offsets = [0, 0], sizes = [8, 128], strides = [1, 1]} : vector<8x256xf32> to vector<8x128xf32>
    %138 = vector.extract_strided_slice %136 {offsets = [0, 128], sizes = [8, 128], strides = [1, 1]} : vector<8x256xf32> to vector<8x128xf32>
    %139 = arith.mulf %137, %130 : vector<8x128xf32>
    %cst_47 = arith.constant dense<0.000000e+00> : vector<8x128xf32>
    %140 = tpu.matmul %139, %1, %cst_47 {dimension_numbers = #tpu.dot_dimension_numbers<[1], [0], [0], [1], [0, 0, 1, 1], [], []>} : vector<8x128xf32>, vector<128x128xf32>, vector<8x128xf32> -> vector<8x128xf32>
    %141 = math.tanh %140 : vector<8x128xf32>
    %cst_48 = arith.constant 1.000000e+00 : f32
    %142 = vector.broadcast %cst_48 : f32 to vector<8x128xf32>
    %143 = arith.subf %142, %138 : vector<8x128xf32>
    %cst_49 = arith.constant 2.500000e-01 : f32
    %144 = vector.broadcast %cst_49 : f32 to vector<8x128xf32>
    %145 = arith.mulf %144, %143 : vector<8x128xf32>
    %146 = arith.subf %141, %130 : vector<8x128xf32>
    %147 = arith.mulf %145, %146 : vector<8x128xf32>
    %148 = arith.addf %130, %147 : vector<8x128xf32>
    %c8 = arith.constant 8 : index
    %c0_50 = arith.constant 0 : index
    %149 = vector.load %arg0[%c8, %c0_50] : memref<64x128xf32, #tpu.memory_space<vmem>>, vector<8x128xf32>
    %cst_51 = arith.constant dense<0.000000e+00> : vector<8x384xf32>
    %150 = tpu.matmul %149, %2, %cst_51 {dimension_numbers = #tpu.dot_dimension_numbers<[1], [0], [0], [1], [0, 0, 1, 1], [], []>} : vector<8x128xf32>, vector<128x384xf32>, vector<8x384xf32> -> vector<8x384xf32>
    %151 = vector.broadcast %4 : vector<1x384xf32> to vector<8x384xf32>
    %152 = arith.addf %150, %151 : vector<8x384xf32>
    %cst_52 = arith.constant dense<0.000000e+00> : vector<8x384xf32>
    %153 = tpu.matmul %148, %3, %cst_52 {dimension_numbers = #tpu.dot_dimension_numbers<[1], [0], [0], [1], [0, 0, 1, 1], [], []>} : vector<8x128xf32>, vector<128x384xf32>, vector<8x384xf32> -> vector<8x384xf32>
    %154 = vector.broadcast %5 : vector<1x384xf32> to vector<8x384xf32>
    %155 = arith.addf %153, %154 : vector<8x384xf32>
    %156 = vector.extract_strided_slice %152 {offsets = [0, 0], sizes = [8, 128], strides = [1, 1]} : vector<8x384xf32> to vector<8x128xf32>
    %157 = vector.extract_strided_slice %155 {offsets = [0, 0], sizes = [8, 128], strides = [1, 1]} : vector<8x384xf32> to vector<8x128xf32>
    %158 = arith.addf %156, %157 : vector<8x128xf32>
    %159 = arith.negf %158 : vector<8x128xf32>
    %160 = math.exp %159 : vector<8x128xf32>
    %cst_53 = arith.constant 1.000000e+00 : f32
    %161 = vector.broadcast %cst_53 : f32 to vector<8x128xf32>
    %162 = arith.addf %161, %160 : vector<8x128xf32>
    %163 = arith.divf %161, %162 : vector<8x128xf32>
    %164 = vector.extract_strided_slice %152 {offsets = [0, 128], sizes = [8, 128], strides = [1, 1]} : vector<8x384xf32> to vector<8x128xf32>
    %165 = vector.extract_strided_slice %155 {offsets = [0, 128], sizes = [8, 128], strides = [1, 1]} : vector<8x384xf32> to vector<8x128xf32>
    %166 = arith.addf %164, %165 : vector<8x128xf32>
    %167 = arith.negf %166 : vector<8x128xf32>
    %168 = math.exp %167 : vector<8x128xf32>
    %cst_54 = arith.constant 1.000000e+00 : f32
    %169 = vector.broadcast %cst_54 : f32 to vector<8x128xf32>
    %170 = arith.addf %169, %168 : vector<8x128xf32>
    %171 = arith.divf %169, %170 : vector<8x128xf32>
    %172 = vector.extract_strided_slice %152 {offsets = [0, 256], sizes = [8, 128], strides = [1, 1]} : vector<8x384xf32> to vector<8x128xf32>
    %173 = vector.extract_strided_slice %155 {offsets = [0, 256], sizes = [8, 128], strides = [1, 1]} : vector<8x384xf32> to vector<8x128xf32>
    %174 = arith.mulf %163, %173 : vector<8x128xf32>
    %175 = arith.addf %172, %174 : vector<8x128xf32>
    %176 = math.tanh %175 : vector<8x128xf32>
    %cst_55 = arith.constant 1.000000e+00 : f32
    %177 = vector.broadcast %cst_55 : f32 to vector<8x128xf32>
    %178 = arith.subf %177, %171 : vector<8x128xf32>
    %179 = arith.mulf %178, %176 : vector<8x128xf32>
    %180 = arith.mulf %171, %148 : vector<8x128xf32>
    %181 = arith.addf %179, %180 : vector<8x128xf32>
    %c8_56 = arith.constant 8 : index
    %c0_57 = arith.constant 0 : index
    %182 = vector.load %arg7[%c8_56, %c0_57] : memref<64x128xf32, #tpu.memory_space<vmem>>, vector<8x128xf32>
    tpu.vector_store %arg7[%c8_56, %c0_57], %181 {strides = array<i32>} : memref<64x128xf32, #tpu.memory_space<vmem>>, vector<8x128xf32>,
    %cst_58 = arith.constant dense<0.000000e+00> : vector<8x256xf32>
    %183 = tpu.matmul %181, %0, %cst_58 {dimension_numbers = #tpu.dot_dimension_numbers<[1], [0], [0], [1], [0, 0, 1, 1], [], []>} : vector<8x128xf32>, vector<128x256xf32>, vector<8x256xf32> -> vector<8x256xf32>
    %184 = arith.negf %183 : vector<8x256xf32>
    %185 = math.exp %184 : vector<8x256xf32>
    %cst_59 = arith.constant 1.000000e+00 : f32
    %186 = vector.broadcast %cst_59 : f32 to vector<8x256xf32>
    %187 = arith.addf %186, %185 : vector<8x256xf32>
    %188 = arith.divf %186, %187 : vector<8x256xf32>
    %189 = vector.extract_strided_slice %188 {offsets = [0, 0], sizes = [8, 128], strides = [1, 1]} : vector<8x256xf32> to vector<8x128xf32>
    %190 = vector.extract_strided_slice %188 {offsets = [0, 128], sizes = [8, 128], strides = [1, 1]} : vector<8x256xf32> to vector<8x128xf32>
    %191 = arith.mulf %189, %181 : vector<8x128xf32>
    %cst_60 = arith.constant dense<0.000000e+00> : vector<8x128xf32>
    %192 = tpu.matmul %191, %1, %cst_60 {dimension_numbers = #tpu.dot_dimension_numbers<[1], [0], [0], [1], [0, 0, 1, 1], [], []>} : vector<8x128xf32>, vector<128x128xf32>, vector<8x128xf32> -> vector<8x128xf32>
    %193 = math.tanh %192 : vector<8x128xf32>
    %cst_61 = arith.constant 1.000000e+00 : f32
    %194 = vector.broadcast %cst_61 : f32 to vector<8x128xf32>
    %195 = arith.subf %194, %190 : vector<8x128xf32>
    %cst_62 = arith.constant 2.500000e-01 : f32
    %196 = vector.broadcast %cst_62 : f32 to vector<8x128xf32>
    %197 = arith.mulf %196, %195 : vector<8x128xf32>
    %198 = arith.subf %193, %181 : vector<8x128xf32>
    %199 = arith.mulf %197, %198 : vector<8x128xf32>
    %200 = arith.addf %181, %199 : vector<8x128xf32>
    %cst_63 = arith.constant dense<0.000000e+00> : vector<8x256xf32>
    %201 = tpu.matmul %200, %0, %cst_63 {dimension_numbers = #tpu.dot_dimension_numbers<[1], [0], [0], [1], [0, 0, 1, 1], [], []>} : vector<8x128xf32>, vector<128x256xf32>, vector<8x256xf32> -> vector<8x256xf32>
    %202 = arith.negf %201 : vector<8x256xf32>
    %203 = math.exp %202 : vector<8x256xf32>
    %cst_64 = arith.constant 1.000000e+00 : f32
    %204 = vector.broadcast %cst_64 : f32 to vector<8x256xf32>
    %205 = arith.addf %204, %203 : vector<8x256xf32>
    %206 = arith.divf %204, %205 : vector<8x256xf32>
    %207 = vector.extract_strided_slice %206 {offsets = [0, 0], sizes = [8, 128], strides = [1, 1]} : vector<8x256xf32> to vector<8x128xf32>
    %208 = vector.extract_strided_slice %206 {offsets = [0, 128], sizes = [8, 128], strides = [1, 1]} : vector<8x256xf32> to vector<8x128xf32>
    %209 = arith.mulf %207, %200 : vector<8x128xf32>
    %cst_65 = arith.constant dense<0.000000e+00> : vector<8x128xf32>
    %210 = tpu.matmul %209, %1, %cst_65 {dimension_numbers = #tpu.dot_dimension_numbers<[1], [0], [0], [1], [0, 0, 1, 1], [], []>} : vector<8x128xf32>, vector<128x128xf32>, vector<8x128xf32> -> vector<8x128xf32>
    %211 = math.tanh %210 : vector<8x128xf32>
    %cst_66 = arith.constant 1.000000e+00 : f32
    %212 = vector.broadcast %cst_66 : f32 to vector<8x128xf32>
    %213 = arith.subf %212, %208 : vector<8x128xf32>
    %cst_67 = arith.constant 2.500000e-01 : f32
    %214 = vector.broadcast %cst_67 : f32 to vector<8x128xf32>
    %215 = arith.mulf %214, %213 : vector<8x128xf32>
    %216 = arith.subf %211, %200 : vector<8x128xf32>
    %217 = arith.mulf %215, %216 : vector<8x128xf32>
    %218 = arith.addf %200, %217 : vector<8x128xf32>
    %c16 = arith.constant 16 : index
    %c0_68 = arith.constant 0 : index
    %219 = vector.load %arg0[%c16, %c0_68] : memref<64x128xf32, #tpu.memory_space<vmem>>, vector<8x128xf32>
    %cst_69 = arith.constant dense<0.000000e+00> : vector<8x384xf32>
    %220 = tpu.matmul %219, %2, %cst_69 {dimension_numbers = #tpu.dot_dimension_numbers<[1], [0], [0], [1], [0, 0, 1, 1], [], []>} : vector<8x128xf32>, vector<128x384xf32>, vector<8x384xf32> -> vector<8x384xf32>
    %221 = vector.broadcast %4 : vector<1x384xf32> to vector<8x384xf32>
    %222 = arith.addf %220, %221 : vector<8x384xf32>
    %cst_70 = arith.constant dense<0.000000e+00> : vector<8x384xf32>
    %223 = tpu.matmul %218, %3, %cst_70 {dimension_numbers = #tpu.dot_dimension_numbers<[1], [0], [0], [1], [0, 0, 1, 1], [], []>} : vector<8x128xf32>, vector<128x384xf32>, vector<8x384xf32> -> vector<8x384xf32>
    %224 = vector.broadcast %5 : vector<1x384xf32> to vector<8x384xf32>
    %225 = arith.addf %223, %224 : vector<8x384xf32>
    %226 = vector.extract_strided_slice %222 {offsets = [0, 0], sizes = [8, 128], strides = [1, 1]} : vector<8x384xf32> to vector<8x128xf32>
    %227 = vector.extract_strided_slice %225 {offsets = [0, 0], sizes = [8, 128], strides = [1, 1]} : vector<8x384xf32> to vector<8x128xf32>
    %228 = arith.addf %226, %227 : vector<8x128xf32>
    %229 = arith.negf %228 : vector<8x128xf32>
    %230 = math.exp %229 : vector<8x128xf32>
    %cst_71 = arith.constant 1.000000e+00 : f32
    %231 = vector.broadcast %cst_71 : f32 to vector<8x128xf32>
    %232 = arith.addf %231, %230 : vector<8x128xf32>
    %233 = arith.divf %231, %232 : vector<8x128xf32>
    %234 = vector.extract_strided_slice %222 {offsets = [0, 128], sizes = [8, 128], strides = [1, 1]} : vector<8x384xf32> to vector<8x128xf32>
    %235 = vector.extract_strided_slice %225 {offsets = [0, 128], sizes = [8, 128], strides = [1, 1]} : vector<8x384xf32> to vector<8x128xf32>
    %236 = arith.addf %234, %235 : vector<8x128xf32>
    %237 = arith.negf %236 : vector<8x128xf32>
    %238 = math.exp %237 : vector<8x128xf32>
    %cst_72 = arith.constant 1.000000e+00 : f32
    %239 = vector.broadcast %cst_72 : f32 to vector<8x128xf32>
    %240 = arith.addf %239, %238 : vector<8x128xf32>
    %241 = arith.divf %239, %240 : vector<8x128xf32>
    %242 = vector.extract_strided_slice %222 {offsets = [0, 256], sizes = [8, 128], strides = [1, 1]} : vector<8x384xf32> to vector<8x128xf32>
    %243 = vector.extract_strided_slice %225 {offsets = [0, 256], sizes = [8, 128], strides = [1, 1]} : vector<8x384xf32> to vector<8x128xf32>
    %244 = arith.mulf %233, %243 : vector<8x128xf32>
    %245 = arith.addf %242, %244 : vector<8x128xf32>
    %246 = math.tanh %245 : vector<8x128xf32>
    %cst_73 = arith.constant 1.000000e+00 : f32
    %247 = vector.broadcast %cst_73 : f32 to vector<8x128xf32>
    %248 = arith.subf %247, %241 : vector<8x128xf32>
    %249 = arith.mulf %248, %246 : vector<8x128xf32>
    %250 = arith.mulf %241, %218 : vector<8x128xf32>
    %251 = arith.addf %249, %250 : vector<8x128xf32>
    %c16_74 = arith.constant 16 : index
    %c0_75 = arith.constant 0 : index
    %252 = vector.load %arg7[%c16_74, %c0_75] : memref<64x128xf32, #tpu.memory_space<vmem>>, vector<8x128xf32>
    tpu.vector_store %arg7[%c16_74, %c0_75], %251 {strides = array<i32>} : memref<64x128xf32, #tpu.memory_space<vmem>>, vector<8x128xf32>,
    %cst_76 = arith.constant dense<0.000000e+00> : vector<8x256xf32>
    %253 = tpu.matmul %251, %0, %cst_76 {dimension_numbers = #tpu.dot_dimension_numbers<[1], [0], [0], [1], [0, 0, 1, 1], [], []>} : vector<8x128xf32>, vector<128x256xf32>, vector<8x256xf32> -> vector<8x256xf32>
    %254 = arith.negf %253 : vector<8x256xf32>
    %255 = math.exp %254 : vector<8x256xf32>
    %cst_77 = arith.constant 1.000000e+00 : f32
    %256 = vector.broadcast %cst_77 : f32 to vector<8x256xf32>
    %257 = arith.addf %256, %255 : vector<8x256xf32>
    %258 = arith.divf %256, %257 : vector<8x256xf32>
    %259 = vector.extract_strided_slice %258 {offsets = [0, 0], sizes = [8, 128], strides = [1, 1]} : vector<8x256xf32> to vector<8x128xf32>
    %260 = vector.extract_strided_slice %258 {offsets = [0, 128], sizes = [8, 128], strides = [1, 1]} : vector<8x256xf32> to vector<8x128xf32>
    %261 = arith.mulf %259, %251 : vector<8x128xf32>
    %cst_78 = arith.constant dense<0.000000e+00> : vector<8x128xf32>
    %262 = tpu.matmul %261, %1, %cst_78 {dimension_numbers = #tpu.dot_dimension_numbers<[1], [0], [0], [1], [0, 0, 1, 1], [], []>} : vector<8x128xf32>, vector<128x128xf32>, vector<8x128xf32> -> vector<8x128xf32>
    %263 = math.tanh %262 : vector<8x128xf32>
    %cst_79 = arith.constant 1.000000e+00 : f32
    %264 = vector.broadcast %cst_79 : f32 to vector<8x128xf32>
    %265 = arith.subf %264, %260 : vector<8x128xf32>
    %cst_80 = arith.constant 2.500000e-01 : f32
    %266 = vector.broadcast %cst_80 : f32 to vector<8x128xf32>
    %267 = arith.mulf %266, %265 : vector<8x128xf32>
    %268 = arith.subf %263, %251 : vector<8x128xf32>
    %269 = arith.mulf %267, %268 : vector<8x128xf32>
    %270 = arith.addf %251, %269 : vector<8x128xf32>
    %cst_81 = arith.constant dense<0.000000e+00> : vector<8x256xf32>
    %271 = tpu.matmul %270, %0, %cst_81 {dimension_numbers = #tpu.dot_dimension_numbers<[1], [0], [0], [1], [0, 0, 1, 1], [], []>} : vector<8x128xf32>, vector<128x256xf32>, vector<8x256xf32> -> vector<8x256xf32>
    %272 = arith.negf %271 : vector<8x256xf32>
    %273 = math.exp %272 : vector<8x256xf32>
    %cst_82 = arith.constant 1.000000e+00 : f32
    %274 = vector.broadcast %cst_82 : f32 to vector<8x256xf32>
    %275 = arith.addf %274, %273 : vector<8x256xf32>
    %276 = arith.divf %274, %275 : vector<8x256xf32>
    %277 = vector.extract_strided_slice %276 {offsets = [0, 0], sizes = [8, 128], strides = [1, 1]} : vector<8x256xf32> to vector<8x128xf32>
    %278 = vector.extract_strided_slice %276 {offsets = [0, 128], sizes = [8, 128], strides = [1, 1]} : vector<8x256xf32> to vector<8x128xf32>
    %279 = arith.mulf %277, %270 : vector<8x128xf32>
    %cst_83 = arith.constant dense<0.000000e+00> : vector<8x128xf32>
    %280 = tpu.matmul %279, %1, %cst_83 {dimension_numbers = #tpu.dot_dimension_numbers<[1], [0], [0], [1], [0, 0, 1, 1], [], []>} : vector<8x128xf32>, vector<128x128xf32>, vector<8x128xf32> -> vector<8x128xf32>
    %281 = math.tanh %280 : vector<8x128xf32>
    %cst_84 = arith.constant 1.000000e+00 : f32
    %282 = vector.broadcast %cst_84 : f32 to vector<8x128xf32>
    %283 = arith.subf %282, %278 : vector<8x128xf32>
    %cst_85 = arith.constant 2.500000e-01 : f32
    %284 = vector.broadcast %cst_85 : f32 to vector<8x128xf32>
    %285 = arith.mulf %284, %283 : vector<8x128xf32>
    %286 = arith.subf %281, %270 : vector<8x128xf32>
    %287 = arith.mulf %285, %286 : vector<8x128xf32>
    %288 = arith.addf %270, %287 : vector<8x128xf32>
    %c24 = arith.constant 24 : index
    %c0_86 = arith.constant 0 : index
    %289 = vector.load %arg0[%c24, %c0_86] : memref<64x128xf32, #tpu.memory_space<vmem>>, vector<8x128xf32>
    %cst_87 = arith.constant dense<0.000000e+00> : vector<8x384xf32>
    %290 = tpu.matmul %289, %2, %cst_87 {dimension_numbers = #tpu.dot_dimension_numbers<[1], [0], [0], [1], [0, 0, 1, 1], [], []>} : vector<8x128xf32>, vector<128x384xf32>, vector<8x384xf32> -> vector<8x384xf32>
    %291 = vector.broadcast %4 : vector<1x384xf32> to vector<8x384xf32>
    %292 = arith.addf %290, %291 : vector<8x384xf32>
    %cst_88 = arith.constant dense<0.000000e+00> : vector<8x384xf32>
    %293 = tpu.matmul %288, %3, %cst_88 {dimension_numbers = #tpu.dot_dimension_numbers<[1], [0], [0], [1], [0, 0, 1, 1], [], []>} : vector<8x128xf32>, vector<128x384xf32>, vector<8x384xf32> -> vector<8x384xf32>
    %294 = vector.broadcast %5 : vector<1x384xf32> to vector<8x384xf32>
    %295 = arith.addf %293, %294 : vector<8x384xf32>
    %296 = vector.extract_strided_slice %292 {offsets = [0, 0], sizes = [8, 128], strides = [1, 1]} : vector<8x384xf32> to vector<8x128xf32>
    %297 = vector.extract_strided_slice %295 {offsets = [0, 0], sizes = [8, 128], strides = [1, 1]} : vector<8x384xf32> to vector<8x128xf32>
    %298 = arith.addf %296, %297 : vector<8x128xf32>
    %299 = arith.negf %298 : vector<8x128xf32>
    %300 = math.exp %299 : vector<8x128xf32>
    %cst_89 = arith.constant 1.000000e+00 : f32
    %301 = vector.broadcast %cst_89 : f32 to vector<8x128xf32>
    %302 = arith.addf %301, %300 : vector<8x128xf32>
    %303 = arith.divf %301, %302 : vector<8x128xf32>
    %304 = vector.extract_strided_slice %292 {offsets = [0, 128], sizes = [8, 128], strides = [1, 1]} : vector<8x384xf32> to vector<8x128xf32>
    %305 = vector.extract_strided_slice %295 {offsets = [0, 128], sizes = [8, 128], strides = [1, 1]} : vector<8x384xf32> to vector<8x128xf32>
    %306 = arith.addf %304, %305 : vector<8x128xf32>
    %307 = arith.negf %306 : vector<8x128xf32>
    %308 = math.exp %307 : vector<8x128xf32>
    %cst_90 = arith.constant 1.000000e+00 : f32
    %309 = vector.broadcast %cst_90 : f32 to vector<8x128xf32>
    %310 = arith.addf %309, %308 : vector<8x128xf32>
    %311 = arith.divf %309, %310 : vector<8x128xf32>
    %312 = vector.extract_strided_slice %292 {offsets = [0, 256], sizes = [8, 128], strides = [1, 1]} : vector<8x384xf32> to vector<8x128xf32>
    %313 = vector.extract_strided_slice %295 {offsets = [0, 256], sizes = [8, 128], strides = [1, 1]} : vector<8x384xf32> to vector<8x128xf32>
    %314 = arith.mulf %303, %313 : vector<8x128xf32>
    %315 = arith.addf %312, %314 : vector<8x128xf32>
    %316 = math.tanh %315 : vector<8x128xf32>
    %cst_91 = arith.constant 1.000000e+00 : f32
    %317 = vector.broadcast %cst_91 : f32 to vector<8x128xf32>
    %318 = arith.subf %317, %311 : vector<8x128xf32>
    %319 = arith.mulf %318, %316 : vector<8x128xf32>
    %320 = arith.mulf %311, %288 : vector<8x128xf32>
    %321 = arith.addf %319, %320 : vector<8x128xf32>
    %c24_92 = arith.constant 24 : index
    %c0_93 = arith.constant 0 : index
    %322 = vector.load %arg7[%c24_92, %c0_93] : memref<64x128xf32, #tpu.memory_space<vmem>>, vector<8x128xf32>
    tpu.vector_store %arg7[%c24_92, %c0_93], %321 {strides = array<i32>} : memref<64x128xf32, #tpu.memory_space<vmem>>, vector<8x128xf32>,
    %cst_94 = arith.constant dense<0.000000e+00> : vector<8x256xf32>
    %323 = tpu.matmul %321, %0, %cst_94 {dimension_numbers = #tpu.dot_dimension_numbers<[1], [0], [0], [1], [0, 0, 1, 1], [], []>} : vector<8x128xf32>, vector<128x256xf32>, vector<8x256xf32> -> vector<8x256xf32>
    %324 = arith.negf %323 : vector<8x256xf32>
    %325 = math.exp %324 : vector<8x256xf32>
    %cst_95 = arith.constant 1.000000e+00 : f32
    %326 = vector.broadcast %cst_95 : f32 to vector<8x256xf32>
    %327 = arith.addf %326, %325 : vector<8x256xf32>
    %328 = arith.divf %326, %327 : vector<8x256xf32>
    %329 = vector.extract_strided_slice %328 {offsets = [0, 0], sizes = [8, 128], strides = [1, 1]} : vector<8x256xf32> to vector<8x128xf32>
    %330 = vector.extract_strided_slice %328 {offsets = [0, 128], sizes = [8, 128], strides = [1, 1]} : vector<8x256xf32> to vector<8x128xf32>
    %331 = arith.mulf %329, %321 : vector<8x128xf32>
    %cst_96 = arith.constant dense<0.000000e+00> : vector<8x128xf32>
    %332 = tpu.matmul %331, %1, %cst_96 {dimension_numbers = #tpu.dot_dimension_numbers<[1], [0], [0], [1], [0, 0, 1, 1], [], []>} : vector<8x128xf32>, vector<128x128xf32>, vector<8x128xf32> -> vector<8x128xf32>
    %333 = math.tanh %332 : vector<8x128xf32>
    %cst_97 = arith.constant 1.000000e+00 : f32
    %334 = vector.broadcast %cst_97 : f32 to vector<8x128xf32>
    %335 = arith.subf %334, %330 : vector<8x128xf32>
    %cst_98 = arith.constant 2.500000e-01 : f32
    %336 = vector.broadcast %cst_98 : f32 to vector<8x128xf32>
    %337 = arith.mulf %336, %335 : vector<8x128xf32>
    %338 = arith.subf %333, %321 : vector<8x128xf32>
    %339 = arith.mulf %337, %338 : vector<8x128xf32>
    %340 = arith.addf %321, %339 : vector<8x128xf32>
    %cst_99 = arith.constant dense<0.000000e+00> : vector<8x256xf32>
    %341 = tpu.matmul %340, %0, %cst_99 {dimension_numbers = #tpu.dot_dimension_numbers<[1], [0], [0], [1], [0, 0, 1, 1], [], []>} : vector<8x128xf32>, vector<128x256xf32>, vector<8x256xf32> -> vector<8x256xf32>
    %342 = arith.negf %341 : vector<8x256xf32>
    %343 = math.exp %342 : vector<8x256xf32>
    %cst_100 = arith.constant 1.000000e+00 : f32
    %344 = vector.broadcast %cst_100 : f32 to vector<8x256xf32>
    %345 = arith.addf %344, %343 : vector<8x256xf32>
    %346 = arith.divf %344, %345 : vector<8x256xf32>
    %347 = vector.extract_strided_slice %346 {offsets = [0, 0], sizes = [8, 128], strides = [1, 1]} : vector<8x256xf32> to vector<8x128xf32>
    %348 = vector.extract_strided_slice %346 {offsets = [0, 128], sizes = [8, 128], strides = [1, 1]} : vector<8x256xf32> to vector<8x128xf32>
    %349 = arith.mulf %347, %340 : vector<8x128xf32>
    %cst_101 = arith.constant dense<0.000000e+00> : vector<8x128xf32>
    %350 = tpu.matmul %349, %1, %cst_101 {dimension_numbers = #tpu.dot_dimension_numbers<[1], [0], [0], [1], [0, 0, 1, 1], [], []>} : vector<8x128xf32>, vector<128x128xf32>, vector<8x128xf32> -> vector<8x128xf32>
    %351 = math.tanh %350 : vector<8x128xf32>
    %cst_102 = arith.constant 1.000000e+00 : f32
    %352 = vector.broadcast %cst_102 : f32 to vector<8x128xf32>
    %353 = arith.subf %352, %348 : vector<8x128xf32>
    %cst_103 = arith.constant 2.500000e-01 : f32
    %354 = vector.broadcast %cst_103 : f32 to vector<8x128xf32>
    %355 = arith.mulf %354, %353 : vector<8x128xf32>
    %356 = arith.subf %351, %340 : vector<8x128xf32>
    %357 = arith.mulf %355, %356 : vector<8x128xf32>
    %358 = arith.addf %340, %357 : vector<8x128xf32>
    %c32 = arith.constant 32 : index
    %c0_104 = arith.constant 0 : index
    %359 = vector.load %arg0[%c32, %c0_104] : memref<64x128xf32, #tpu.memory_space<vmem>>, vector<8x128xf32>
    %cst_105 = arith.constant dense<0.000000e+00> : vector<8x384xf32>
    %360 = tpu.matmul %359, %2, %cst_105 {dimension_numbers = #tpu.dot_dimension_numbers<[1], [0], [0], [1], [0, 0, 1, 1], [], []>} : vector<8x128xf32>, vector<128x384xf32>, vector<8x384xf32> -> vector<8x384xf32>
    %361 = vector.broadcast %4 : vector<1x384xf32> to vector<8x384xf32>
    %362 = arith.addf %360, %361 : vector<8x384xf32>
    %cst_106 = arith.constant dense<0.000000e+00> : vector<8x384xf32>
    %363 = tpu.matmul %358, %3, %cst_106 {dimension_numbers = #tpu.dot_dimension_numbers<[1], [0], [0], [1], [0, 0, 1, 1], [], []>} : vector<8x128xf32>, vector<128x384xf32>, vector<8x384xf32> -> vector<8x384xf32>
    %364 = vector.broadcast %5 : vector<1x384xf32> to vector<8x384xf32>
    %365 = arith.addf %363, %364 : vector<8x384xf32>
    %366 = vector.extract_strided_slice %362 {offsets = [0, 0], sizes = [8, 128], strides = [1, 1]} : vector<8x384xf32> to vector<8x128xf32>
    %367 = vector.extract_strided_slice %365 {offsets = [0, 0], sizes = [8, 128], strides = [1, 1]} : vector<8x384xf32> to vector<8x128xf32>
    %368 = arith.addf %366, %367 : vector<8x128xf32>
    %369 = arith.negf %368 : vector<8x128xf32>
    %370 = math.exp %369 : vector<8x128xf32>
    %cst_107 = arith.constant 1.000000e+00 : f32
    %371 = vector.broadcast %cst_107 : f32 to vector<8x128xf32>
    %372 = arith.addf %371, %370 : vector<8x128xf32>
    %373 = arith.divf %371, %372 : vector<8x128xf32>
    %374 = vector.extract_strided_slice %362 {offsets = [0, 128], sizes = [8, 128], strides = [1, 1]} : vector<8x384xf32> to vector<8x128xf32>
    %375 = vector.extract_strided_slice %365 {offsets = [0, 128], sizes = [8, 128], strides = [1, 1]} : vector<8x384xf32> to vector<8x128xf32>
    %376 = arith.addf %374, %375 : vector<8x128xf32>
    %377 = arith.negf %376 : vector<8x128xf32>
    %378 = math.exp %377 : vector<8x128xf32>
    %cst_108 = arith.constant 1.000000e+00 : f32
    %379 = vector.broadcast %cst_108 : f32 to vector<8x128xf32>
    %380 = arith.addf %379, %378 : vector<8x128xf32>
    %381 = arith.divf %379, %380 : vector<8x128xf32>
    %382 = vector.extract_strided_slice %362 {offsets = [0, 256], sizes = [8, 128], strides = [1, 1]} : vector<8x384xf32> to vector<8x128xf32>
    %383 = vector.extract_strided_slice %365 {offsets = [0, 256], sizes = [8, 128], strides = [1, 1]} : vector<8x384xf32> to vector<8x128xf32>
    %384 = arith.mulf %373, %383 : vector<8x128xf32>
    %385 = arith.addf %382, %384 : vector<8x128xf32>
    %386 = math.tanh %385 : vector<8x128xf32>
    %cst_109 = arith.constant 1.000000e+00 : f32
    %387 = vector.broadcast %cst_109 : f32 to vector<8x128xf32>
    %388 = arith.subf %387, %381 : vector<8x128xf32>
    %389 = arith.mulf %388, %386 : vector<8x128xf32>
    %390 = arith.mulf %381, %358 : vector<8x128xf32>
    %391 = arith.addf %389, %390 : vector<8x128xf32>
    %c32_110 = arith.constant 32 : index
    %c0_111 = arith.constant 0 : index
    %392 = vector.load %arg7[%c32_110, %c0_111] : memref<64x128xf32, #tpu.memory_space<vmem>>, vector<8x128xf32>
    tpu.vector_store %arg7[%c32_110, %c0_111], %391 {strides = array<i32>} : memref<64x128xf32, #tpu.memory_space<vmem>>, vector<8x128xf32>,
    %cst_112 = arith.constant dense<0.000000e+00> : vector<8x256xf32>
    %393 = tpu.matmul %391, %0, %cst_112 {dimension_numbers = #tpu.dot_dimension_numbers<[1], [0], [0], [1], [0, 0, 1, 1], [], []>} : vector<8x128xf32>, vector<128x256xf32>, vector<8x256xf32> -> vector<8x256xf32>
    %394 = arith.negf %393 : vector<8x256xf32>
    %395 = math.exp %394 : vector<8x256xf32>
    %cst_113 = arith.constant 1.000000e+00 : f32
    %396 = vector.broadcast %cst_113 : f32 to vector<8x256xf32>
    %397 = arith.addf %396, %395 : vector<8x256xf32>
    %398 = arith.divf %396, %397 : vector<8x256xf32>
    %399 = vector.extract_strided_slice %398 {offsets = [0, 0], sizes = [8, 128], strides = [1, 1]} : vector<8x256xf32> to vector<8x128xf32>
    %400 = vector.extract_strided_slice %398 {offsets = [0, 128], sizes = [8, 128], strides = [1, 1]} : vector<8x256xf32> to vector<8x128xf32>
    %401 = arith.mulf %399, %391 : vector<8x128xf32>
    %cst_114 = arith.constant dense<0.000000e+00> : vector<8x128xf32>
    %402 = tpu.matmul %401, %1, %cst_114 {dimension_numbers = #tpu.dot_dimension_numbers<[1], [0], [0], [1], [0, 0, 1, 1], [], []>} : vector<8x128xf32>, vector<128x128xf32>, vector<8x128xf32> -> vector<8x128xf32>
    %403 = math.tanh %402 : vector<8x128xf32>
    %cst_115 = arith.constant 1.000000e+00 : f32
    %404 = vector.broadcast %cst_115 : f32 to vector<8x128xf32>
    %405 = arith.subf %404, %400 : vector<8x128xf32>
    %cst_116 = arith.constant 2.500000e-01 : f32
    %406 = vector.broadcast %cst_116 : f32 to vector<8x128xf32>
    %407 = arith.mulf %406, %405 : vector<8x128xf32>
    %408 = arith.subf %403, %391 : vector<8x128xf32>
    %409 = arith.mulf %407, %408 : vector<8x128xf32>
    %410 = arith.addf %391, %409 : vector<8x128xf32>
    %cst_117 = arith.constant dense<0.000000e+00> : vector<8x256xf32>
    %411 = tpu.matmul %410, %0, %cst_117 {dimension_numbers = #tpu.dot_dimension_numbers<[1], [0], [0], [1], [0, 0, 1, 1], [], []>} : vector<8x128xf32>, vector<128x256xf32>, vector<8x256xf32> -> vector<8x256xf32>
    %412 = arith.negf %411 : vector<8x256xf32>
    %413 = math.exp %412 : vector<8x256xf32>
    %cst_118 = arith.constant 1.000000e+00 : f32
    %414 = vector.broadcast %cst_118 : f32 to vector<8x256xf32>
    %415 = arith.addf %414, %413 : vector<8x256xf32>
    %416 = arith.divf %414, %415 : vector<8x256xf32>
    %417 = vector.extract_strided_slice %416 {offsets = [0, 0], sizes = [8, 128], strides = [1, 1]} : vector<8x256xf32> to vector<8x128xf32>
    %418 = vector.extract_strided_slice %416 {offsets = [0, 128], sizes = [8, 128], strides = [1, 1]} : vector<8x256xf32> to vector<8x128xf32>
    %419 = arith.mulf %417, %410 : vector<8x128xf32>
    %cst_119 = arith.constant dense<0.000000e+00> : vector<8x128xf32>
    %420 = tpu.matmul %419, %1, %cst_119 {dimension_numbers = #tpu.dot_dimension_numbers<[1], [0], [0], [1], [0, 0, 1, 1], [], []>} : vector<8x128xf32>, vector<128x128xf32>, vector<8x128xf32> -> vector<8x128xf32>
    %421 = math.tanh %420 : vector<8x128xf32>
    %cst_120 = arith.constant 1.000000e+00 : f32
    %422 = vector.broadcast %cst_120 : f32 to vector<8x128xf32>
    %423 = arith.subf %422, %418 : vector<8x128xf32>
    %cst_121 = arith.constant 2.500000e-01 : f32
    %424 = vector.broadcast %cst_121 : f32 to vector<8x128xf32>
    %425 = arith.mulf %424, %423 : vector<8x128xf32>
    %426 = arith.subf %421, %410 : vector<8x128xf32>
    %427 = arith.mulf %425, %426 : vector<8x128xf32>
    %428 = arith.addf %410, %427 : vector<8x128xf32>
    %c40 = arith.constant 40 : index
    %c0_122 = arith.constant 0 : index
    %429 = vector.load %arg0[%c40, %c0_122] : memref<64x128xf32, #tpu.memory_space<vmem>>, vector<8x128xf32>
    %cst_123 = arith.constant dense<0.000000e+00> : vector<8x384xf32>
    %430 = tpu.matmul %429, %2, %cst_123 {dimension_numbers = #tpu.dot_dimension_numbers<[1], [0], [0], [1], [0, 0, 1, 1], [], []>} : vector<8x128xf32>, vector<128x384xf32>, vector<8x384xf32> -> vector<8x384xf32>
    %431 = vector.broadcast %4 : vector<1x384xf32> to vector<8x384xf32>
    %432 = arith.addf %430, %431 : vector<8x384xf32>
    %cst_124 = arith.constant dense<0.000000e+00> : vector<8x384xf32>
    %433 = tpu.matmul %428, %3, %cst_124 {dimension_numbers = #tpu.dot_dimension_numbers<[1], [0], [0], [1], [0, 0, 1, 1], [], []>} : vector<8x128xf32>, vector<128x384xf32>, vector<8x384xf32> -> vector<8x384xf32>
    %434 = vector.broadcast %5 : vector<1x384xf32> to vector<8x384xf32>
    %435 = arith.addf %433, %434 : vector<8x384xf32>
    %436 = vector.extract_strided_slice %432 {offsets = [0, 0], sizes = [8, 128], strides = [1, 1]} : vector<8x384xf32> to vector<8x128xf32>
    %437 = vector.extract_strided_slice %435 {offsets = [0, 0], sizes = [8, 128], strides = [1, 1]} : vector<8x384xf32> to vector<8x128xf32>
    %438 = arith.addf %436, %437 : vector<8x128xf32>
    %439 = arith.negf %438 : vector<8x128xf32>
    %440 = math.exp %439 : vector<8x128xf32>
    %cst_125 = arith.constant 1.000000e+00 : f32
    %441 = vector.broadcast %cst_125 : f32 to vector<8x128xf32>
    %442 = arith.addf %441, %440 : vector<8x128xf32>
    %443 = arith.divf %441, %442 : vector<8x128xf32>
    %444 = vector.extract_strided_slice %432 {offsets = [0, 128], sizes = [8, 128], strides = [1, 1]} : vector<8x384xf32> to vector<8x128xf32>
    %445 = vector.extract_strided_slice %435 {offsets = [0, 128], sizes = [8, 128], strides = [1, 1]} : vector<8x384xf32> to vector<8x128xf32>
    %446 = arith.addf %444, %445 : vector<8x128xf32>
    %447 = arith.negf %446 : vector<8x128xf32>
    %448 = math.exp %447 : vector<8x128xf32>
    %cst_126 = arith.constant 1.000000e+00 : f32
    %449 = vector.broadcast %cst_126 : f32 to vector<8x128xf32>
    %450 = arith.addf %449, %448 : vector<8x128xf32>
    %451 = arith.divf %449, %450 : vector<8x128xf32>
    %452 = vector.extract_strided_slice %432 {offsets = [0, 256], sizes = [8, 128], strides = [1, 1]} : vector<8x384xf32> to vector<8x128xf32>
    %453 = vector.extract_strided_slice %435 {offsets = [0, 256], sizes = [8, 128], strides = [1, 1]} : vector<8x384xf32> to vector<8x128xf32>
    %454 = arith.mulf %443, %453 : vector<8x128xf32>
    %455 = arith.addf %452, %454 : vector<8x128xf32>
    %456 = math.tanh %455 : vector<8x128xf32>
    %cst_127 = arith.constant 1.000000e+00 : f32
    %457 = vector.broadcast %cst_127 : f32 to vector<8x128xf32>
    %458 = arith.subf %457, %451 : vector<8x128xf32>
    %459 = arith.mulf %458, %456 : vector<8x128xf32>
    %460 = arith.mulf %451, %428 : vector<8x128xf32>
    %461 = arith.addf %459, %460 : vector<8x128xf32>
    %c40_128 = arith.constant 40 : index
    %c0_129 = arith.constant 0 : index
    %462 = vector.load %arg7[%c40_128, %c0_129] : memref<64x128xf32, #tpu.memory_space<vmem>>, vector<8x128xf32>
    tpu.vector_store %arg7[%c40_128, %c0_129], %461 {strides = array<i32>} : memref<64x128xf32, #tpu.memory_space<vmem>>, vector<8x128xf32>,
    %cst_130 = arith.constant dense<0.000000e+00> : vector<8x256xf32>
    %463 = tpu.matmul %461, %0, %cst_130 {dimension_numbers = #tpu.dot_dimension_numbers<[1], [0], [0], [1], [0, 0, 1, 1], [], []>} : vector<8x128xf32>, vector<128x256xf32>, vector<8x256xf32> -> vector<8x256xf32>
    %464 = arith.negf %463 : vector<8x256xf32>
    %465 = math.exp %464 : vector<8x256xf32>
    %cst_131 = arith.constant 1.000000e+00 : f32
    %466 = vector.broadcast %cst_131 : f32 to vector<8x256xf32>
    %467 = arith.addf %466, %465 : vector<8x256xf32>
    %468 = arith.divf %466, %467 : vector<8x256xf32>
    %469 = vector.extract_strided_slice %468 {offsets = [0, 0], sizes = [8, 128], strides = [1, 1]} : vector<8x256xf32> to vector<8x128xf32>
    %470 = vector.extract_strided_slice %468 {offsets = [0, 128], sizes = [8, 128], strides = [1, 1]} : vector<8x256xf32> to vector<8x128xf32>
    %471 = arith.mulf %469, %461 : vector<8x128xf32>
    %cst_132 = arith.constant dense<0.000000e+00> : vector<8x128xf32>
    %472 = tpu.matmul %471, %1, %cst_132 {dimension_numbers = #tpu.dot_dimension_numbers<[1], [0], [0], [1], [0, 0, 1, 1], [], []>} : vector<8x128xf32>, vector<128x128xf32>, vector<8x128xf32> -> vector<8x128xf32>
    %473 = math.tanh %472 : vector<8x128xf32>
    %cst_133 = arith.constant 1.000000e+00 : f32
    %474 = vector.broadcast %cst_133 : f32 to vector<8x128xf32>
    %475 = arith.subf %474, %470 : vector<8x128xf32>
    %cst_134 = arith.constant 2.500000e-01 : f32
    %476 = vector.broadcast %cst_134 : f32 to vector<8x128xf32>
    %477 = arith.mulf %476, %475 : vector<8x128xf32>
    %478 = arith.subf %473, %461 : vector<8x128xf32>
    %479 = arith.mulf %477, %478 : vector<8x128xf32>
    %480 = arith.addf %461, %479 : vector<8x128xf32>
    %cst_135 = arith.constant dense<0.000000e+00> : vector<8x256xf32>
    %481 = tpu.matmul %480, %0, %cst_135 {dimension_numbers = #tpu.dot_dimension_numbers<[1], [0], [0], [1], [0, 0, 1, 1], [], []>} : vector<8x128xf32>, vector<128x256xf32>, vector<8x256xf32> -> vector<8x256xf32>
    %482 = arith.negf %481 : vector<8x256xf32>
    %483 = math.exp %482 : vector<8x256xf32>
    %cst_136 = arith.constant 1.000000e+00 : f32
    %484 = vector.broadcast %cst_136 : f32 to vector<8x256xf32>
    %485 = arith.addf %484, %483 : vector<8x256xf32>
    %486 = arith.divf %484, %485 : vector<8x256xf32>
    %487 = vector.extract_strided_slice %486 {offsets = [0, 0], sizes = [8, 128], strides = [1, 1]} : vector<8x256xf32> to vector<8x128xf32>
    %488 = vector.extract_strided_slice %486 {offsets = [0, 128], sizes = [8, 128], strides = [1, 1]} : vector<8x256xf32> to vector<8x128xf32>
    %489 = arith.mulf %487, %480 : vector<8x128xf32>
    %cst_137 = arith.constant dense<0.000000e+00> : vector<8x128xf32>
    %490 = tpu.matmul %489, %1, %cst_137 {dimension_numbers = #tpu.dot_dimension_numbers<[1], [0], [0], [1], [0, 0, 1, 1], [], []>} : vector<8x128xf32>, vector<128x128xf32>, vector<8x128xf32> -> vector<8x128xf32>
    %491 = math.tanh %490 : vector<8x128xf32>
    %cst_138 = arith.constant 1.000000e+00 : f32
    %492 = vector.broadcast %cst_138 : f32 to vector<8x128xf32>
    %493 = arith.subf %492, %488 : vector<8x128xf32>
    %cst_139 = arith.constant 2.500000e-01 : f32
    %494 = vector.broadcast %cst_139 : f32 to vector<8x128xf32>
    %495 = arith.mulf %494, %493 : vector<8x128xf32>
    %496 = arith.subf %491, %480 : vector<8x128xf32>
    %497 = arith.mulf %495, %496 : vector<8x128xf32>
    %498 = arith.addf %480, %497 : vector<8x128xf32>
    %c48 = arith.constant 48 : index
    %c0_140 = arith.constant 0 : index
    %499 = vector.load %arg0[%c48, %c0_140] : memref<64x128xf32, #tpu.memory_space<vmem>>, vector<8x128xf32>
    %cst_141 = arith.constant dense<0.000000e+00> : vector<8x384xf32>
    %500 = tpu.matmul %499, %2, %cst_141 {dimension_numbers = #tpu.dot_dimension_numbers<[1], [0], [0], [1], [0, 0, 1, 1], [], []>} : vector<8x128xf32>, vector<128x384xf32>, vector<8x384xf32> -> vector<8x384xf32>
    %501 = vector.broadcast %4 : vector<1x384xf32> to vector<8x384xf32>
    %502 = arith.addf %500, %501 : vector<8x384xf32>
    %cst_142 = arith.constant dense<0.000000e+00> : vector<8x384xf32>
    %503 = tpu.matmul %498, %3, %cst_142 {dimension_numbers = #tpu.dot_dimension_numbers<[1], [0], [0], [1], [0, 0, 1, 1], [], []>} : vector<8x128xf32>, vector<128x384xf32>, vector<8x384xf32> -> vector<8x384xf32>
    %504 = vector.broadcast %5 : vector<1x384xf32> to vector<8x384xf32>
    %505 = arith.addf %503, %504 : vector<8x384xf32>
    %506 = vector.extract_strided_slice %502 {offsets = [0, 0], sizes = [8, 128], strides = [1, 1]} : vector<8x384xf32> to vector<8x128xf32>
    %507 = vector.extract_strided_slice %505 {offsets = [0, 0], sizes = [8, 128], strides = [1, 1]} : vector<8x384xf32> to vector<8x128xf32>
    %508 = arith.addf %506, %507 : vector<8x128xf32>
    %509 = arith.negf %508 : vector<8x128xf32>
    %510 = math.exp %509 : vector<8x128xf32>
    %cst_143 = arith.constant 1.000000e+00 : f32
    %511 = vector.broadcast %cst_143 : f32 to vector<8x128xf32>
    %512 = arith.addf %511, %510 : vector<8x128xf32>
    %513 = arith.divf %511, %512 : vector<8x128xf32>
    %514 = vector.extract_strided_slice %502 {offsets = [0, 128], sizes = [8, 128], strides = [1, 1]} : vector<8x384xf32> to vector<8x128xf32>
    %515 = vector.extract_strided_slice %505 {offsets = [0, 128], sizes = [8, 128], strides = [1, 1]} : vector<8x384xf32> to vector<8x128xf32>
    %516 = arith.addf %514, %515 : vector<8x128xf32>
    %517 = arith.negf %516 : vector<8x128xf32>
    %518 = math.exp %517 : vector<8x128xf32>
    %cst_144 = arith.constant 1.000000e+00 : f32
    %519 = vector.broadcast %cst_144 : f32 to vector<8x128xf32>
    %520 = arith.addf %519, %518 : vector<8x128xf32>
    %521 = arith.divf %519, %520 : vector<8x128xf32>
    %522 = vector.extract_strided_slice %502 {offsets = [0, 256], sizes = [8, 128], strides = [1, 1]} : vector<8x384xf32> to vector<8x128xf32>
    %523 = vector.extract_strided_slice %505 {offsets = [0, 256], sizes = [8, 128], strides = [1, 1]} : vector<8x384xf32> to vector<8x128xf32>
    %524 = arith.mulf %513, %523 : vector<8x128xf32>
    %525 = arith.addf %522, %524 : vector<8x128xf32>
    %526 = math.tanh %525 : vector<8x128xf32>
    %cst_145 = arith.constant 1.000000e+00 : f32
    %527 = vector.broadcast %cst_145 : f32 to vector<8x128xf32>
    %528 = arith.subf %527, %521 : vector<8x128xf32>
    %529 = arith.mulf %528, %526 : vector<8x128xf32>
    %530 = arith.mulf %521, %498 : vector<8x128xf32>
    %531 = arith.addf %529, %530 : vector<8x128xf32>
    %c48_146 = arith.constant 48 : index
    %c0_147 = arith.constant 0 : index
    %532 = vector.load %arg7[%c48_146, %c0_147] : memref<64x128xf32, #tpu.memory_space<vmem>>, vector<8x128xf32>
    tpu.vector_store %arg7[%c48_146, %c0_147], %531 {strides = array<i32>} : memref<64x128xf32, #tpu.memory_space<vmem>>, vector<8x128xf32>,
    %cst_148 = arith.constant dense<0.000000e+00> : vector<8x256xf32>
    %533 = tpu.matmul %531, %0, %cst_148 {dimension_numbers = #tpu.dot_dimension_numbers<[1], [0], [0], [1], [0, 0, 1, 1], [], []>} : vector<8x128xf32>, vector<128x256xf32>, vector<8x256xf32> -> vector<8x256xf32>
    %534 = arith.negf %533 : vector<8x256xf32>
    %535 = math.exp %534 : vector<8x256xf32>
    %cst_149 = arith.constant 1.000000e+00 : f32
    %536 = vector.broadcast %cst_149 : f32 to vector<8x256xf32>
    %537 = arith.addf %536, %535 : vector<8x256xf32>
    %538 = arith.divf %536, %537 : vector<8x256xf32>
    %539 = vector.extract_strided_slice %538 {offsets = [0, 0], sizes = [8, 128], strides = [1, 1]} : vector<8x256xf32> to vector<8x128xf32>
    %540 = vector.extract_strided_slice %538 {offsets = [0, 128], sizes = [8, 128], strides = [1, 1]} : vector<8x256xf32> to vector<8x128xf32>
    %541 = arith.mulf %539, %531 : vector<8x128xf32>
    %cst_150 = arith.constant dense<0.000000e+00> : vector<8x128xf32>
    %542 = tpu.matmul %541, %1, %cst_150 {dimension_numbers = #tpu.dot_dimension_numbers<[1], [0], [0], [1], [0, 0, 1, 1], [], []>} : vector<8x128xf32>, vector<128x128xf32>, vector<8x128xf32> -> vector<8x128xf32>
    %543 = math.tanh %542 : vector<8x128xf32>
    %cst_151 = arith.constant 1.000000e+00 : f32
    %544 = vector.broadcast %cst_151 : f32 to vector<8x128xf32>
    %545 = arith.subf %544, %540 : vector<8x128xf32>
    %cst_152 = arith.constant 2.500000e-01 : f32
    %546 = vector.broadcast %cst_152 : f32 to vector<8x128xf32>
    %547 = arith.mulf %546, %545 : vector<8x128xf32>
    %548 = arith.subf %543, %531 : vector<8x128xf32>
    %549 = arith.mulf %547, %548 : vector<8x128xf32>
    %550 = arith.addf %531, %549 : vector<8x128xf32>
    %cst_153 = arith.constant dense<0.000000e+00> : vector<8x256xf32>
    %551 = tpu.matmul %550, %0, %cst_153 {dimension_numbers = #tpu.dot_dimension_numbers<[1], [0], [0], [1], [0, 0, 1, 1], [], []>} : vector<8x128xf32>, vector<128x256xf32>, vector<8x256xf32> -> vector<8x256xf32>
    %552 = arith.negf %551 : vector<8x256xf32>
    %553 = math.exp %552 : vector<8x256xf32>
    %cst_154 = arith.constant 1.000000e+00 : f32
    %554 = vector.broadcast %cst_154 : f32 to vector<8x256xf32>
    %555 = arith.addf %554, %553 : vector<8x256xf32>
    %556 = arith.divf %554, %555 : vector<8x256xf32>
    %557 = vector.extract_strided_slice %556 {offsets = [0, 0], sizes = [8, 128], strides = [1, 1]} : vector<8x256xf32> to vector<8x128xf32>
    %558 = vector.extract_strided_slice %556 {offsets = [0, 128], sizes = [8, 128], strides = [1, 1]} : vector<8x256xf32> to vector<8x128xf32>
    %559 = arith.mulf %557, %550 : vector<8x128xf32>
    %cst_155 = arith.constant dense<0.000000e+00> : vector<8x128xf32>
    %560 = tpu.matmul %559, %1, %cst_155 {dimension_numbers = #tpu.dot_dimension_numbers<[1], [0], [0], [1], [0, 0, 1, 1], [], []>} : vector<8x128xf32>, vector<128x128xf32>, vector<8x128xf32> -> vector<8x128xf32>
    %561 = math.tanh %560 : vector<8x128xf32>
    %cst_156 = arith.constant 1.000000e+00 : f32
    %562 = vector.broadcast %cst_156 : f32 to vector<8x128xf32>
    %563 = arith.subf %562, %558 : vector<8x128xf32>
    %cst_157 = arith.constant 2.500000e-01 : f32
    %564 = vector.broadcast %cst_157 : f32 to vector<8x128xf32>
    %565 = arith.mulf %564, %563 : vector<8x128xf32>
    %566 = arith.subf %561, %550 : vector<8x128xf32>
    %567 = arith.mulf %565, %566 : vector<8x128xf32>
    %568 = arith.addf %550, %567 : vector<8x128xf32>
    %c56 = arith.constant 56 : index
    %c0_158 = arith.constant 0 : index
    %569 = vector.load %arg0[%c56, %c0_158] : memref<64x128xf32, #tpu.memory_space<vmem>>, vector<8x128xf32>
    %cst_159 = arith.constant dense<0.000000e+00> : vector<8x384xf32>
    %570 = tpu.matmul %569, %2, %cst_159 {dimension_numbers = #tpu.dot_dimension_numbers<[1], [0], [0], [1], [0, 0, 1, 1], [], []>} : vector<8x128xf32>, vector<128x384xf32>, vector<8x384xf32> -> vector<8x384xf32>
    %571 = vector.broadcast %4 : vector<1x384xf32> to vector<8x384xf32>
    %572 = arith.addf %570, %571 : vector<8x384xf32>
    %cst_160 = arith.constant dense<0.000000e+00> : vector<8x384xf32>
    %573 = tpu.matmul %568, %3, %cst_160 {dimension_numbers = #tpu.dot_dimension_numbers<[1], [0], [0], [1], [0, 0, 1, 1], [], []>} : vector<8x128xf32>, vector<128x384xf32>, vector<8x384xf32> -> vector<8x384xf32>
    %574 = vector.broadcast %5 : vector<1x384xf32> to vector<8x384xf32>
    %575 = arith.addf %573, %574 : vector<8x384xf32>
    %576 = vector.extract_strided_slice %572 {offsets = [0, 0], sizes = [8, 128], strides = [1, 1]} : vector<8x384xf32> to vector<8x128xf32>
    %577 = vector.extract_strided_slice %575 {offsets = [0, 0], sizes = [8, 128], strides = [1, 1]} : vector<8x384xf32> to vector<8x128xf32>
    %578 = arith.addf %576, %577 : vector<8x128xf32>
    %579 = arith.negf %578 : vector<8x128xf32>
    %580 = math.exp %579 : vector<8x128xf32>
    %cst_161 = arith.constant 1.000000e+00 : f32
    %581 = vector.broadcast %cst_161 : f32 to vector<8x128xf32>
    %582 = arith.addf %581, %580 : vector<8x128xf32>
    %583 = arith.divf %581, %582 : vector<8x128xf32>
    %584 = vector.extract_strided_slice %572 {offsets = [0, 128], sizes = [8, 128], strides = [1, 1]} : vector<8x384xf32> to vector<8x128xf32>
    %585 = vector.extract_strided_slice %575 {offsets = [0, 128], sizes = [8, 128], strides = [1, 1]} : vector<8x384xf32> to vector<8x128xf32>
    %586 = arith.addf %584, %585 : vector<8x128xf32>
    %587 = arith.negf %586 : vector<8x128xf32>
    %588 = math.exp %587 : vector<8x128xf32>
    %cst_162 = arith.constant 1.000000e+00 : f32
    %589 = vector.broadcast %cst_162 : f32 to vector<8x128xf32>
    %590 = arith.addf %589, %588 : vector<8x128xf32>
    %591 = arith.divf %589, %590 : vector<8x128xf32>
    %592 = vector.extract_strided_slice %572 {offsets = [0, 256], sizes = [8, 128], strides = [1, 1]} : vector<8x384xf32> to vector<8x128xf32>
    %593 = vector.extract_strided_slice %575 {offsets = [0, 256], sizes = [8, 128], strides = [1, 1]} : vector<8x384xf32> to vector<8x128xf32>
    %594 = arith.mulf %583, %593 : vector<8x128xf32>
    %595 = arith.addf %592, %594 : vector<8x128xf32>
    %596 = math.tanh %595 : vector<8x128xf32>
    %cst_163 = arith.constant 1.000000e+00 : f32
    %597 = vector.broadcast %cst_163 : f32 to vector<8x128xf32>
    %598 = arith.subf %597, %591 : vector<8x128xf32>
    %599 = arith.mulf %598, %596 : vector<8x128xf32>
    %600 = arith.mulf %591, %568 : vector<8x128xf32>
    %601 = arith.addf %599, %600 : vector<8x128xf32>
    %c56_164 = arith.constant 56 : index
    %c0_165 = arith.constant 0 : index
    %602 = vector.load %arg7[%c56_164, %c0_165] : memref<64x128xf32, #tpu.memory_space<vmem>>, vector<8x128xf32>
    tpu.vector_store %arg7[%c56_164, %c0_165], %601 {strides = array<i32>} : memref<64x128xf32, #tpu.memory_space<vmem>>, vector<8x128xf32>,
    return
  }
}

</mosaic_0001>

<bundles_post_ra>
// kernel: tpu_custom_call.1
= control target key start
LH: loop header
LB: loop body
LE: loop exit
PB: predicated region body
PF: predicated region fallthrough
CT: control target
= control target key end

     0   :  { %12 = vsyncpa [#allocation3], 0  ;;  %s11411_s0 = inlined_call_operand.hbm [shape: f32[64,128], index: 0, kind: input, shape index: {}]   ;;  %s11412_s1 = inlined_call_operand.hbm [shape: f32[128,256], index: 1, kind: input, shape index: {}]   ;;  %s11413_s2 = inlined_call_operand.hbm [shape: f32[128,128], index: 2, kind: input, shape index: {}]   ;;  %s11414_s3 = inlined_call_operand.hbm [shape: f32[128,384], index: 3, kind: input, shape index: {}]   ;;  %s11415_s4 = inlined_call_operand.hbm [shape: f32[128,384], index: 4, kind: input, shape index: {}]   ;;  %s11416_s5 = inlined_call_operand.vmem [shape: f32[1,384], index: 5, kind: input, shape index: {}]   ;;  %s11417_s6 = inlined_call_operand.vmem [shape: f32[1,384], index: 6, kind: input, shape index: {}]   ;;  %s11418_s7 = inlined_call_operand.hbm [shape: f32[64,128], index: 7, kind: output, shape index: {}]  }
   0x1   :  { %13 = vsyncpa [#allocation6], 0 }
   0x2   :  { %14 = vsyncpa [#allocation9], 0 }
   0x3   :  { %15 = vsyncpa [#allocation4], 0  ;;  %s9798_s24 = smov [#allocation5]   ;;  %s9658_s28 = scalar_lea.hbm %s11412_s1, 4096 }
   0x4   :  { %s33_s25 = sshll.u32 %s9798_s24, 4  ;;  %p9659_p0 = scmp.ne.s32.totalorder %s11412_s1, %s9658_s28  ;;  %s34_s25 = int_to_ptr.vmem [resolvable:$true] %s33_s25 }
   0x5   :  { %p9662_p1 = scmp.lt.u32.totalorder %s9658_s28, %s11412_s1 }
   0x7   :  { %p9664_p2 = pnand %p9662_p1, %p9659_p0 }
   0x9   :  { %9667 = shalt.err (!%p9664_p2)
}
   0xa   :  { %s9668_s10 = scalar_lea.vmem %s34_s25, 4096  ;;  %p9673_p4 = scmp.lt.s32.totalorder %s34_s25, %s34_s25 }
   0xb   :  { %p9669_p3 = scmp.ne.s32.totalorder %s34_s25, %s9668_s10  ;;  %p9674_p5 = scmp.lt.s32.totalorder %s9668_s10, %s9668_s10 }
   0xd   :  { %p9675_p6 = por %p9674_p5, %p9673_p4 }
   0xf   :  { %p9676_p7 = pnand %p9675_p6, %p9669_p3 }
  0x11   :  { %9679 = shalt.err (!%p9676_p7)
}
  0x12   :  { %s9799_s11 = smov 256   ;;  %s9800_s12 = smov 16  }
  0x13   :  { %39 = dma.hbm_to_vmem [thread:$0]  %s11412_s1, 4096, %s34_s25, [#allocation6], %s9799_s11, %s9799_s11, %s9800_s12  }
  0x14   :  { %s9801_s15 = smov [#allocation8]   ;;  %s9680_s19 = scalar_lea.hbm %s11414_s3, 6144 }
  0x15   :  { %s57_s16 = sshll.u32 %s9801_s15, 4  ;;  %p9681_p8 = scmp.ne.s32.totalorder %s11414_s3, %s9680_s19  ;;  %s58_s16 = int_to_ptr.vmem [resolvable:$true] %s57_s16 }
  0x16   :  { %p9684_p9 = scmp.lt.u32.totalorder %s9680_s19, %s11414_s3 }
  0x18   :  { %p9686_p10 = pnand %p9684_p9, %p9681_p8 }
  0x1a   :  { %9689 = shalt.err (!%p9686_p10)
}
  0x1b   :  { %s9690_s24 = scalar_lea.vmem %s58_s16, 6144  ;;  %p9695_p12 = scmp.lt.s32.totalorder %s58_s16, %s58_s16 }
  0x1c   :  { %p9691_p11 = scmp.ne.s32.totalorder %s58_s16, %s9690_s24  ;;  %p9696_p13 = scmp.lt.s32.totalorder %s9690_s24, %s9690_s24 }
  0x1e   :  { %p9697_p0 = por %p9696_p13, %p9695_p12 }
  0x20   :  { %p9698_p1 = pnand %p9697_p0, %p9691_p11 }
  0x22   :  { %9701 = shalt.err (!%p9698_p1)
}
  0x23   :  { %s9802_s1 = smov 384   ;;  %s9803_s25 = smov 24  }
  0x24   :  { %63 = dma.hbm_to_vmem [thread:$0]  %s11414_s3, 6144, %s58_s16, [#allocation9], %s9802_s1, %s9802_s1, %s9803_s25  }
  0x25   :  { %s9804_s28 = smov [#allocation2]   ;;  %s9702_s9 = scalar_lea.hbm %s11411_s0, 1024 }
  0x26   :  { %s21_s29 = sshll.u32 %s9804_s28, 4  ;;  %p9703_p2 = scmp.ne.s32.totalorder %s11411_s0, %s9702_s9  ;;  %s22_s29 = int_to_ptr.vmem [resolvable:$true] %s21_s29 }
  0x27   :  { %p9706_p3 = scmp.lt.u32.totalorder %s9702_s9, %s11411_s0 }
  0x29   :  { %p9708_p4 = pnand %p9706_p3, %p9703_p2 }
  0x2b   :  { %9711 = shalt.err (!%p9708_p4)
}
  0x2c   :  { %s9712_s14 = scalar_lea.vmem %s22_s29, 1024  ;;  %p9717_p6 = scmp.lt.s32.totalorder %s22_s29, %s22_s29 }
  0x2d   :  { %p9713_p5 = scmp.ne.s32.totalorder %s22_s29, %s9712_s14  ;;  %p9718_p7 = scmp.lt.s32.totalorder %s9712_s14, %s9712_s14 }
  0x2f   :  { %p9719_p8 = por %p9718_p7, %p9717_p6 }
  0x31   :  { %p9720_p9 = pnand %p9719_p8, %p9713_p5 }
  0x33   :  { %9723 = shalt.err (!%p9720_p9)
}
  0x34   :  { %s9805_s3 = smov 128   ;;  %s9806_s15 = smov 8  }
  0x35   :  { %27 = dma.hbm_to_vmem [thread:$0]  %s11411_s0, 1024, %s22_s29, [#allocation3], %s9805_s3, %s9805_s3, %s9806_s15  }
  0x36   :  { %s9807_s18 = smov [#allocation7]   ;;  %s9808_s20 = smov [#allocation10]  }
  0x37   :  { %s45_s19 = sshll.u32 %s9807_s18, 4  ;;  %s69_s21 = sshll.u32 %s9808_s20, 4  ;;  %s46_s19 = int_to_ptr.vmem [resolvable:$true] %s45_s19  ;;  %s70_s21 = int_to_ptr.vmem [resolvable:$true] %s69_s21 }
  0x38   :  { %s9724_s24 = scalar_lea.hbm %s11413_s2, 2048 }
  0x39   :  { %p9725_p10 = scmp.ne.s32.totalorder %s11413_s2, %s9724_s24  ;;  %p9728_p11 = scmp.lt.u32.totalorder %s9724_s24, %s11413_s2 }
  0x3b   :  { %p9730_p12 = pnand %p9728_p11, %p9725_p10 }
  0x3d   :  { %9733 = shalt.err (!%p9730_p12)
}
  0x3e   :  { %s9734_s0 = scalar_lea.vmem %s46_s19, 2048  ;;  %p9739_p0 = scmp.lt.s32.totalorder %s46_s19, %s46_s19 }
  0x3f   :  { %p9735_p13 = scmp.ne.s32.totalorder %s46_s19, %s9734_s0  ;;  %p9740_p1 = scmp.lt.s32.totalorder %s9734_s0, %s9734_s0 }
  0x41   :  { %p9741_p2 = por %p9740_p1, %p9739_p0 }
  0x43   :  { %p9742_p3 = pnand %p9741_p2, %p9735_p13 }
  0x45   :  { %9745 = shalt.err (!%p9742_p3)
}
  0x46   :  { %51 = dma.hbm_to_vmem [thread:$0]  %s11413_s2, 2048, %s46_s19, [#allocation6], %s9805_s3, %s9805_s3, %s9806_s15  }
  0x47   :  { %s9746_s11 = scalar_lea.hbm %s11415_s4, 6144 }
  0x48   :  { %p9747_p4 = scmp.ne.s32.totalorder %s11415_s4, %s9746_s11  ;;  %p9750_p5 = scmp.lt.u32.totalorder %s9746_s11, %s11415_s4 }
  0x4a   :  { %p9752_p6 = pnand %p9750_p5, %p9747_p4 }
  0x4c   :  { %9755 = shalt.err (!%p9752_p6)
}
  0x4d   :  { %s9756_s17 = scalar_lea.vmem %s70_s21, 6144  ;;  %p9761_p8 = scmp.lt.s32.totalorder %s70_s21, %s70_s21 }
  0x4e   :  { %p9757_p7 = scmp.ne.s32.totalorder %s70_s21, %s9756_s17  ;;  %p9762_p9 = scmp.lt.s32.totalorder %s9756_s17, %s9756_s17 }
  0x50   :  { %p9763_p10 = por %p9762_p9, %p9761_p8 }
  0x52   :  { %p9764_p11 = pnand %p9763_p10, %p9757_p7 }
  0x54   :  { %9767 = shalt.err (!%p9764_p11)
}
  0x55   :  { %75 = dma.hbm_to_vmem [thread:$0]  %s11415_s4, 6144, %s70_s21, [#allocation9], %s9802_s1, %s9802_s1, %s9803_s25  }
  0x56   :  { %9790 = dma.done.wait [#allocation3], 1024  }
  0x57   :  { %9791 = vsyncadd [#allocation3], 4294966272 }
  0x58   :  { %9792 = dma.done.wait [#allocation6], 6144  }
  0x59   :  { %9793 = vsyncadd [#allocation6], 4294961152 }
  0x5a   :  { %9794 = dma.done.wait [#allocation9], 12288  }
  0x5b   :  { %9795 = vsyncadd [#allocation9], 4294955008  ;;  %v11421_v0 = vmov 0.0   ;;  %v11419_v1 = vmov 0.0|0.0   ;;  %v96_v2 = vld [vmem:[#allocation5 + $0x8] sm:$0xff]  ;;  %v98_v3 = vld [vmem:[#allocation5 + $0x18] sm:$0xff] }
  0x5c   :  { %305 = vmatprep.mubr.f32.mxu0 %v11421_v0  ;;  %7463 = vmatprep.subr.bf16.mxu1 %v11419_v1  ;;  %v95_v4 = vld [vmem:[#allocation5] sm:$0xff]  ;;  %v9927_v5 = vpack.c.bf16 %v98_v3, %v96_v2  ;;  %v97_v6 = vld [vmem:[#allocation5 + $0x10] sm:$0xff]  ;;  %v100_v7 = vld [vmem:[#allocation5 + $0x28] sm:$0xff]  ;;  %vm9811_vm0 = vmmov 0  }
  0x5d   :  { %v102_v8 = vld [vmem:[#allocation5 + $0x38] sm:$0xff]  ;;  %v9929_v9 = vpack.c.bf16 %v97_v6, %v95_v4  ;;  %v99_v11 = vld [vmem:[#allocation5 + $0x20] sm:$0xff]  ;;  %v101_v12 = vld [vmem:[#allocation5 + $0x30] sm:$0xff]  ;;  %6273 = vmatprep.mubr.msk.f32.mxu1 %vm9811_vm0, %v11421_v0 }
  0x5e   :  { %11494 = vst [vmem:[#allocation16_spill] sm:$0xff] %v9927_v5  ;;  %v9931_v10 = vpack.c.bf16 %v102_v8, %v100_v7  ;;  %v104_v13 = vld [vmem:[#allocation5 + $0x48] sm:$0xff]  ;;  %7432 = vmatprep.subr.bf16.mxu0 %v9927_v5  ;;  %v106_v14 = vld [vmem:[#allocation5 + $0x58] sm:$0xff]  ;;  %v9935_v15 = vpack.c.bf16 %v101_v12, %v99_v11  ;;  %v103_v17 = vld [vmem:[#allocation5 + $0x40] sm:$0xff] }
  0x5f   :  { %7434 = vmatpush1.bf16.msra.mxu0 %v9929_v9  ;;  %v9938_v16 = vpack.c.bf16 %v106_v14, %v104_v13  ;;  %v105_v18 = vld [vmem:[#allocation5 + $0x50] sm:$0xff]  ;;  %v108_v19 = vld [vmem:[#allocation5 + $0x68] sm:$0xff]  ;;  %v110_v20 = vld [vmem:[#allocation5 + $0x78] sm:$0xff] }
  0x60   :  { %7436 = vmatprep.subr.bf16.mxu0 %v9931_v10  ;;  %v9941_v21 = vpack.c.bf16 %v105_v18, %v103_v17  ;;  %v9944_v22 = vpack.c.bf16 %v110_v20, %v108_v19  ;;  %v107_v23 = vld [vmem:[#allocation5 + $0x60] sm:$0xff]  ;;  %v109_v24 = vld [vmem:[#allocation5 + $0x70] sm:$0xff]  ;;  %v112_v25 = vld [vmem:[#allocation5 + $0x88] sm:$0xff] }
  0x61   :  { %v114_v26 = vld [vmem:[#allocation5 + $0x98] sm:$0xff]  ;;  %v127_v27 = vld [vmem:[#allocation7] sm:$0xff]  ;;  %v128_v28 = vld [vmem:[#allocation7 + $0x8] sm:$0xff]  ;;  %v9947_v29 = vpack.c.bf16 %v109_v24, %v107_v23 }
  0x62   :  { %v9949_v30 = vpack.c.bf16 %v128_v28, %v127_v27  ;;  %v9952_v31 = vpack.c.bf16 %v114_v26, %v112_v25  ;;  %v111_v32 = vld [vmem:[#allocation5 + $0x80] sm:$0xff]  ;;  %v113_v33 = vld [vmem:[#allocation5 + $0x90] sm:$0xff]  ;;  %v116_v34 = vld [vmem:[#allocation5 + $0xa8] sm:$0xff] }
  0x63   :  { %7438 = vmatpush1.bf16.msra.mxu0 %v9935_v15  ;;  %v118_v35 = vld [vmem:[#allocation5 + $0xb8] sm:$0xff]  ;;  %v9957_v36 = vpack.c.bf16 %v113_v33, %v111_v32  ;;  %v115_v38 = vld [vmem:[#allocation5 + $0xa0] sm:$0xff]  ;;  %v117_v39 = vld [vmem:[#allocation5 + $0xb0] sm:$0xff] }
  0x64   :  { %7440 = vmatprep.subr.bf16.mxu0 %v9938_v16  ;;  %7465 = vmatpush3.bf16.msra.mxu1 %v9949_v30  ;;  %v9960_v37 = vpack.c.bf16 %v118_v35, %v116_v34  ;;  %v120_v40 = vld [vmem:[#allocation5 + $0xc8] sm:$0xff]  ;;  %v122_v41 = vld [vmem:[#allocation5 + $0xd8] sm:$0xff]  ;;  %v9963_v42 = vpack.c.bf16 %v117_v39, %v115_v38  ;;  %v119_v44 = vld [vmem:[#allocation5 + $0xc0] sm:$0xff] }
  0x65   :  { %7466 = vmatprep.subr.bf16.mxu1 %v11419_v1  ;;  %v9966_v43 = vpack.c.bf16 %v122_v41, %v120_v40  ;;  %v121_v45 = vld [vmem:[#allocation5 + $0xd0] sm:$0xff]  ;;  %v124_v46 = vld [vmem:[#allocation5 + $0xe8] sm:$0xff]  ;;  %v126_v47 = vld [vmem:[#allocation5 + $0xf8] sm:$0xff] }
  0x66   :  { %v9969_v48 = vpack.c.bf16 %v121_v45, %v119_v44  ;;  %v9972_v49 = vpack.c.bf16 %v126_v47, %v124_v46  ;;  %v123_v50 = vld [vmem:[#allocation5 + $0xe0] sm:$0xff]  ;;  %v125_v51 = vld [vmem:[#allocation5 + $0xf0] sm:$0xff]  ;;  %v130_v54 = vld [vmem:[#allocation7 + $0x18] sm:$0xff] }
  0x67   :  { %7442 = vmatpush1.bf16.msra.mxu0 %v9941_v21  ;;  %v9975_v52 = vpack.c.bf16 %v125_v51, %v123_v50  ;;  %v129_v53 = vld [vmem:[#allocation7 + $0x10] sm:$0xff]  ;;  %v131_v56 = vld [vmem:[#allocation7 + $0x20] sm:$0xff]  ;;  %v132_v57 = vld [vmem:[#allocation7 + $0x28] sm:$0xff] }
  0x68   :  { %7444 = vmatprep.subr.bf16.mxu0 %v9944_v22  ;;  %v9998_v55 = vpack.c.bf16 %v130_v54, %v129_v53  ;;  %v10002_v58 = vpack.c.bf16 %v132_v57, %v131_v56  ;;  %v133_v59 = vld [vmem:[#allocation7 + $0x30] sm:$0xff]  ;;  %v134_v60 = vld [vmem:[#allocation7 + $0x38] sm:$0xff]  ;;  %v135_v62 = vld [vmem:[#allocation7 + $0x40] sm:$0xff] }
  0x69   :  { %v10006_v61 = vpack.c.bf16 %v134_v60, %v133_v59  ;;  %v136_v63 = vld [vmem:[#allocation7 + $0x48] sm:$0xff]  ;;  %v137_v3 = vld [vmem:[#allocation7 + $0x50] sm:$0xff]  ;;  %v138_v4 = vld [vmem:[#allocation7 + $0x58] sm:$0xff] }
  0x6a   :  { %7468 = vmatpush3.bf16.msra.mxu1 %v9998_v55  ;;  %v10010_v2 = vpack.c.bf16 %v136_v63, %v135_v62  ;;  %v10014_v6 = vpack.c.bf16 %v138_v4, %v137_v3  ;;  %v139_v7 = vld [vmem:[#allocation7 + $0x60] sm:$0xff]  ;;  %v140_v8 = vld [vmem:[#allocation7 + $0x68] sm:$0xff]  ;;  %v141_v12 = vld [vmem:[#allocation7 + $0x70] sm:$0xff] }
  0x6b   :  { %7446 = vmatpush1.bf16.msra.mxu0 %v9947_v29  ;;  %7469 = vmatprep.subr.bf16.mxu1 %v11419_v1  ;;  %v10018_v11 = vpack.c.bf16 %v140_v8, %v139_v7  ;;  %v142_v13 = vld [vmem:[#allocation7 + $0x78] sm:$0xff] }
  0x6c   :  { %7448 = vmatprep.subr.bf16.mxu0 %v9952_v31  ;;  %v10022_v14 = vpack.c.bf16 %v142_v13, %v141_v12 }
  0x6e   :  { %7471 = vmatpush3.bf16.msra.mxu1 %v10002_v58 }
  0x6f   :  { %7450 = vmatpush1.bf16.msra.mxu0 %v9957_v36  ;;  %7472 = vmatprep.subr.bf16.mxu1 %v11419_v1 }
  0x70   :  { %7452 = vmatprep.subr.bf16.mxu0 %v9960_v37 }
  0x72   :  { %7474 = vmatpush3.bf16.msra.mxu1 %v10006_v61 }
  0x73   :  { %7454 = vmatpush1.bf16.msra.mxu0 %v9963_v42  ;;  %7475 = vmatprep.subr.bf16.mxu1 %v11419_v1 }
  0x74   :  { %7456 = vmatprep.subr.bf16.mxu0 %v9966_v43 }
  0x76   :  { %7477 = vmatpush3.bf16.msra.mxu1 %v10010_v2 }
  0x77   :  { %7458 = vmatpush1.bf16.msra.mxu0 %v9969_v48  ;;  %7478 = vmatprep.subr.bf16.mxu1 %v11419_v1 }
  0x78   :  { %7460 = vmatprep.subr.bf16.mxu0 %v9972_v49 }
  0x7a   :  { %7480 = vmatpush3.bf16.msra.mxu1 %v10014_v6 }
  0x7b   :  { %7462 = vmatpush1.bf16.msra.mxu0 %v9975_v52  ;;  %7481 = vmatprep.subr.bf16.mxu1 %v11419_v1 }
  0x7c   :  { %7488 = vmatprep.subr.bf16.mxu0 %v9927_v5 }
  0x7e   :  { %306 = vmatmul.mubr.f32.vlgmr.msra.gmra.mrb[0].mxu0 %v11421_v0  ;;  %7483 = vmatpush3.bf16.msra.mxu1 %v10018_v11 }
  0x7f   :  { %7490 = vmatpush1.bf16.msra.mxu0 %v9929_v9  ;;  %464 = vmatprep.mubr.f32.mxu0 %v11421_v0 }
  0x80   :  { %7492 = vmatprep.subr.bf16.mxu0 %v9931_v10  ;;  %7484 = vmatprep.subr.bf16.mxu1 %v11419_v1 }
  0x82   :  { %7486 = vmatpush3.bf16.msra.mxu1 %v10022_v14 }
  0x83   :  { %7494 = vmatpush1.bf16.msra.mxu0 %v9935_v15  ;;  %7519 = vmatprep.subr.bf16.mxu1 %v11419_v1 }
  0x84   :  { %7496 = vmatprep.subr.bf16.mxu0 %v9938_v16 }
  0x87   :  { %7498 = vmatpush1.bf16.msra.mxu0 %v9941_v21 }
  0x88   :  { %7500 = vmatprep.subr.bf16.mxu0 %v9944_v22 }
  0x8b   :  { %7502 = vmatpush1.bf16.msra.mxu0 %v9947_v29 }
  0x8c   :  { %7504 = vmatprep.subr.bf16.mxu0 %v9952_v31 }
  0x8f   :  { %7506 = vmatpush1.bf16.msra.mxu0 %v9957_v36 }
  0x90   :  { %7508 = vmatprep.subr.bf16.mxu0 %v9960_v37 }
  0x93   :  { %7510 = vmatpush1.bf16.msra.mxu0 %v9963_v42 }
  0x94   :  { %7512 = vmatprep.subr.bf16.mxu0 %v9966_v43 }
  0x97   :  { %7514 = vmatpush1.bf16.msra.mxu0 %v9969_v48 }
  0x98   :  { %7516 = vmatprep.subr.bf16.mxu0 %v9972_v49 }
  0x9b   :  { %7518 = vmatpush1.bf16.msra.mxu0 %v9975_v52 }
  0x9c   :  { %7544 = vmatprep.subr.bf16.mxu0 %v9927_v5 }
 0x151   :  { %v307_v17 = vpop.f32.mrb[0].mxu0 }
 0x152   :  { %v5611_v18 = vmul.f32 -1.442695, %v307_v17  ;;  %v309_v19 = vpop.f32.mrb[1].mxu0 }
 0x153   :  { %v5612_v26 = vmul.f32 -1.442695, %v309_v19 }
 0x154   :  { %9398 = vpow2.f32 %v5611_v18 }
 0x15e   :  { %v9399_v20 = vpop.eup %9398 }
 0x15f   :  { %v318_v23 = vadd.f32 1.0, %v9399_v20 }
 0x161   :  { %9400 = vrcp.f32 %v318_v23 }
 0x162   :  { %9402 = vpow2.f32 %v5612_v26 }
 0x16b   :  { %v9401_v24 = vpop.eup %9400 }
 0x16c   :  { %v324_v25 = vmul.f32 0.0, %v9401_v24  ;;  %v9403_v27 = vpop.eup %9402 }
 0x16d   :  { %v319_v28 = vadd.f32 1.0, %v9403_v27 }
 0x16e   :  { %6274 = vmatmul.mubr.f32.vlgmr.msra.gmra.mrb[0].mxu1 %v324_v25 }
 0x16f   :  { %7521 = vmatpush3.bf16.msra.mxu1 %v9949_v30  ;;  %6308 = vmatprep.mubr.msk.f32.mxu1 %vm9811_vm0, %v11421_v0  ;;  %9404 = vrcp.f32 %v319_v28 }
 0x170   :  { %7522 = vmatprep.subr.bf16.mxu1 %v11419_v1 }
 0x173   :  { %7524 = vmatpush3.bf16.msra.mxu1 %v9998_v55 }
 0x174   :  { %7525 = vmatprep.subr.bf16.mxu1 %v11419_v1 }
 0x177   :  { %7527 = vmatpush3.bf16.msra.mxu1 %v10002_v58 }
 0x178   :  { %7528 = vmatprep.subr.bf16.mxu1 %v11419_v1 }
 0x179   :  { %v9405_v34 = vpop.eup %9404 }
 0x17a   :  { %v396_v35 = vsub.f32 1.0, %v9405_v34 }
 0x17b   :  { %7530 = vmatpush3.bf16.msra.mxu1 %v10006_v61 }
 0x17c   :  { %7531 = vmatprep.subr.bf16.mxu1 %v11419_v1  ;;  %v397_v38 = vmul.f32 0.25, %v396_v35 }
 0x17f   :  { %7533 = vmatpush3.bf16.msra.mxu1 %v10010_v2 }
 0x180   :  { %7534 = vmatprep.subr.bf16.mxu1 %v11419_v1 }
 0x183   :  { %7536 = vmatpush3.bf16.msra.mxu1 %v10014_v6 }
 0x184   :  { %7537 = vmatprep.subr.bf16.mxu1 %v11419_v1 }
 0x187   :  { %7539 = vmatpush3.bf16.msra.mxu1 %v10018_v11 }
 0x188   :  { %7540 = vmatprep.subr.bf16.mxu1 %v11419_v1 }
 0x18b   :  { %7542 = vmatpush3.bf16.msra.mxu1 %v10022_v14 }
 0x18c   :  { %7575 = vmatprep.subr.bf16.mxu1 %v11419_v1 }
 0x241   :  { %v391_v32 = vpop.f32.mrb[0].mxu1 }
 0x242   :  { %9406 = vtanh.f32 %v391_v32  ;;  %v6275_v33 = vpop.f32.mrb[1].mxu1 }
 0x24c   :  { %v9407_v39 = vpop.eup %9406 }
 0x24d   :  { %v398_v40 = vmul.f32 %v9407_v39, %v397_v38 }
 0x24f   :  { %465 = vmatmul.mubr.f32.vlgmr.msra.gmra.mrb[2].mxu0 %v398_v40 }
 0x250   :  { %7546 = vmatpush1.bf16.msra.mxu0 %v9929_v9  ;;  %624 = vmatprep.mubr.f32.mxu0 %v11421_v0 }
 0x251   :  { %7548 = vmatprep.subr.bf16.mxu0 %v9931_v10 }
 0x254   :  { %7550 = vmatpush1.bf16.msra.mxu0 %v9935_v15 }
 0x255   :  { %7552 = vmatprep.subr.bf16.mxu0 %v9938_v16 }
 0x258   :  { %7554 = vmatpush1.bf16.msra.mxu0 %v9941_v21 }
 0x259   :  { %7556 = vmatprep.subr.bf16.mxu0 %v9944_v22 }
 0x25c   :  { %7558 = vmatpush1.bf16.msra.mxu0 %v9947_v29 }
 0x25d   :  { %7560 = vmatprep.subr.bf16.mxu0 %v9952_v31 }
 0x260   :  { %7562 = vmatpush1.bf16.msra.mxu0 %v9957_v36 }
 0x261   :  { %7564 = vmatprep.subr.bf16.mxu0 %v9960_v37 }
 0x264   :  { %7566 = vmatpush1.bf16.msra.mxu0 %v9963_v42 }
 0x265   :  { %7568 = vmatprep.subr.bf16.mxu0 %v9966_v43 }
 0x268   :  { %7570 = vmatpush1.bf16.msra.mxu0 %v9969_v48 }
 0x269   :  { %7572 = vmatprep.subr.bf16.mxu0 %v9972_v49 }
 0x26c   :  { %7574 = vmatpush1.bf16.msra.mxu0 %v9975_v52 }
 0x26d   :  { %7600 = vmatprep.subr.bf16.mxu0 %v9927_v5 }
 0x322   :  { %v466_v41 = vpop.f32.mrb[2].mxu0 }
 0x323   :  { %v5613_v44 = vmul.f32 -1.442695, %v466_v41  ;;  %v468_v45 = vpop.f32.mrb[3].mxu0  ;;  %v144_v41 = vld [vmem:[#allocation8 + $0x8] sm:$0xff] }
 0x324   :  { %v5614_v53 = vmul.f32 -1.442695, %v468_v45  ;;  %v143_v45 = vld [vmem:[#allocation8] sm:$0xff] }
 0x325   :  { %9408 = vpow2.f32 %v5613_v44  ;;  %v147_v44 = vld [vmem:[#allocation8 + $0x20] sm:$0xff] }
 0x32f   :  { %v9409_v46 = vpop.eup %9408 }
 0x330   :  { %v477_v47 = vadd.f32 1.0, %v9409_v46  ;;  %v10119_v46 = vpack.c.bf16 %v147_v44, %v144_v41  ;;  %v183_v41 = vld [vmem:[#allocation8 + $0x140] sm:$0xff] }
 0x332   :  { %9410 = vrcp.f32 %v477_v47  ;;  %v146_v47 = vld [vmem:[#allocation8 + $0x18] sm:$0xff] }
 0x333   :  { %9412 = vpow2.f32 %v5614_v53  ;;  %v153_v53 = vld [vmem:[#allocation8 + $0x50] sm:$0xff] }
 0x33c   :  { %v9411_v50 = vpop.eup %9410 }
 0x33d   :  { %v483_v51 = vmul.f32 %v9411_v50, %v398_v40  ;;  %v9413_v54 = vpop.eup %9412  ;;  %v10121_v50 = vpack.c.bf16 %v146_v47, %v143_v45  ;;  %v179_v45 = vld [vmem:[#allocation8 + $0x120] sm:$0xff]  ;;  %v182_v47 = vld [vmem:[#allocation8 + $0x138] sm:$0xff] }
 0x33e   :  { %v478_v56 = vadd.f32 1.0, %v9413_v54  ;;  %v149_v54 = vld [vmem:[#allocation8 + $0x30] sm:$0xff] }
 0x33f   :  { %6309 = vmatmul.mubr.f32.vlgmr.msra.gmra.mrb[2].mxu1 %v483_v51  ;;  %v150_v51 = vld [vmem:[#allocation8 + $0x38] sm:$0xff] }
 0x340   :  { %7577 = vmatpush3.bf16.msra.mxu1 %v9949_v30  ;;  %6343 = vmatprep.mubr.msk.f32.mxu1 %vm9811_vm0, %v11421_v0  ;;  %9414 = vrcp.f32 %v478_v56  ;;  %v10124_v56 = vpack.c.bf16 %v153_v53, %v150_v51  ;;  %v10157_v51 = vpack.c.bf16 %v182_v47, %v179_v45  ;;  %v186_v53 = vld [vmem:[#allocation8 + $0x158] sm:$0xff]  ;;  %v203_v47 = vld [vmem:[#allocation10 + $0x60] sm:$0xff] }
 0x341   :  { %7578 = vmatprep.subr.bf16.mxu1 %v11419_v1 }
 0x344   :  { %7580 = vmatpush3.bf16.msra.mxu1 %v9998_v55 }
 0x345   :  { %7581 = vmatprep.subr.bf16.mxu1 %v11419_v1 }
 0x348   :  { %7583 = vmatpush3.bf16.msra.mxu1 %v10002_v58 }
 0x349   :  { %7584 = vmatprep.subr.bf16.mxu1 %v11419_v1 }
 0x34a   :  { %v9415_v60 = vpop.eup %9414 }
 0x34b   :  { %v555_v62 = vsub.f32 1.0, %v9415_v60  ;;  %v156_v60 = vld [vmem:[#allocation8 + $0x68] sm:$0xff] }
 0x34c   :  { %7586 = vmatpush3.bf16.msra.mxu1 %v10006_v61 }
 0x34d   :  { %7587 = vmatprep.subr.bf16.mxu1 %v11419_v1  ;;  %v556_v3 = vmul.f32 0.25, %v555_v62  ;;  %v159_v62 = vld [vmem:[#allocation8 + $0x80] sm:$0xff] }
 0x350   :  { %7589 = vmatpush3.bf16.msra.mxu1 %v10010_v2 }
 0x351   :  { %7590 = vmatprep.subr.bf16.mxu1 %v11419_v1 }
 0x354   :  { %7592 = vmatpush3.bf16.msra.mxu1 %v10014_v6 }
 0x355   :  { %7593 = vmatprep.subr.bf16.mxu1 %v11419_v1 }
 0x358   :  { %7595 = vmatpush3.bf16.msra.mxu1 %v10018_v11 }
 0x359   :  { %7596 = vmatprep.subr.bf16.mxu1 %v11419_v1 }
 0x35c   :  { %7598 = vmatpush3.bf16.msra.mxu1 %v10022_v14 }
 0x35d   :  { %7631 = vmatprep.subr.bf16.mxu1 %v11419_v1 }
 0x412   :  { %v550_v57 = vpop.f32.mrb[2].mxu1 }
 0x413   :  { %9416 = vtanh.f32 %v550_v57  ;;  %v6310_v59 = vpop.f32.mrb[3].mxu1  ;;  %v152_v57 = vld [vmem:[#allocation8 + $0x48] sm:$0xff] }
 0x414   :  { %v10127_v59 = vpack.c.bf16 %v152_v57, %v149_v54  ;;  %v189_v54 = vld [vmem:[#allocation8 + $0x170] sm:$0xff] }
 0x415   :  { %v10160_v57 = vpack.c.bf16 %v189_v54, %v186_v53  ;;  %v206_v53 = vld [vmem:[#allocation10 + $0x78] sm:$0xff] }
 0x416   :  { %v10185_v54 = vpack.c.bf16 %v206_v53, %v203_v47  ;;  %v148_v47 = vld [vmem:[#allocation8 + $0x28] sm:$0xff] }
 0x418   :  { %11500 = vst [vmem:[#allocation22_spill] sm:$0xff] %v10185_v54 }
 0x41d   :  { %v9417_v63 = vpop.eup %9416 }
 0x41e   :  { %v557_v4 = vsub.f32 %v9417_v63, %v398_v40  ;;  %v10130_v63 = vpack.c.bf16 %v159_v62, %v156_v60  ;;  %v185_v60 = vld [vmem:[#allocation8 + $0x150] sm:$0xff]  ;;  %v188_v62 = vld [vmem:[#allocation8 + $0x168] sm:$0xff] }
 0x420   :  { %v558_v7 = vmul.f32 %v557_v4, %v556_v3  ;;  %v155_v3 = vld [vmem:[#allocation8 + $0x60] sm:$0xff]  ;;  %v158_v4 = vld [vmem:[#allocation8 + $0x78] sm:$0xff] }
 0x422   :  { %v559_v8 = vadd.f32 %v558_v7, %v398_v40  ;;  %v10133_v7 = vpack.c.bf16 %v158_v4, %v155_v3  ;;  %v10163_v3 = vpack.c.bf16 %v188_v62, %v185_v60  ;;  %v192_v4 = vld [vmem:[#allocation10 + $0x8] sm:$0xff]  ;;  %v210_v60 = vld [vmem:[#allocation10 + $0x98] sm:$0xff]  ;;  %v213_v62 = vld [vmem:[#allocation10 + $0xb0] sm:$0xff] }
 0x424   :  { %625 = vmatmul.mubr.f32.vlgmr.msra.gmra.mrb[4].mxu0 %v559_v8 }
 0x425   :  { %7602 = vmatpush1.bf16.msra.mxu0 %v9929_v9  ;;  %784 = vmatprep.mubr.f32.mxu0 %v11421_v0 }
 0x426   :  { %7604 = vmatprep.subr.bf16.mxu0 %v9931_v10 }
 0x429   :  { %7606 = vmatpush1.bf16.msra.mxu0 %v9935_v15 }
 0x42a   :  { %7608 = vmatprep.subr.bf16.mxu0 %v9938_v16 }
 0x42d   :  { %7610 = vmatpush1.bf16.msra.mxu0 %v9941_v21 }
 0x42e   :  { %7612 = vmatprep.subr.bf16.mxu0 %v9944_v22 }
 0x431   :  { %7614 = vmatpush1.bf16.msra.mxu0 %v9947_v29 }
 0x432   :  { %7616 = vmatprep.subr.bf16.mxu0 %v9952_v31 }
 0x435   :  { %7618 = vmatpush1.bf16.msra.mxu0 %v9957_v36 }
 0x436   :  { %7620 = vmatprep.subr.bf16.mxu0 %v9960_v37 }
 0x439   :  { %7622 = vmatpush1.bf16.msra.mxu0 %v9963_v42 }
 0x43a   :  { %7624 = vmatprep.subr.bf16.mxu0 %v9966_v43 }
 0x43d   :  { %7626 = vmatpush1.bf16.msra.mxu0 %v9969_v48 }
 0x43e   :  { %7628 = vmatprep.subr.bf16.mxu0 %v9972_v49 }
 0x441   :  { %7630 = vmatpush1.bf16.msra.mxu0 %v9975_v52 }
 0x442   :  { %7656 = vmatprep.subr.bf16.mxu0 %v10119_v46 }
 0x4f7   :  { %v626_v12 = vpop.f32.mrb[4].mxu0 }
 0x4f8   :  { %v5615_v13 = vmul.f32 -1.442695, %v626_v12  ;;  %v628_v17 = vpop.f32.mrb[5].mxu0  ;;  %v165_v12 = vld [vmem:[#allocation8 + $0xb0] sm:$0xff] }
 0x4f9   :  { %v5616_v24 = vmul.f32 -1.442695, %v628_v17  ;;  %v161_v17 = vld [vmem:[#allocation8 + $0x90] sm:$0xff] }
 0x4fa   :  { %9418 = vpow2.f32 %v5615_v13 }
 0x504   :  { %v9419_v18 = vpop.eup %9418 }
 0x505   :  { %v637_v19 = vadd.f32 1.0, %v9419_v18  ;;  %v164_v18 = vld [vmem:[#allocation8 + $0xa8] sm:$0xff] }
 0x507   :  { %9420 = vrcp.f32 %v637_v19  ;;  %v10139_v19 = vpack.c.bf16 %v164_v18, %v161_v17  ;;  %v191_v17 = vld [vmem:[#allocation10] sm:$0xff]  ;;  %v194_v18 = vld [vmem:[#allocation10 + $0x18] sm:$0xff] }
 0x508   :  { %9422 = vpow2.f32 %v5616_v24 }
 0x511   :  { %v9421_v20 = vpop.eup %9420 }
 0x512   :  { %v643_v23 = vmul.f32 %v9421_v20, %v559_v8  ;;  %v9423_v25 = vpop.eup %9422  ;;  %v168_v20 = vld [vmem:[#allocation8 + $0xc8] sm:$0xff] }
 0x513   :  { %v638_v26 = vadd.f32 1.0, %v9423_v25  ;;  %v167_v25 = vld [vmem:[#allocation8 + $0xc0] sm:$0xff] }
 0x514   :  { %6344 = vmatmul.mubr.f32.vlgmr.msra.gmra.mrb[4].mxu1 %v643_v23  ;;  %v171_v23 = vld [vmem:[#allocation8 + $0xe0] sm:$0xff] }
 0x515   :  { %7633 = vmatpush3.bf16.msra.mxu1 %v9949_v30  ;;  %6378 = vmatprep.mubr.msk.f32.mxu1 %vm9811_vm0, %v11421_v0  ;;  %9424 = vrcp.f32 %v638_v26  ;;  %v10142_v24 = vpack.c.bf16 %v171_v23, %v168_v20  ;;  %v170_v26 = vld [vmem:[#allocation8 + $0xd8] sm:$0xff]  ;;  %v10169_v20 = vld [vmem:[#allocation2] sm:$0xff]  ;;  %v10171_v23 = vpack.c.bf16 %v194_v18, %v191_v17  ;;  %v212_v17 = vld [vmem:[#allocation10 + $0xa8] sm:$0xff] }
 0x516   :  { %7634 = vmatprep.subr.bf16.mxu1 %v11419_v1 }
 0x517   :  { %11496 = vst [vmem:[#allocation18_spill] sm:$0xff] %v10171_v23 }
 0x519   :  { %7636 = vmatpush3.bf16.msra.mxu1 %v9998_v55 }
 0x51a   :  { %7637 = vmatprep.subr.bf16.mxu1 %v11419_v1 }
 0x51d   :  { %7639 = vmatpush3.bf16.msra.mxu1 %v10002_v58 }
 0x51e   :  { %7640 = vmatprep.subr.bf16.mxu1 %v11419_v1 }
 0x51f   :  { %v9425_v32 = vpop.eup %9424 }
 0x520   :  { %v715_v33 = vsub.f32 1.0, %v9425_v32  ;;  %v177_v32 = vld [vmem:[#allocation8 + $0x110] sm:$0xff] }
 0x521   :  { %7642 = vmatpush3.bf16.msra.mxu1 %v10006_v61 }
 0x522   :  { %7643 = vmatprep.subr.bf16.mxu1 %v11419_v1  ;;  %v716_v35 = vmul.f32 0.25, %v715_v33 }
 0x525   :  { %7645 = vmatpush3.bf16.msra.mxu1 %v10010_v2 }
 0x526   :  { %7646 = vmatprep.subr.bf16.mxu1 %v11419_v1 }
 0x529   :  { %7648 = vmatpush3.bf16.msra.mxu1 %v10014_v6 }
 0x52a   :  { %7649 = vmatprep.subr.bf16.mxu1 %v11419_v1 }
 0x52d   :  { %7651 = vmatpush3.bf16.msra.mxu1 %v10018_v11 }
 0x52e   :  { %7652 = vmatprep.subr.bf16.mxu1 %v11419_v1 }
 0x531   :  { %7654 = vmatpush3.bf16.msra.mxu1 %v10022_v14 }
 0x532   :  { %7687 = vmatprep.subr.bf16.mxu1 %v11419_v1 }
 0x5e7   :  { %v710_v27 = vpop.f32.mrb[4].mxu1 }
 0x5e8   :  { %9426 = vtanh.f32 %v710_v27  ;;  %v6345_v28 = vpop.f32.mrb[5].mxu1  ;;  %v10145_v27 = vpack.c.bf16 %v170_v26, %v167_v25  ;;  %v198_v25 = vld [vmem:[#allocation10 + $0x38] sm:$0xff]  ;;  %v201_v26 = vld [vmem:[#allocation10 + $0x50] sm:$0xff] }
 0x5e9   :  { %v174_v28 = vld [vmem:[#allocation8 + $0xf8] sm:$0xff] }
 0x5ea   :  { %v10148_v33 = vpack.c.bf16 %v177_v32, %v174_v28  ;;  %v10174_v28 = vpack.c.bf16 %v201_v26, %v198_v25  ;;  %v197_v32 = vld [vmem:[#allocation10 + $0x30] sm:$0xff] }
 0x5ec   :  { %11497 = vst [vmem:[#allocation19_spill] sm:$0xff] %v10174_v28 }
 0x5f2   :  { %v9427_v34 = vpop.eup %9426 }
 0x5f3   :  { %v717_v38 = vsub.f32 %v9427_v34, %v559_v8  ;;  %v173_v34 = vld [vmem:[#allocation8 + $0xf0] sm:$0xff] }
 0x5f5   :  { %v718_v39 = vmul.f32 %v717_v38, %v716_v35  ;;  %v176_v35 = vld [vmem:[#allocation8 + $0x108] sm:$0xff] }
 0x5f6   :  { %v10151_v38 = vpack.c.bf16 %v176_v35, %v173_v34  ;;  %v200_v34 = vld [vmem:[#allocation10 + $0x48] sm:$0xff] }
 0x5f7   :  { %v10115_v40 = vadd.f32 %v718_v39, %v559_v8  ;;  %v162_v8 = vld [vmem:[#allocation8 + $0x98] sm:$0xff]  ;;  %v180_v39 = vld [vmem:[#allocation8 + $0x128] sm:$0xff]  ;;  %v10178_v35 = vpack.c.bf16 %v200_v34, %v197_v32 }
 0x5f8   :  { %v10136_v13 = vpack.c.bf16 %v165_v12, %v162_v8  ;;  %v10154_v44 = vpack.c.bf16 %v183_v41, %v180_v39  ;;  %v195_v8 = vld [vmem:[#allocation10 + $0x20] sm:$0xff]  ;;  %v204_v39 = vld [vmem:[#allocation10 + $0x68] sm:$0xff] }
 0x5f9   :  { %785 = vmatmul.mubr.f32.vlgmr.msra.gmra.mrb[6].mxu0 %v10115_v40  ;;  %v10166_v12 = vpack.c.bf16 %v195_v8, %v192_v4  ;;  %11498 = vst [vmem:[#allocation20_spill] sm:$0xff] %v10178_v35  ;;  %v207_v41 = vld [vmem:[#allocation10 + $0x80] sm:$0xff]  ;;  %v10188_v4 = vpack.c.bf16 %v213_v62, %v210_v60  ;;  %v209_v8 = vld [vmem:[#allocation10 + $0x90] sm:$0xff] }
 0x5fa   :  { %961 = vmatprep.mubr.f32.mxu0 %v11421_v0  ;;  %7658 = vmatpush1.bf16.msra.mxu0 %v10121_v50  ;;  %v10182_v45 = vpack.c.bf16 %v207_v41, %v204_v39  ;;  %v10191_v18 = vpack.c.bf16 %v212_v17, %v209_v8  ;;  %v145_v41 = vld [vmem:[#allocation8 + $0x10] sm:$0xff]  ;;  %v151_v8 = vld [vmem:[#allocation8 + $0x40] sm:$0xff]  ;;  %v154_v17 = vld [vmem:[#allocation8 + $0x58] sm:$0xff] }
 0x5fb   :  { %7660 = vmatprep.subr.bf16.mxu0 %v10124_v56  ;;  %11495 = vst [vmem:[#allocation17_spill] sm:$0xff] %v10166_v12  ;;  %11501 = vst [vmem:[#allocation23_spill] sm:$0xff] %v10188_v4  ;;  %v10197_v60 = vpack.c.bf16 %v148_v47, %v145_v41  ;;  %v10201_v1 = vpack.c.bf16 %v154_v17, %v151_v8  ;;  %v163_v41 = vld [vmem:[#allocation8 + $0xa0] sm:$0xff]  ;;  %v166_v47 = vld [vmem:[#allocation8 + $0xb8] sm:$0xff] }
 0x5fc   :  { %11499 = vst [vmem:[#allocation21_spill] sm:$0xff] %v10182_v45  ;;  %11502 = vst [vmem:[#allocation24_spill] sm:$0xff] %v10191_v18  ;;  %v172_v8 = vld [vmem:[#allocation8 + $0xe8] sm:$0xff] }
 0x5fd   :  { %11503 = vst [vmem:[#allocation25_spill] sm:$0xff] %v10197_v60  ;;  %11504 = vst [vmem:[#allocation26_spill] sm:$0xff] %v10201_v1 }
 0x5fe   :  { %7662 = vmatpush1.bf16.msra.mxu0 %v10127_v59 }
 0x5ff   :  { %7664 = vmatprep.subr.bf16.mxu0 %v10130_v63 }
 0x602   :  { %7666 = vmatpush1.bf16.msra.mxu0 %v10133_v7 }
 0x603   :  { %7668 = vmatprep.subr.bf16.mxu0 %v10136_v13 }
 0x606   :  { %7670 = vmatpush1.bf16.msra.mxu0 %v10139_v19 }
 0x607   :  { %7672 = vmatprep.subr.bf16.mxu0 %v10142_v24 }
 0x60a   :  { %7674 = vmatpush1.bf16.msra.mxu0 %v10145_v27 }
 0x60b   :  { %7676 = vmatprep.subr.bf16.mxu0 %v10148_v33 }
 0x60e   :  { %7678 = vmatpush1.bf16.msra.mxu0 %v10151_v38 }
 0x60f   :  { %7680 = vmatprep.subr.bf16.mxu0 %v10154_v44 }
 0x612   :  { %7682 = vmatpush1.bf16.msra.mxu0 %v10157_v51 }
 0x613   :  { %7684 = vmatprep.subr.bf16.mxu0 %v10160_v57 }
 0x616   :  { %7686 = vmatpush1.bf16.msra.mxu0 %v10163_v3 }
 0x617   :  { %7712 = vmatprep.subr.bf16.mxu0 %v10166_v12 }
 0x619   :  { %962 = vmatmul.mubr.f32.vlgmr.msra.gmra.mrb[8].mxu0 %v10169_v20 }
 0x61a   :  { %7714 = vmatpush1.bf16.msra.mxu0 %v10171_v23  ;;  %1118 = vmatprep.mubr.f32.mxu0 %v11421_v0 }
 0x61b   :  { %7716 = vmatprep.subr.bf16.mxu0 %v10174_v28 }
 0x61e   :  { %7718 = vmatpush1.bf16.msra.mxu0 %v10178_v35 }
 0x61f   :  { %7720 = vmatprep.subr.bf16.mxu0 %v10182_v45  ;;  %v228_v45 = vld [vmem:[#allocation10 + $0x128] sm:$0xff] }
 0x622   :  { %7722 = vmatpush1.bf16.msra.mxu0 %v10185_v54  ;;  %v223_v54 = vld [vmem:[#allocation10 + $0x100] sm:$0xff] }
 0x623   :  { %7724 = vmatprep.subr.bf16.mxu0 %v10188_v4  ;;  %v224_v4 = vld [vmem:[#allocation10 + $0x108] sm:$0xff] }
 0x626   :  { %7726 = vmatpush1.bf16.msra.mxu0 %v10191_v18  ;;  %v222_v18 = vld [vmem:[#allocation10 + $0xf8] sm:$0xff] }
 0x6cc   :  { %v786_v25 = vpop.f32.mrb[6].mxu0 }
 0x6cd   :  { %v5617_v26 = vmul.f32 -1.442695, %v786_v25  ;;  %v10195_v32 = vpop.f32.mrb[7].mxu0  ;;  %v11505_v25 = vmov 0.0|0.0  }
 0x6cf   :  { %9428 = vpow2.f32 %v5617_v26  ;;  %v157_v26 = vld [vmem:[#allocation8 + $0x70] sm:$0xff] }
 0x6d9   :  { %v9429_v34 = vpop.eup %9428 }
 0x6da   :  { %v797_v39 = vadd.f32 1.0, %v9429_v34  ;;  %v160_v34 = vld [vmem:[#allocation8 + $0x88] sm:$0xff] }
 0x6dc   :  { %9430 = vrcp.f32 %v797_v39  ;;  %v10207_v39 = vpack.c.bf16 %v160_v34, %v157_v26  ;;  %v175_v26 = vld [vmem:[#allocation8 + $0x100] sm:$0xff]  ;;  %v178_v34 = vld [vmem:[#allocation8 + $0x118] sm:$0xff] }
 0x6de   :  { %11506 = vst [vmem:[#allocation27_spill] sm:$0xff] %v10207_v39 }
 0x6e6   :  { %v9431_v53 = vpop.eup %9430 }
 0x6e7   :  { %v803_v62 = vmul.f32 %v9431_v53, %v10115_v40  ;;  %v10211_v53 = vpack.c.bf16 %v166_v47, %v163_v41  ;;  %v181_v41 = vld [vmem:[#allocation8 + $0x130] sm:$0xff]  ;;  %v184_v47 = vld [vmem:[#allocation8 + $0x148] sm:$0xff] }
 0x6e9   :  { %6379 = vmatmul.mubr.f32.vlgmr.msra.gmra.mrb[6].mxu1 %v803_v62  ;;  %11507 = vst [vmem:[#allocation28_spill] sm:$0xff] %v10211_v53  ;;  %v169_v62 = vld [vmem:[#allocation8 + $0xd0] sm:$0xff] }
 0x6ea   :  { %7689 = vmatpush3.bf16.msra.mxu1 %v10197_v60  ;;  %6413 = vmatprep.mubr.msk.f32.mxu1 %vm9811_vm0, %v11421_v0  ;;  %v10215_v17 = vpack.c.bf16 %v172_v8, %v169_v62  ;;  %v10219_v0 = vpack.c.bf16 %v178_v34, %v175_v26  ;;  %v187_v62 = vld [vmem:[#allocation8 + $0x160] sm:$0xff]  ;;  %v190_v8 = vld [vmem:[#allocation8 + $0x178] sm:$0xff]  ;;  %v193_v26 = vld [vmem:[#allocation10 + $0x10] sm:$0xff] }
 0x6eb   :  { %7690 = vmatprep.subr.bf16.mxu1 %v11505_v25  ;;  %v196_v34 = vld [vmem:[#allocation10 + $0x28] sm:$0xff] }
 0x6ec   :  { %11508 = vst [vmem:[#allocation29_spill] sm:$0xff] %v10215_v17  ;;  %11509 = vst [vmem:[#allocation30_spill] sm:$0xff] %v10219_v0  ;;  %v220_v60 = vld [vmem:[#allocation10 + $0xe8] sm:$0xff] }
 0x6ee   :  { %7692 = vmatpush3.bf16.msra.mxu1 %v10201_v1 }
 0x6ef   :  { %7693 = vmatprep.subr.bf16.mxu1 %v11505_v25 }
 0x6f2   :  { %7695 = vmatpush3.bf16.msra.mxu1 %v10207_v39  ;;  %v10223_v39 = vpack.c.bf16 %v184_v47, %v181_v41  ;;  %v199_v41 = vld [vmem:[#allocation10 + $0x40] sm:$0xff]  ;;  %v202_v47 = vld [vmem:[#allocation10 + $0x58] sm:$0xff] }
 0x6f3   :  { %7696 = vmatprep.subr.bf16.mxu1 %v11505_v25 }
 0x6f4   :  { %11510 = vst [vmem:[#allocation31_spill] sm:$0xff] %v10223_v39 }
 0x6f6   :  { %7698 = vmatpush3.bf16.msra.mxu1 %v10211_v53  ;;  %v10227_v53 = vpack.c.bf16 %v190_v8, %v187_v62  ;;  %v11514_v62 = vmov 0.0   ;;  %v205_v8 = vld [vmem:[#allocation10 + $0x70] sm:$0xff] }
 0x6f7   :  { %7699 = vmatprep.subr.bf16.mxu1 %v11505_v25 }
 0x6f8   :  { %11511 = vst [vmem:[#allocation32_spill] sm:$0xff] %v10227_v53 }
 0x6fa   :  { %7701 = vmatpush3.bf16.msra.mxu1 %v10215_v17  ;;  %v10231_v17 = vpack.c.bf16 %v196_v34, %v193_v26  ;;  %v211_v34 = vld [vmem:[#allocation10 + $0xa0] sm:$0xff] }
 0x6fb   :  { %7702 = vmatprep.subr.bf16.mxu1 %v11505_v25 }
 0x6fc   :  { %11512 = vst [vmem:[#allocation33_spill] sm:$0xff] %v10231_v17 }
 0x6fe   :  { %7704 = vmatpush3.bf16.msra.mxu1 %v10219_v0  ;;  %v10236_v0 = vpack.c.bf16 %v202_v47, %v199_v41  ;;  %v216_v41 = vld [vmem:[#allocation10 + $0xc8] sm:$0xff]  ;;  %v219_v47 = vld [vmem:[#allocation10 + $0xe0] sm:$0xff] }
 0x6ff   :  { %7705 = vmatprep.subr.bf16.mxu1 %v11505_v25 }
 0x700   :  { %11513 = vst [vmem:[#allocation34_spill] sm:$0xff] %v10236_v0 }
 0x702   :  { %7707 = vmatpush3.bf16.msra.mxu1 %v10223_v39  ;;  %v208_v39 = vld [vmem:[#allocation10 + $0x88] sm:$0xff] }
 0x703   :  { %7708 = vmatprep.subr.bf16.mxu1 %v11505_v25  ;;  %v10242_v26 = vpack.c.bf16 %v208_v39, %v205_v8  ;;  %v215_v39 = vld [vmem:[#allocation10 + $0xc0] sm:$0xff]  ;;  %v218_v8 = vld [vmem:[#allocation10 + $0xd8] sm:$0xff] }
 0x704   :  { %v10253_v1 = vpack.c.bf16 %v218_v8, %v215_v39  ;;  %v231_v39 = vld [vmem:[#allocation10 + $0x140] sm:$0xff] }
 0x705   :  { %11515 = vst [vmem:[#allocation35_spill] sm:$0xff] %v10242_v26 }
 0x706   :  { %7710 = vmatpush3.bf16.msra.mxu1 %v10227_v53  ;;  %v214_v53 = vld [vmem:[#allocation10 + $0xb8] sm:$0xff]  ;;  %11518 = vst [vmem:[#allocation38_spill] sm:$0xff] %v10253_v1 }
 0x707   :  { %7743 = vmatprep.subr.bf16.mxu1 %v11505_v25 }
 0x709   :  { %6414 = vmatmul.mubr.f32.vlgmr.msra.gmra.mrb[8].mxu1 %v10169_v20  ;;  %v10246_v20 = vpack.c.bf16 %v214_v53, %v211_v34 }
 0x70a   :  { %7745 = vmatpush3.bf16.msra.mxu1 %v10231_v17  ;;  %6448 = vmatprep.mubr.msk.f32.mxu1 %vm9811_vm0, %v11514_v62  ;;  %v10251_v17 = vpack.c.bf16 %v219_v47, %v216_v41  ;;  %v226_v47 = vld [vmem:[#allocation10 + $0x118] sm:$0xff] }
 0x70b   :  { %7746 = vmatprep.subr.bf16.mxu1 %v11505_v25  ;;  %11516 = vst [vmem:[#allocation36_spill] sm:$0xff] %v10246_v20  ;;  %v10265_v8 = vpack.c.bf16 %v226_v47, %v223_v54  ;;  %v233_v47 = vld [vmem:[#allocation10 + $0x150] sm:$0xff] }
 0x70c   :  { %11517 = vst [vmem:[#allocation37_spill] sm:$0xff] %v10251_v17  ;;  %7728 = vmatprep.subr.bf16.mxu0 %v10251_v17  ;;  %v232_v17 = vld [vmem:[#allocation10 + $0x148] sm:$0xff] }
 0x70d   :  { %7730 = vmatpush1.bf16.msra.mxu0 %v10253_v1  ;;  %11522 = vst [vmem:[#allocation42_spill] sm:$0xff] %v10265_v8  ;;  %v234_v1 = vld [vmem:[#allocation10 + $0x158] sm:$0xff] }
 0x70e   :  { %7748 = vmatpush3.bf16.msra.mxu1 %v10236_v0  ;;  %v217_v0 = vld [vmem:[#allocation10 + $0xd0] sm:$0xff] }
 0x70f   :  { %7749 = vmatprep.subr.bf16.mxu1 %v11505_v25  ;;  %v10256_v53 = vpack.c.bf16 %v220_v60, %v217_v0  ;;  %v10267_v0 = vpack.c.bf16 %v231_v39, %v228_v45  ;;  %v230_v60 = vld [vmem:[#allocation10 + $0x138] sm:$0xff]  ;;  %v236_v39 = vld [vmem:[#allocation10 + $0x168] sm:$0xff] }
 0x710   :  { %v10281_v35 = vpack.c.bf16 %v236_v39, %v233_v47 }
 0x711   :  { %11519 = vst [vmem:[#allocation39_spill] sm:$0xff] %v10256_v53  ;;  %11523 = vst [vmem:[#allocation43_spill] sm:$0xff] %v10267_v0 }
 0x712   :  { %7751 = vmatpush3.bf16.msra.mxu1 %v10242_v26  ;;  %v225_v26 = vld [vmem:[#allocation10 + $0x110] sm:$0xff]  ;;  %11527 = vst [vmem:[#allocation47_spill] sm:$0xff] %v10281_v35 }
 0x713   :  { %7752 = vmatprep.subr.bf16.mxu1 %v11505_v25  ;;  %v10258_v34 = vpack.c.bf16 %v225_v26, %v222_v18  ;;  %v227_v18 = vld [vmem:[#allocation10 + $0x120] sm:$0xff]  ;;  %v229_v26 = vld [vmem:[#allocation10 + $0x130] sm:$0xff] }
 0x714   :  { %v10275_v54 = vpack.c.bf16 %v232_v17, %v229_v26 }
 0x715   :  { %11520 = vst [vmem:[#allocation40_spill] sm:$0xff] %v10258_v34  ;;  %7732 = vmatprep.subr.bf16.mxu0 %v10258_v34  ;;  %v238_v34 = vld [vmem:[#allocation10 + $0x178] sm:$0xff] }
 0x716   :  { %7754 = vmatpush3.bf16.msra.mxu1 %v10246_v20  ;;  %v221_v20 = vld [vmem:[#allocation10 + $0xf0] sm:$0xff]  ;;  %11525 = vst [vmem:[#allocation45_spill] sm:$0xff] %v10275_v54 }
 0x717   :  { %7755 = vmatprep.subr.bf16.mxu1 %v11505_v25  ;;  %v10261_v41 = vpack.c.bf16 %v224_v4, %v221_v20  ;;  %v237_v4 = vld [vmem:[#allocation10 + $0x170] sm:$0xff]  ;;  %v10271_v20 = vpack.c.bf16 %v230_v60, %v227_v18 }
 0x718   :  { %v10277_v45 = vpack.c.bf16 %v237_v4, %v234_v1  ;;  %v5618_v1 = vmul.f32 -1.442695, %v10195_v32 }
 0x719   :  { %11521 = vst [vmem:[#allocation41_spill] sm:$0xff] %v10261_v41  ;;  %7734 = vmatpush1.bf16.msra.mxu0 %v10261_v41  ;;  %11524 = vst [vmem:[#allocation44_spill] sm:$0xff] %v10271_v20 }
 0x71a   :  { %7757 = vmatpush3.bf16.msra.mxu1 %v10256_v53  ;;  %7736 = vmatprep.subr.bf16.mxu0 %v10267_v0  ;;  %11526 = vst [vmem:[#allocation46_spill] sm:$0xff] %v10277_v45  ;;  %v235_v53 = vld [vmem:[#allocation10 + $0x160] sm:$0xff]  ;;  %9432 = vpow2.f32 %v5618_v1 }
 0x71b   :  { %7758 = vmatprep.subr.bf16.mxu1 %v11505_v25  ;;  %v10285_v18 = vpack.c.bf16 %v238_v34, %v235_v53 }
 0x71d   :  { %7738 = vmatpush1.bf16.msra.mxu0 %v10271_v20  ;;  %11528 = vst [vmem:[#allocation48_spill] sm:$0xff] %v10285_v18 }
 0x71e   :  { %7760 = vmatpush3.bf16.msra.mxu1 %v10265_v8  ;;  %7740 = vmatprep.subr.bf16.mxu0 %v10277_v45 }
 0x71f   :  { %7761 = vmatprep.subr.bf16.mxu1 %v11505_v25 }
 0x721   :  { %7742 = vmatpush1.bf16.msra.mxu0 %v10281_v35 }
 0x722   :  { %7763 = vmatpush3.bf16.msra.mxu1 %v10275_v54  ;;  %7768 = vmatprep.subr.bf16.mxu0 %v9927_v5 }
 0x723   :  { %7764 = vmatprep.subr.bf16.mxu1 %v11505_v25 }
 0x724   :  { %v9433_v17 = vpop.eup %9432 }
 0x725   :  { %v798_v60 = vadd.f32 1.0, %v9433_v17  ;;  %v240_v17 = vld [vmem:[%s11417_s6] sm:$0x7] }
 0x726   :  { %7766 = vmatpush3.bf16.msra.mxu1 %v10285_v18 }
 0x727   :  { %7799 = vmatprep.subr.bf16.mxu1 %v11505_v25  ;;  %9434 = vrcp.f32 %v798_v60  ;;  %v239_v60 = vld [vmem:[%s11416_s5] sm:$0x7]  ;;  %s9812_s5 = smov [#allocation11]  }
 0x728   :  { %s5597_s6 = sshll.u32 %s9812_s5, 4  ;;  %s5598_s6 = int_to_ptr.vmem [resolvable:$true] %s5597_s6 }
 0x729   :  { %s9768_s20 = scalar_lea.vmem %s5598_s6, 1024  ;;  %p9773_p13 = scmp.lt.s32.totalorder %s5598_s6, %s5598_s6 }
 0x72a   :  { %p9769_p12 = scmp.ne.s32.totalorder %s5598_s6, %s9768_s20  ;;  %p9774_p0 = scmp.lt.s32.totalorder %s9768_s20, %s9768_s20 }
 0x72c   :  { %p9775_p1 = por %p9774_p0, %p9773_p13 }
 0x72e   :  { %p9776_p2 = pnand %p9775_p1, %p9769_p12 }
 0x731   :  { %v9435_v34 = vpop.eup %9434 }
 0x732   :  { %v875_v4 = vsub.f32 1.0, %v9435_v34 }
 0x734   :  { %v876_v39 = vmul.f32 0.25, %v875_v4 }
 0x7bc   :  { %v870_v26 = vpop.f32.mrb[6].mxu1 }
 0x7bd   :  { %9436 = vtanh.f32 %v870_v26  ;;  %v6380_v53 = vpop.f32.mrb[7].mxu1 }
 0x7c7   :  { %v9437_v47 = vpop.eup %9436 }
 0x7c8   :  { %v877_v54 = vsub.f32 %v9437_v47, %v10115_v40 }
 0x7ca   :  { %v878_v18 = vmul.f32 %v877_v54, %v876_v39  ;;  %v882_v54 = vlaneseq }
 0x7cc   :  { %v10295_v8 = vadd.f32 %v878_v18, %v10115_v40  ;;  %v883_v18 = vshrl.u32 %v882_v54, 7 }
 0x7ce   :  { %1119 = vmatmul.mubr.f32.vlgmr.msra.gmra.mrb[8].mxu0 %v10295_v8  ;;  %6449 = vmatmul.mubr.f32.vlgmr.msra.gmra.mrb[10].mxu1 %v10295_v8  ;;  %v884_v1 = vsub.s32 0, %v883_v18  ;;  %v888_v26 = vsub.s32 1, %v883_v18 }
 0x7cf   :  { %7770 = vmatpush1.bf16.msra.mxu0 %v9929_v9  ;;  %1281 = vmatprep.mubr.f32.mxu0 %v11514_v62 }
 0x7d0   :  { %7772 = vmatprep.subr.bf16.mxu0 %v9931_v10  ;;  %7801 = vmatpush3.bf16.msra.mxu1 %v9949_v30  ;;  %v885_v53 = vrot.slane %v239_v60, %v884_v1  ;;  %v1042_v34 = vrot.slane %v240_v17, %v884_v1  ;;  %v889_v4 = vrot.slane %v239_v60, %v888_v26 }
 0x7d1   :  { %7802 = vmatprep.subr.bf16.mxu1 %v11505_v25  ;;  %6483 = vmatprep.mubr.msk.f32.mxu1 %vm9811_vm0, %v11514_v62  ;;  %v1046_v47 = vrot.slane %v240_v17, %v888_v26  ;;  %v892_v26 = vsub.s32 2, %v883_v18 }
 0x7d2   :  { %v10340_v39 = vadd.f32 %v1042_v34, %v885_v53 }
 0x7d3   :  { %7774 = vmatpush1.bf16.msra.mxu0 %v9935_v15  ;;  %v10342_v35 = vadd.f32 %v1046_v47, %v889_v4  ;;  %v10346_v34 = vrot.slane %v240_v17, %v892_v26  ;;  %v10348_v12 = vrot.slane %v239_v60, %v892_v26 }
 0x7d4   :  { %7776 = vmatprep.subr.bf16.mxu0 %v9938_v16  ;;  %7804 = vmatpush3.bf16.msra.mxu1 %v9998_v55 }
 0x7d5   :  { %7805 = vmatprep.subr.bf16.mxu1 %v11505_v25 }
 0x7d7   :  { %7778 = vmatpush1.bf16.msra.mxu0 %v9941_v21 }
 0x7d8   :  { %7780 = vmatprep.subr.bf16.mxu0 %v9944_v22  ;;  %7807 = vmatpush3.bf16.msra.mxu1 %v10002_v58 }
 0x7d9   :  { %7808 = vmatprep.subr.bf16.mxu1 %v11505_v25 }
 0x7db   :  { %7782 = vmatpush1.bf16.msra.mxu0 %v9947_v29 }
 0x7dc   :  { %v1034_v40 = vpop.f32.mrb[8].mxu1  ;;  %7784 = vmatprep.subr.bf16.mxu0 %v9952_v31  ;;  %7810 = vmatpush3.bf16.msra.mxu1 %v10006_v61 }
 0x7dd   :  { %v6415_v32 = vpop.f32.mrb[9].mxu1  ;;  %7811 = vmatprep.subr.bf16.mxu1 %v11505_v25 }
 0x7df   :  { %7786 = vmatpush1.bf16.msra.mxu0 %v9957_v36 }
 0x7e0   :  { %7788 = vmatprep.subr.bf16.mxu0 %v9960_v37  ;;  %7813 = vmatpush3.bf16.msra.mxu1 %v10010_v2 }
 0x7e1   :  { %7814 = vmatprep.subr.bf16.mxu1 %v11505_v25 }
 0x7e3   :  { %7790 = vmatpush1.bf16.msra.mxu0 %v9963_v42 }
 0x7e4   :  { %7792 = vmatprep.subr.bf16.mxu0 %v9966_v43  ;;  %7816 = vmatpush3.bf16.msra.mxu1 %v10014_v6 }
 0x7e5   :  { %7817 = vmatprep.subr.bf16.mxu1 %v11505_v25 }
 0x7e7   :  { %7794 = vmatpush1.bf16.msra.mxu0 %v9969_v48 }
 0x7e8   :  { %7796 = vmatprep.subr.bf16.mxu0 %v9972_v49  ;;  %7819 = vmatpush3.bf16.msra.mxu1 %v10018_v11 }
 0x7e9   :  { %7820 = vmatprep.subr.bf16.mxu1 %v11505_v25 }
 0x7eb   :  { %7798 = vmatpush1.bf16.msra.mxu0 %v9975_v52 }
 0x7ec   :  { %7822 = vmatpush3.bf16.msra.mxu1 %v10022_v14  ;;  %7824 = vmatprep.subr.bf16.mxu0 %v9927_v5 }
 0x7ed   :  { %7855 = vmatprep.subr.bf16.mxu1 %v11505_v25 }
 0x8a1   :  { %v1120_v32 = vpop.f32.mrb[8].mxu0  ;;  %v1191_v5 = vpop.f32.mrb[10].mxu1 }
 0x8a2   :  { %v9336_v54 = vadd.f32 %v10340_v39, %v1120_v32  ;;  %v1122_v45 = vpop.f32.mrb[9].mxu0  ;;  %v6450_v20 = vpop.f32.mrb[11].mxu1  ;;  %v1192_v47 = vadd.f32 %v1191_v5, %v10346_v34 }
 0x8a3   :  { %v9338_v41 = vadd.f32 %v10342_v35, %v1122_v45  ;;  %v1035_v20 = vadd.f32 %v1034_v40, %v10348_v12 }
 0x8a4   :  { %v5619_v0 = vmul.f32 -1.442695, %v9336_v54 }
 0x8a5   :  { %v5620_v28 = vmul.f32 -1.442695, %v9338_v41 }
 0x8a6   :  { %9438 = vpow2.f32 %v5619_v0 }
 0x8a7   :  { %9440 = vpow2.f32 %v5620_v28 }
 0x8b0   :  { %v9439_v23 = vpop.eup %9438 }
 0x8b1   :  { %v1199_v1 = vadd.f32 1.0, %v9439_v23  ;;  %v9441_v53 = vpop.eup %9440 }
 0x8b2   :  { %v1206_v4 = vadd.f32 1.0, %v9441_v53 }
 0x8b3   :  { %9442 = vrcp.f32 %v1199_v1 }
 0x8b4   :  { %9444 = vrcp.f32 %v1206_v4 }
 0x8bd   :  { %v9443_v32 = vpop.eup %9442 }
 0x8be   :  { %v1209_v54 = vmul.f32 %v9443_v32, %v1192_v47  ;;  %v9445_v28 = vpop.eup %9444 }
 0x8bf   :  { %v1212_v41 = vsub.f32 1.0, %v9445_v28  ;;  %v1214_v18 = vmul.f32 %v9445_v28, %v10295_v8 }
 0x8c0   :  { %v1210_v0 = vadd.f32 %v1209_v54, %v1035_v20 }
 0x8c2   :  { %9446 = vtanh.f32 %v1210_v0 }
 0x8cc   :  { %v9447_v23 = vpop.eup %9446 }
 0x8cd   :  { %v1213_v45 = vmul.f32 %v9447_v23, %v1212_v41 }
 0x8cf   :  { %v1215_v17 = vadd.f32 %v1214_v18, %v1213_v45 }
 0x8d1   :  { %1282 = vmatmul.mubr.f32.vlgmr.msra.gmra.mrb[10].mxu0 %v1215_v17  ;;  %1216 = vst [vmem:[#allocation11] sm:$0xff] %v1215_v17 }
 0x8d2   :  { %7826 = vmatpush1.bf16.msra.mxu0 %v9929_v9  ;;  %1441 = vmatprep.mubr.f32.mxu0 %v11514_v62 }
 0x8d3   :  { %7828 = vmatprep.subr.bf16.mxu0 %v9931_v10 }
 0x8d6   :  { %7830 = vmatpush1.bf16.msra.mxu0 %v9935_v15 }
 0x8d7   :  { %7832 = vmatprep.subr.bf16.mxu0 %v9938_v16 }
 0x8da   :  { %7834 = vmatpush1.bf16.msra.mxu0 %v9941_v21 }
 0x8db   :  { %7836 = vmatprep.subr.bf16.mxu0 %v9944_v22 }
 0x8de   :  { %7838 = vmatpush1.bf16.msra.mxu0 %v9947_v29 }
 0x8df   :  { %7840 = vmatprep.subr.bf16.mxu0 %v9952_v31 }
 0x8e2   :  { %7842 = vmatpush1.bf16.msra.mxu0 %v9957_v36 }
 0x8e3   :  { %7844 = vmatprep.subr.bf16.mxu0 %v9960_v37 }
 0x8e6   :  { %7846 = vmatpush1.bf16.msra.mxu0 %v9963_v42 }
 0x8e7   :  { %7848 = vmatprep.subr.bf16.mxu0 %v9966_v43 }
 0x8ea   :  { %7850 = vmatpush1.bf16.msra.mxu0 %v9969_v48 }
 0x8eb   :  { %7852 = vmatprep.subr.bf16.mxu0 %v9972_v49 }
 0x8ee   :  { %7854 = vmatpush1.bf16.msra.mxu0 %v9975_v52 }
 0x8ef   :  { %7880 = vmatprep.subr.bf16.mxu0 %v10119_v46 }
 0x9a4   :  { %v1283_v5 = vpop.f32.mrb[10].mxu0 }
 0x9a5   :  { %v5621_v8 = vmul.f32 -1.442695, %v1283_v5  ;;  %v1285_v40 = vpop.f32.mrb[11].mxu0 }
 0x9a6   :  { %v5622_v4 = vmul.f32 -1.442695, %v1285_v40  ;;  %v11530_v40 = vld [vmem:[#allocation18_spill] sm:$0xff] }
 0x9a7   :  { %9448 = vpow2.f32 %v5621_v8  ;;  %v1537_v8 = vld [vmem:[#allocation2 + $0x8] sm:$0xff] }
 0x9b1   :  { %v9449_v60 = vpop.eup %9448 }
 0x9b2   :  { %v1294_v1 = vadd.f32 1.0, %v9449_v60  ;;  %v11531_v60 = vld [vmem:[#allocation19_spill] sm:$0xff] }
 0x9b4   :  { %9450 = vrcp.f32 %v1294_v1  ;;  %v11532_v1 = vld [vmem:[#allocation20_spill] sm:$0xff] }
 0x9b5   :  { %9452 = vpow2.f32 %v5622_v4  ;;  %v11535_v4 = vld [vmem:[#allocation23_spill] sm:$0xff] }
 0x9be   :  { %v9451_v26 = vpop.eup %9450 }
 0x9bf   :  { %v1300_v53 = vmul.f32 %v9451_v26, %v1215_v17  ;;  %v9453_v47 = vpop.eup %9452  ;;  %v11533_v26 = vld [vmem:[#allocation21_spill] sm:$0xff] }
 0x9c0   :  { %v1295_v32 = vadd.f32 1.0, %v9453_v47  ;;  %v11536_v47 = vld [vmem:[#allocation24_spill] sm:$0xff] }
 0x9c1   :  { %6484 = vmatmul.mubr.f32.vlgmr.msra.gmra.mrb[12].mxu1 %v1300_v53  ;;  %v11534_v53 = vld [vmem:[#allocation22_spill] sm:$0xff] }
 0x9c2   :  { %7857 = vmatpush3.bf16.msra.mxu1 %v9949_v30  ;;  %6518 = vmatprep.mubr.msk.f32.mxu1 %vm9811_vm0, %v11514_v62  ;;  %9454 = vrcp.f32 %v1295_v32  ;;  %v11537_v32 = vld [vmem:[#allocation37_spill] sm:$0xff] }
 0x9c3   :  { %7858 = vmatprep.subr.bf16.mxu1 %v11505_v25 }
 0x9c6   :  { %7860 = vmatpush3.bf16.msra.mxu1 %v9998_v55 }
 0x9c7   :  { %7861 = vmatprep.subr.bf16.mxu1 %v11505_v25 }
 0x9ca   :  { %7863 = vmatpush3.bf16.msra.mxu1 %v10002_v58 }
 0x9cb   :  { %7864 = vmatprep.subr.bf16.mxu1 %v11505_v25 }
 0x9cc   :  { %v9455_v0 = vpop.eup %9454 }
 0x9cd   :  { %v1372_v28 = vsub.f32 1.0, %v9455_v0  ;;  %v11540_v0 = vld [vmem:[#allocation41_spill] sm:$0xff] }
 0x9ce   :  { %7866 = vmatpush3.bf16.msra.mxu1 %v10006_v61 }
 0x9cf   :  { %7867 = vmatprep.subr.bf16.mxu1 %v11505_v25  ;;  %v1373_v23 = vmul.f32 0.25, %v1372_v28  ;;  %v11541_v28 = vld [vmem:[#allocation43_spill] sm:$0xff] }
 0x9d2   :  { %7869 = vmatpush3.bf16.msra.mxu1 %v10010_v2 }
 0x9d3   :  { %7870 = vmatprep.subr.bf16.mxu1 %v11505_v25 }
 0x9d6   :  { %7872 = vmatpush3.bf16.msra.mxu1 %v10014_v6 }
 0x9d7   :  { %7873 = vmatprep.subr.bf16.mxu1 %v11505_v25 }
 0x9da   :  { %7875 = vmatpush3.bf16.msra.mxu1 %v10018_v11 }
 0x9db   :  { %7876 = vmatprep.subr.bf16.mxu1 %v11505_v25 }
 0x9de   :  { %7878 = vmatpush3.bf16.msra.mxu1 %v10022_v14 }
 0x9df   :  { %7911 = vmatprep.subr.bf16.mxu1 %v11505_v25 }
 0xa94   :  { %v1367_v20 = vpop.f32.mrb[12].mxu1 }
 0xa95   :  { %9456 = vtanh.f32 %v1367_v20  ;;  %v6485_v54 = vpop.f32.mrb[13].mxu1  ;;  %v11538_v20 = vld [vmem:[#allocation38_spill] sm:$0xff] }
 0xa96   :  { %v11539_v54 = vld [vmem:[#allocation40_spill] sm:$0xff] }
 0xa9f   :  { %v9457_v41 = vpop.eup %9456 }
 0xaa0   :  { %v1374_v45 = vsub.f32 %v9457_v41, %v1215_v17  ;;  %v11542_v41 = vld [vmem:[#allocation44_spill] sm:$0xff] }
 0xaa2   :  { %v1375_v18 = vmul.f32 %v1374_v45, %v1373_v23  ;;  %v11543_v23 = vld [vmem:[#allocation46_spill] sm:$0xff]  ;;  %v11544_v45 = vld [vmem:[#allocation47_spill] sm:$0xff] }
 0xaa4   :  { %v10388_v5 = vadd.f32 %v1375_v18, %v1215_v17  ;;  %v11529_v17 = vld [vmem:[#allocation17_spill] sm:$0xff]  ;;  %v11545_v18 = vld [vmem:[#allocation16_spill] sm:$0xff] }
 0xaa6   :  { %1442 = vmatmul.mubr.f32.vlgmr.msra.gmra.mrb[12].mxu0 %v10388_v5 }
 0xaa7   :  { %7882 = vmatpush1.bf16.msra.mxu0 %v10121_v50  ;;  %1602 = vmatprep.mubr.f32.mxu0 %v11514_v62 }
 0xaa8   :  { %7884 = vmatprep.subr.bf16.mxu0 %v10124_v56 }
 0xaab   :  { %7886 = vmatpush1.bf16.msra.mxu0 %v10127_v59 }
 0xaac   :  { %7888 = vmatprep.subr.bf16.mxu0 %v10130_v63 }
 0xaaf   :  { %7890 = vmatpush1.bf16.msra.mxu0 %v10133_v7 }
 0xab0   :  { %7892 = vmatprep.subr.bf16.mxu0 %v10136_v13 }
 0xab3   :  { %7894 = vmatpush1.bf16.msra.mxu0 %v10139_v19 }
 0xab4   :  { %7896 = vmatprep.subr.bf16.mxu0 %v10142_v24 }
 0xab7   :  { %7898 = vmatpush1.bf16.msra.mxu0 %v10145_v27 }
 0xab8   :  { %7900 = vmatprep.subr.bf16.mxu0 %v10148_v33 }
 0xabb   :  { %7902 = vmatpush1.bf16.msra.mxu0 %v10151_v38 }
 0xabc   :  { %7904 = vmatprep.subr.bf16.mxu0 %v10154_v44 }
 0xabf   :  { %7906 = vmatpush1.bf16.msra.mxu0 %v10157_v51 }
 0xac0   :  { %7908 = vmatprep.subr.bf16.mxu0 %v10160_v57 }
 0xac3   :  { %7910 = vmatpush1.bf16.msra.mxu0 %v10163_v3 }
 0xac4   :  { %7936 = vmatprep.subr.bf16.mxu0 %v11529_v17 }
 0xac6   :  { %1603 = vmatmul.mubr.f32.vlgmr.msra.gmra.mrb[14].mxu0 %v1537_v8 }
 0xac7   :  { %7938 = vmatpush1.bf16.msra.mxu0 %v11530_v40  ;;  %1743 = vmatprep.mubr.f32.mxu0 %v11514_v62 }
 0xac8   :  { %7940 = vmatprep.subr.bf16.mxu0 %v11531_v60 }
 0xacb   :  { %7942 = vmatpush1.bf16.msra.mxu0 %v11532_v1 }
 0xacc   :  { %7944 = vmatprep.subr.bf16.mxu0 %v11533_v26 }
 0xacf   :  { %7946 = vmatpush1.bf16.msra.mxu0 %v11534_v53 }
 0xad0   :  { %7948 = vmatprep.subr.bf16.mxu0 %v11535_v4 }
 0xad3   :  { %7950 = vmatpush1.bf16.msra.mxu0 %v11536_v47 }
 0xad4   :  { %7952 = vmatprep.subr.bf16.mxu0 %v11537_v32 }
 0xad7   :  { %7954 = vmatpush1.bf16.msra.mxu0 %v11538_v20 }
 0xad8   :  { %7956 = vmatprep.subr.bf16.mxu0 %v11539_v54 }
 0xadb   :  { %7958 = vmatpush1.bf16.msra.mxu0 %v11540_v0 }
 0xadc   :  { %7960 = vmatprep.subr.bf16.mxu0 %v11541_v28  ;;  %v11546_v28 = vld [vmem:[#allocation25_spill] sm:$0xff] }
 0xadf   :  { %7962 = vmatpush1.bf16.msra.mxu0 %v11542_v41 }
 0xae0   :  { %7964 = vmatprep.subr.bf16.mxu0 %v11543_v23 }
 0xae3   :  { %7966 = vmatpush1.bf16.msra.mxu0 %v11544_v45  ;;  %v11547_v45 = vld [vmem:[#allocation26_spill] sm:$0xff] }
 0xae4   :  { %7992 = vmatprep.subr.bf16.mxu0 %v11545_v18 }
 0xb79   :  { %v1443_v4 = vpop.f32.mrb[12].mxu0 }
 0xb7a   :  { %v5623_v47 = vmul.f32 -1.442695, %v1443_v4  ;;  %v1445_v53 = vpop.f32.mrb[13].mxu0  ;;  %v11548_v4 = vld [vmem:[#allocation27_spill] sm:$0xff] }
 0xb7c   :  { %9458 = vpow2.f32 %v5623_v47  ;;  %v11549_v47 = vld [vmem:[#allocation28_spill] sm:$0xff] }
 0xb86   :  { %v9459_v32 = vpop.eup %9458 }
 0xb87   :  { %v1454_v20 = vadd.f32 1.0, %v9459_v32  ;;  %v11550_v32 = vld [vmem:[#allocation29_spill] sm:$0xff] }
 0xb89   :  { %9460 = vrcp.f32 %v1454_v20  ;;  %v11551_v20 = vld [vmem:[#allocation30_spill] sm:$0xff] }
 0xb93   :  { %v9461_v54 = vpop.eup %9460 }
 0xb94   :  { %v1460_v0 = vmul.f32 %v9461_v54, %v10388_v5  ;;  %v11552_v54 = vld [vmem:[#allocation31_spill] sm:$0xff] }
 0xb96   :  { %6519 = vmatmul.mubr.f32.vlgmr.msra.gmra.mrb[14].mxu1 %v1460_v0  ;;  %v11553_v0 = vld [vmem:[#allocation32_spill] sm:$0xff] }
 0xb97   :  { %7913 = vmatpush3.bf16.msra.mxu1 %v11546_v28  ;;  %6553 = vmatprep.mubr.msk.f32.mxu1 %vm9811_vm0, %v11514_v62 }
 0xb98   :  { %7914 = vmatprep.subr.bf16.mxu1 %v11505_v25 }
 0xb9b   :  { %7916 = vmatpush3.bf16.msra.mxu1 %v11547_v45 }
 0xb9c   :  { %7917 = vmatprep.subr.bf16.mxu1 %v11505_v25 }
 0xb9f   :  { %7919 = vmatpush3.bf16.msra.mxu1 %v11548_v4 }
 0xba0   :  { %7920 = vmatprep.subr.bf16.mxu1 %v11505_v25 }
 0xba3   :  { %7922 = vmatpush3.bf16.msra.mxu1 %v11549_v47  ;;  %v11554_v47 = vld [vmem:[#allocation33_spill] sm:$0xff] }
 0xba4   :  { %7923 = vmatprep.subr.bf16.mxu1 %v11505_v25 }
 0xba7   :  { %7925 = vmatpush3.bf16.msra.mxu1 %v11550_v32  ;;  %v11555_v32 = vld [vmem:[#allocation34_spill] sm:$0xff] }
 0xba8   :  { %7926 = vmatprep.subr.bf16.mxu1 %v11505_v25 }
 0xbab   :  { %7928 = vmatpush3.bf16.msra.mxu1 %v11551_v20  ;;  %v11556_v20 = vld [vmem:[#allocation35_spill] sm:$0xff] }
 0xbac   :  { %7929 = vmatprep.subr.bf16.mxu1 %v11505_v25 }
 0xbaf   :  { %7931 = vmatpush3.bf16.msra.mxu1 %v11552_v54  ;;  %v11557_v54 = vld [vmem:[#allocation36_spill] sm:$0xff] }
 0xbb0   :  { %7932 = vmatprep.subr.bf16.mxu1 %v11505_v25 }
 0xbb3   :  { %7934 = vmatpush3.bf16.msra.mxu1 %v11553_v0  ;;  %v11560_v0 = vld [vmem:[#allocation45_spill] sm:$0xff] }
 0xbb4   :  { %7967 = vmatprep.subr.bf16.mxu1 %v11505_v25 }
 0xbb6   :  { %6554 = vmatmul.mubr.f32.vlgmr.msra.gmra.mrb[16].mxu1 %v1537_v8  ;;  %v11558_v8 = vld [vmem:[#allocation39_spill] sm:$0xff] }
 0xbb7   :  { %7969 = vmatpush3.bf16.msra.mxu1 %v11554_v47  ;;  %6588 = vmatprep.mubr.msk.f32.mxu1 %vm9811_vm0, %v11514_v62  ;;  %v11559_v47 = vld [vmem:[#allocation42_spill] sm:$0xff] }
 0xbb8   :  { %7970 = vmatprep.subr.bf16.mxu1 %v11505_v25 }
 0xbbb   :  { %7972 = vmatpush3.bf16.msra.mxu1 %v11555_v32  ;;  %v11561_v32 = vld [vmem:[#allocation48_spill] sm:$0xff] }
 0xbbc   :  { %7973 = vmatprep.subr.bf16.mxu1 %v11505_v25 }
 0xbbf   :  { %7975 = vmatpush3.bf16.msra.mxu1 %v11556_v20  ;;  %v5624_v20 = vmul.f32 -1.442695, %v1445_v53 }
 0xbc0   :  { %7976 = vmatprep.subr.bf16.mxu1 %v11505_v25 }
 0xbc1   :  { %9462 = vpow2.f32 %v5624_v20 }
 0xbc3   :  { %7978 = vmatpush3.bf16.msra.mxu1 %v11557_v54 }
 0xbc4   :  { %7979 = vmatprep.subr.bf16.mxu1 %v11505_v25 }
 0xbc7   :  { %7981 = vmatpush3.bf16.msra.mxu1 %v11558_v8 }
 0xbc8   :  { %7982 = vmatprep.subr.bf16.mxu1 %v11505_v25 }
 0xbcb   :  { %7984 = vmatpush3.bf16.msra.mxu1 %v11559_v47  ;;  %v9463_v54 = vpop.eup %9462 }
 0xbcc   :  { %7985 = vmatprep.subr.bf16.mxu1 %v11505_v25  ;;  %v1455_v4 = vadd.f32 1.0, %v9463_v54 }
 0xbce   :  { %9464 = vrcp.f32 %v1455_v4 }
 0xbcf   :  { %7987 = vmatpush3.bf16.msra.mxu1 %v11560_v0 }
 0xbd0   :  { %7988 = vmatprep.subr.bf16.mxu1 %v11505_v25 }
 0xbd3   :  { %7990 = vmatpush3.bf16.msra.mxu1 %v11561_v32 }
 0xbd4   :  { %8023 = vmatprep.subr.bf16.mxu1 %v11505_v25 }
 0xbd8   :  { %v9465_v28 = vpop.eup %9464 }
 0xbd9   :  { %v1532_v47 = vsub.f32 1.0, %v9465_v28 }
 0xbdb   :  { %v1533_v41 = vmul.f32 0.25, %v1532_v47 }
 0xc69   :  { %v1527_v8 = vpop.f32.mrb[14].mxu1 }
 0xc6a   :  { %9466 = vtanh.f32 %v1527_v8  ;;  %v6520_v45 = vpop.f32.mrb[15].mxu1 }
 0xc74   :  { %v9467_v23 = vpop.eup %9466 }
 0xc75   :  { %v1534_v0 = vsub.f32 %v9467_v23, %v10388_v5 }
 0xc77   :  { %v1535_v26 = vmul.f32 %v1534_v0, %v1533_v41 }
 0xc79   :  { %v10464_v1 = vadd.f32 %v1535_v26, %v10388_v5 }
 0xc7b   :  { %1744 = vmatmul.mubr.f32.vlgmr.msra.gmra.mrb[14].mxu0 %v10464_v1  ;;  %6589 = vmatmul.mubr.f32.vlgmr.msra.gmra.mrb[18].mxu1 %v10464_v1 }
 0xc7c   :  { %7994 = vmatpush1.bf16.msra.mxu0 %v9929_v9  ;;  %1906 = vmatprep.mubr.f32.mxu0 %v11514_v62 }
 0xc7d   :  { %7996 = vmatprep.subr.bf16.mxu0 %v9931_v10  ;;  %8025 = vmatpush3.bf16.msra.mxu1 %v9949_v30 }
 0xc7e   :  { %8026 = vmatprep.subr.bf16.mxu1 %v11505_v25  ;;  %6623 = vmatprep.mubr.msk.f32.mxu1 %vm9811_vm0, %v11514_v62 }
 0xc80   :  { %7998 = vmatpush1.bf16.msra.mxu0 %v9935_v15 }
 0xc81   :  { %8000 = vmatprep.subr.bf16.mxu0 %v9938_v16  ;;  %8028 = vmatpush3.bf16.msra.mxu1 %v9998_v55 }
 0xc82   :  { %8029 = vmatprep.subr.bf16.mxu1 %v11505_v25 }
 0xc84   :  { %8002 = vmatpush1.bf16.msra.mxu0 %v9941_v21 }
 0xc85   :  { %8004 = vmatprep.subr.bf16.mxu0 %v9944_v22  ;;  %8031 = vmatpush3.bf16.msra.mxu1 %v10002_v58 }
 0xc86   :  { %8032 = vmatprep.subr.bf16.mxu1 %v11505_v25 }
 0xc88   :  { %8006 = vmatpush1.bf16.msra.mxu0 %v9947_v29 }
 0xc89   :  { %v1675_v5 = vpop.f32.mrb[16].mxu1  ;;  %8008 = vmatprep.subr.bf16.mxu0 %v9952_v31  ;;  %8034 = vmatpush3.bf16.msra.mxu1 %v10006_v61 }
 0xc8a   :  { %v6555_v26 = vpop.f32.mrb[17].mxu1  ;;  %8035 = vmatprep.subr.bf16.mxu1 %v11505_v25  ;;  %v1676_v60 = vadd.f32 %v1675_v5, %v10348_v12 }
 0xc8c   :  { %8010 = vmatpush1.bf16.msra.mxu0 %v9957_v36 }
 0xc8d   :  { %8012 = vmatprep.subr.bf16.mxu0 %v9960_v37  ;;  %8037 = vmatpush3.bf16.msra.mxu1 %v10010_v2 }
 0xc8e   :  { %8038 = vmatprep.subr.bf16.mxu1 %v11505_v25 }
 0xc90   :  { %8014 = vmatpush1.bf16.msra.mxu0 %v9963_v42 }
 0xc91   :  { %8016 = vmatprep.subr.bf16.mxu0 %v9966_v43  ;;  %8040 = vmatpush3.bf16.msra.mxu1 %v10014_v6 }
 0xc92   :  { %8041 = vmatprep.subr.bf16.mxu1 %v11505_v25 }
 0xc94   :  { %8018 = vmatpush1.bf16.msra.mxu0 %v9969_v48 }
 0xc95   :  { %8020 = vmatprep.subr.bf16.mxu0 %v9972_v49  ;;  %8043 = vmatpush3.bf16.msra.mxu1 %v10018_v11 }
 0xc96   :  { %8044 = vmatprep.subr.bf16.mxu1 %v11505_v25 }
 0xc98   :  { %8022 = vmatpush1.bf16.msra.mxu0 %v9975_v52 }
 0xc99   :  { %8046 = vmatpush3.bf16.msra.mxu1 %v10022_v14  ;;  %8048 = vmatprep.subr.bf16.mxu0 %v11545_v18 }
 0xc9a   :  { %8079 = vmatprep.subr.bf16.mxu1 %v11505_v25 }
 0xd4e   :  { %v1745_v53 = vpop.f32.mrb[14].mxu0  ;;  %v1816_v28 = vpop.f32.mrb[18].mxu1 }
 0xd4f   :  { %v9340_v41 = vadd.f32 %v10340_v39, %v1745_v53  ;;  %v1747_v23 = vpop.f32.mrb[15].mxu0  ;;  %v6590_v45 = vpop.f32.mrb[19].mxu1  ;;  %v1817_v32 = vadd.f32 %v1816_v28, %v10346_v34 }
 0xd50   :  { %v9342_v47 = vadd.f32 %v10342_v35, %v1747_v23 }
 0xd51   :  { %v5625_v4 = vmul.f32 -1.442695, %v9340_v41 }
 0xd52   :  { %v5626_v20 = vmul.f32 -1.442695, %v9342_v47 }
 0xd53   :  { %9468 = vpow2.f32 %v5625_v4 }
 0xd54   :  { %9470 = vpow2.f32 %v5626_v20 }
 0xd5d   :  { %v9469_v54 = vpop.eup %9468 }
 0xd5e   :  { %v1824_v0 = vadd.f32 1.0, %v9469_v54  ;;  %v9471_v8 = vpop.eup %9470 }
 0xd5f   :  { %v1831_v26 = vadd.f32 1.0, %v9471_v8 }
 0xd60   :  { %9472 = vrcp.f32 %v1824_v0 }
 0xd61   :  { %9474 = vrcp.f32 %v1831_v26 }
 0xd6a   :  { %v9473_v18 = vpop.eup %9472 }
 0xd6b   :  { %v1834_v40 = vmul.f32 %v9473_v18, %v1817_v32  ;;  %v9475_v41 = vpop.eup %9474 }
 0xd6c   :  { %v1837_v45 = vsub.f32 1.0, %v9475_v41  ;;  %v1839_v47 = vmul.f32 %v9475_v41, %v10464_v1 }
 0xd6d   :  { %v1835_v53 = vadd.f32 %v1834_v40, %v1676_v60 }
 0xd6f   :  { %9476 = vtanh.f32 %v1835_v53 }
 0xd79   :  { %v9477_v23 = vpop.eup %9476 }
 0xd7a   :  { %v1838_v4 = vmul.f32 %v9477_v23, %v1837_v45 }
 0xd7c   :  { %v1840_v20 = vadd.f32 %v1839_v47, %v1838_v4 }
 0xd7e   :  { %1907 = vmatmul.mubr.f32.vlgmr.msra.gmra.mrb[16].mxu0 %v1840_v20  ;;  %1841 = vst [vmem:[#allocation11 + $0x8] sm:$0xff] %v1840_v20 }
 0xd7f   :  { %8050 = vmatpush1.bf16.msra.mxu0 %v9929_v9  ;;  %2066 = vmatprep.mubr.f32.mxu0 %v11514_v62 }
 0xd80   :  { %8052 = vmatprep.subr.bf16.mxu0 %v9931_v10 }
 0xd83   :  { %8054 = vmatpush1.bf16.msra.mxu0 %v9935_v15 }
 0xd84   :  { %8056 = vmatprep.subr.bf16.mxu0 %v9938_v16 }
 0xd87   :  { %8058 = vmatpush1.bf16.msra.mxu0 %v9941_v21 }
 0xd88   :  { %8060 = vmatprep.subr.bf16.mxu0 %v9944_v22 }
 0xd8b   :  { %8062 = vmatpush1.bf16.msra.mxu0 %v9947_v29 }
 0xd8c   :  { %8064 = vmatprep.subr.bf16.mxu0 %v9952_v31 }
 0xd8f   :  { %8066 = vmatpush1.bf16.msra.mxu0 %v9957_v36 }
 0xd90   :  { %8068 = vmatprep.subr.bf16.mxu0 %v9960_v37 }
 0xd93   :  { %8070 = vmatpush1.bf16.msra.mxu0 %v9963_v42 }
 0xd94   :  { %8072 = vmatprep.subr.bf16.mxu0 %v9966_v43 }
 0xd97   :  { %8074 = vmatpush1.bf16.msra.mxu0 %v9969_v48 }
 0xd98   :  { %8076 = vmatprep.subr.bf16.mxu0 %v9972_v49 }
 0xd9b   :  { %8078 = vmatpush1.bf16.msra.mxu0 %v9975_v52 }
 0xd9c   :  { %8104 = vmatprep.subr.bf16.mxu0 %v10119_v46 }
 0xe51   :  { %v1908_v40 = vpop.f32.mrb[16].mxu0 }
 0xe52   :  { %v5627_v60 = vmul.f32 -1.442695, %v1908_v40  ;;  %v1910_v1 = vpop.f32.mrb[17].mxu0 }
 0xe53   :  { %v5628_v54 = vmul.f32 -1.442695, %v1910_v1  ;;  %v11562_v1 = vld [vmem:[#allocation18_spill] sm:$0xff] }
 0xe54   :  { %9478 = vpow2.f32 %v5627_v60 }
 0xe5e   :  { %v9479_v18 = vpop.eup %9478 }
 0xe5f   :  { %v1919_v32 = vadd.f32 1.0, %v9479_v18  ;;  %v11563_v18 = vld [vmem:[#allocation19_spill] sm:$0xff] }
 0xe61   :  { %9480 = vrcp.f32 %v1919_v32  ;;  %v11564_v32 = vld [vmem:[#allocation20_spill] sm:$0xff] }
 0xe62   :  { %9482 = vpow2.f32 %v5628_v54  ;;  %v11567_v54 = vld [vmem:[#allocation23_spill] sm:$0xff] }
 0xe6b   :  { %v9481_v5 = vpop.eup %9480 }
 0xe6c   :  { %v1925_v28 = vmul.f32 %v9481_v5, %v1840_v20  ;;  %v9483_v0 = vpop.eup %9482  ;;  %v11565_v5 = vld [vmem:[#allocation21_spill] sm:$0xff] }
 0xe6d   :  { %v1920_v8 = vadd.f32 1.0, %v9483_v0  ;;  %v11568_v0 = vld [vmem:[#allocation24_spill] sm:$0xff] }
 0xe6e   :  { %6624 = vmatmul.mubr.f32.vlgmr.msra.gmra.mrb[20].mxu1 %v1925_v28  ;;  %v11566_v28 = vld [vmem:[#allocation22_spill] sm:$0xff] }
 0xe6f   :  { %8081 = vmatpush3.bf16.msra.mxu1 %v9949_v30  ;;  %6658 = vmatprep.mubr.msk.f32.mxu1 %vm9811_vm0, %v11514_v62  ;;  %9484 = vrcp.f32 %v1920_v8  ;;  %v11569_v8 = vld [vmem:[#allocation37_spill] sm:$0xff] }
 0xe70   :  { %8082 = vmatprep.subr.bf16.mxu1 %v11505_v25 }
 0xe73   :  { %8084 = vmatpush3.bf16.msra.mxu1 %v9998_v55 }
 0xe74   :  { %8085 = vmatprep.subr.bf16.mxu1 %v11505_v25 }
 0xe77   :  { %8087 = vmatpush3.bf16.msra.mxu1 %v10002_v58 }
 0xe78   :  { %8088 = vmatprep.subr.bf16.mxu1 %v11505_v25 }
 0xe79   :  { %v9485_v41 = vpop.eup %9484 }
 0xe7a   :  { %v1997_v45 = vsub.f32 1.0, %v9485_v41  ;;  %v11572_v41 = vld [vmem:[#allocation41_spill] sm:$0xff] }
 0xe7b   :  { %8090 = vmatpush3.bf16.msra.mxu1 %v10006_v61 }
 0xe7c   :  { %8091 = vmatprep.subr.bf16.mxu1 %v11505_v25  ;;  %v1998_v4 = vmul.f32 0.25, %v1997_v45  ;;  %v11573_v45 = vld [vmem:[#allocation43_spill] sm:$0xff] }
 0xe7f   :  { %8093 = vmatpush3.bf16.msra.mxu1 %v10010_v2 }
 0xe80   :  { %8094 = vmatprep.subr.bf16.mxu1 %v11505_v25 }
 0xe83   :  { %8096 = vmatpush3.bf16.msra.mxu1 %v10014_v6 }
 0xe84   :  { %8097 = vmatprep.subr.bf16.mxu1 %v11505_v25 }
 0xe87   :  { %8099 = vmatpush3.bf16.msra.mxu1 %v10018_v11 }
 0xe88   :  { %8100 = vmatprep.subr.bf16.mxu1 %v11505_v25 }
 0xe8b   :  { %8102 = vmatpush3.bf16.msra.mxu1 %v10022_v14 }
 0xe8c   :  { %8135 = vmatprep.subr.bf16.mxu1 %v11505_v25 }
 0xf41   :  { %v1992_v26 = vpop.f32.mrb[20].mxu1 }
 0xf42   :  { %9486 = vtanh.f32 %v1992_v26  ;;  %v6625_v53 = vpop.f32.mrb[21].mxu1  ;;  %v11570_v26 = vld [vmem:[#allocation38_spill] sm:$0xff] }
 0xf43   :  { %v11571_v53 = vld [vmem:[#allocation40_spill] sm:$0xff] }
 0xf4c   :  { %v9487_v23 = vpop.eup %9486 }
 0xf4d   :  { %v1999_v47 = vsub.f32 %v9487_v23, %v1840_v20  ;;  %v11574_v23 = vld [vmem:[#allocation44_spill] sm:$0xff] }
 0xf4f   :  { %v2000_v40 = vmul.f32 %v1999_v47, %v1998_v4  ;;  %v11575_v4 = vld [vmem:[#allocation46_spill] sm:$0xff]  ;;  %v11576_v47 = vld [vmem:[#allocation47_spill] sm:$0xff] }
 0xf51   :  { %v10543_v60 = vadd.f32 %v2000_v40, %v1840_v20  ;;  %v2162_v20 = vld [vmem:[#allocation2 + $0x10] sm:$0xff]  ;;  %v11577_v40 = vld [vmem:[#allocation16_spill] sm:$0xff] }
 0xf53   :  { %2067 = vmatmul.mubr.f32.vlgmr.msra.gmra.mrb[18].mxu0 %v10543_v60 }
 0xf54   :  { %8106 = vmatpush1.bf16.msra.mxu0 %v10121_v50  ;;  %2227 = vmatprep.mubr.f32.mxu0 %v11514_v62 }
 0xf55   :  { %8108 = vmatprep.subr.bf16.mxu0 %v10124_v56 }
 0xf58   :  { %8110 = vmatpush1.bf16.msra.mxu0 %v10127_v59 }
 0xf59   :  { %8112 = vmatprep.subr.bf16.mxu0 %v10130_v63 }
 0xf5c   :  { %8114 = vmatpush1.bf16.msra.mxu0 %v10133_v7 }
 0xf5d   :  { %8116 = vmatprep.subr.bf16.mxu0 %v10136_v13 }
 0xf60   :  { %8118 = vmatpush1.bf16.msra.mxu0 %v10139_v19 }
 0xf61   :  { %8120 = vmatprep.subr.bf16.mxu0 %v10142_v24 }
 0xf64   :  { %8122 = vmatpush1.bf16.msra.mxu0 %v10145_v27 }
 0xf65   :  { %8124 = vmatprep.subr.bf16.mxu0 %v10148_v33 }
 0xf68   :  { %8126 = vmatpush1.bf16.msra.mxu0 %v10151_v38 }
 0xf69   :  { %8128 = vmatprep.subr.bf16.mxu0 %v10154_v44 }
 0xf6c   :  { %8130 = vmatpush1.bf16.msra.mxu0 %v10157_v51 }
 0xf6d   :  { %8132 = vmatprep.subr.bf16.mxu0 %v10160_v57 }
 0xf70   :  { %8134 = vmatpush1.bf16.msra.mxu0 %v10163_v3 }
 0xf71   :  { %8160 = vmatprep.subr.bf16.mxu0 %v11529_v17 }
 0xf73   :  { %2228 = vmatmul.mubr.f32.vlgmr.msra.gmra.mrb[20].mxu0 %v2162_v20 }
 0xf74   :  { %8162 = vmatpush1.bf16.msra.mxu0 %v11562_v1  ;;  %2368 = vmatprep.mubr.f32.mxu0 %v11514_v62 }
 0xf75   :  { %8164 = vmatprep.subr.bf16.mxu0 %v11563_v18 }
 0xf78   :  { %8166 = vmatpush1.bf16.msra.mxu0 %v11564_v32 }
 0xf79   :  { %8168 = vmatprep.subr.bf16.mxu0 %v11565_v5 }
 0xf7c   :  { %8170 = vmatpush1.bf16.msra.mxu0 %v11566_v28 }
 0xf7d   :  { %8172 = vmatprep.subr.bf16.mxu0 %v11567_v54 }
 0xf80   :  { %8174 = vmatpush1.bf16.msra.mxu0 %v11568_v0 }
 0xf81   :  { %8176 = vmatprep.subr.bf16.mxu0 %v11569_v8 }
 0xf84   :  { %8178 = vmatpush1.bf16.msra.mxu0 %v11570_v26 }
 0xf85   :  { %8180 = vmatprep.subr.bf16.mxu0 %v11571_v53 }
 0xf88   :  { %8182 = vmatpush1.bf16.msra.mxu0 %v11572_v41 }
 0xf89   :  { %8184 = vmatprep.subr.bf16.mxu0 %v11573_v45  ;;  %v11578_v45 = vld [vmem:[#allocation25_spill] sm:$0xff] }
 0xf8c   :  { %8186 = vmatpush1.bf16.msra.mxu0 %v11574_v23 }
 0xf8d   :  { %8188 = vmatprep.subr.bf16.mxu0 %v11575_v4 }
 0xf90   :  { %8190 = vmatpush1.bf16.msra.mxu0 %v11576_v47  ;;  %v11579_v47 = vld [vmem:[#allocation26_spill] sm:$0xff] }
 0xf91   :  { %8216 = vmatprep.subr.bf16.mxu0 %v11577_v40 }
0x1026   :  { %v2068_v54 = vpop.f32.mrb[18].mxu0 }
0x1027   :  { %v5629_v0 = vmul.f32 -1.442695, %v2068_v54  ;;  %v2070_v28 = vpop.f32.mrb[19].mxu0  ;;  %v11580_v54 = vld [vmem:[#allocation27_spill] sm:$0xff] }
0x1029   :  { %9488 = vpow2.f32 %v5629_v0  ;;  %v11581_v0 = vld [vmem:[#allocation28_spill] sm:$0xff] }
0x1033   :  { %v9489_v8 = vpop.eup %9488 }
0x1034   :  { %v2079_v26 = vadd.f32 1.0, %v9489_v8  ;;  %v11582_v8 = vld [vmem:[#allocation29_spill] sm:$0xff] }
0x1036   :  { %9490 = vrcp.f32 %v2079_v26  ;;  %v11583_v26 = vld [vmem:[#allocation30_spill] sm:$0xff] }
0x1040   :  { %v9491_v53 = vpop.eup %9490 }
0x1041   :  { %v2085_v41 = vmul.f32 %v9491_v53, %v10543_v60  ;;  %v11584_v53 = vld [vmem:[#allocation31_spill] sm:$0xff] }
0x1043   :  { %6659 = vmatmul.mubr.f32.vlgmr.msra.gmra.mrb[22].mxu1 %v2085_v41  ;;  %v11585_v41 = vld [vmem:[#allocation32_spill] sm:$0xff] }
0x1044   :  { %8137 = vmatpush3.bf16.msra.mxu1 %v11578_v45  ;;  %6693 = vmatprep.mubr.msk.f32.mxu1 %vm9811_vm0, %v11514_v62 }
0x1045   :  { %8138 = vmatprep.subr.bf16.mxu1 %v11505_v25 }
0x1048   :  { %8140 = vmatpush3.bf16.msra.mxu1 %v11579_v47 }
0x1049   :  { %8141 = vmatprep.subr.bf16.mxu1 %v11505_v25 }
0x104c   :  { %8143 = vmatpush3.bf16.msra.mxu1 %v11580_v54 }
0x104d   :  { %8144 = vmatprep.subr.bf16.mxu1 %v11505_v25 }
0x1050   :  { %8146 = vmatpush3.bf16.msra.mxu1 %v11581_v0  ;;  %v11586_v0 = vld [vmem:[#allocation33_spill] sm:$0xff] }
0x1051   :  { %8147 = vmatprep.subr.bf16.mxu1 %v11505_v25 }
0x1054   :  { %8149 = vmatpush3.bf16.msra.mxu1 %v11582_v8  ;;  %v11587_v8 = vld [vmem:[#allocation34_spill] sm:$0xff] }
0x1055   :  { %8150 = vmatprep.subr.bf16.mxu1 %v11505_v25 }
0x1058   :  { %8152 = vmatpush3.bf16.msra.mxu1 %v11583_v26  ;;  %v11588_v26 = vld [vmem:[#allocation35_spill] sm:$0xff] }
0x1059   :  { %8153 = vmatprep.subr.bf16.mxu1 %v11505_v25 }
0x105c   :  { %8155 = vmatpush3.bf16.msra.mxu1 %v11584_v53  ;;  %v11589_v53 = vld [vmem:[#allocation36_spill] sm:$0xff] }
0x105d   :  { %8156 = vmatprep.subr.bf16.mxu1 %v11505_v25 }
0x1060   :  { %8158 = vmatpush3.bf16.msra.mxu1 %v11585_v41  ;;  %v11592_v41 = vld [vmem:[#allocation45_spill] sm:$0xff] }
0x1061   :  { %8191 = vmatprep.subr.bf16.mxu1 %v11505_v25 }
0x1063   :  { %6694 = vmatmul.mubr.f32.vlgmr.msra.gmra.mrb[24].mxu1 %v2162_v20  ;;  %v11590_v20 = vld [vmem:[#allocation39_spill] sm:$0xff] }
0x1064   :  { %8193 = vmatpush3.bf16.msra.mxu1 %v11586_v0  ;;  %6728 = vmatprep.mubr.msk.f32.mxu1 %vm9811_vm0, %v11514_v62  ;;  %v11591_v0 = vld [vmem:[#allocation42_spill] sm:$0xff] }
0x1065   :  { %8194 = vmatprep.subr.bf16.mxu1 %v11505_v25 }
0x1068   :  { %8196 = vmatpush3.bf16.msra.mxu1 %v11587_v8  ;;  %v11593_v8 = vld [vmem:[#allocation48_spill] sm:$0xff] }
0x1069   :  { %8197 = vmatprep.subr.bf16.mxu1 %v11505_v25 }
0x106c   :  { %8199 = vmatpush3.bf16.msra.mxu1 %v11588_v26  ;;  %v5630_v26 = vmul.f32 -1.442695, %v2070_v28 }
0x106d   :  { %8200 = vmatprep.subr.bf16.mxu1 %v11505_v25 }
0x106e   :  { %9492 = vpow2.f32 %v5630_v26 }
0x1070   :  { %8202 = vmatpush3.bf16.msra.mxu1 %v11589_v53 }
0x1071   :  { %8203 = vmatprep.subr.bf16.mxu1 %v11505_v25 }
0x1074   :  { %8205 = vmatpush3.bf16.msra.mxu1 %v11590_v20 }
0x1075   :  { %8206 = vmatprep.subr.bf16.mxu1 %v11505_v25 }
0x1078   :  { %8208 = vmatpush3.bf16.msra.mxu1 %v11591_v0  ;;  %v9493_v53 = vpop.eup %9492 }
0x1079   :  { %8209 = vmatprep.subr.bf16.mxu1 %v11505_v25  ;;  %v2080_v54 = vadd.f32 1.0, %v9493_v53 }
0x107b   :  { %9494 = vrcp.f32 %v2080_v54 }
0x107c   :  { %8211 = vmatpush3.bf16.msra.mxu1 %v11592_v41 }
0x107d   :  { %8212 = vmatprep.subr.bf16.mxu1 %v11505_v25 }
0x1080   :  { %8214 = vmatpush3.bf16.msra.mxu1 %v11593_v8 }
0x1081   :  { %8247 = vmatprep.subr.bf16.mxu1 %v11505_v25 }
0x1085   :  { %v9495_v45 = vpop.eup %9494 }
0x1086   :  { %v2157_v0 = vsub.f32 1.0, %v9495_v45 }
0x1088   :  { %v2158_v23 = vmul.f32 0.25, %v2157_v0 }
0x1116   :  { %v2152_v20 = vpop.f32.mrb[22].mxu1 }
0x1117   :  { %9496 = vtanh.f32 %v2152_v20  ;;  %v6660_v47 = vpop.f32.mrb[23].mxu1 }
0x1121   :  { %v9497_v4 = vpop.eup %9496 }
0x1122   :  { %v2159_v41 = vsub.f32 %v9497_v4, %v10543_v60 }
0x1124   :  { %v2160_v5 = vmul.f32 %v2159_v41, %v2158_v23 }
0x1126   :  { %v10619_v32 = vadd.f32 %v2160_v5, %v10543_v60 }
0x1128   :  { %2369 = vmatmul.mubr.f32.vlgmr.msra.gmra.mrb[20].mxu0 %v10619_v32  ;;  %6729 = vmatmul.mubr.f32.vlgmr.msra.gmra.mrb[26].mxu1 %v10619_v32 }
0x1129   :  { %8218 = vmatpush1.bf16.msra.mxu0 %v9929_v9  ;;  %2531 = vmatprep.mubr.f32.mxu0 %v11514_v62 }
0x112a   :  { %8220 = vmatprep.subr.bf16.mxu0 %v9931_v10  ;;  %8249 = vmatpush3.bf16.msra.mxu1 %v9949_v30 }
0x112b   :  { %8250 = vmatprep.subr.bf16.mxu1 %v11505_v25  ;;  %6763 = vmatprep.mubr.msk.f32.mxu1 %vm9811_vm0, %v11514_v62 }
0x112d   :  { %8222 = vmatpush1.bf16.msra.mxu0 %v9935_v15 }
0x112e   :  { %8224 = vmatprep.subr.bf16.mxu0 %v9938_v16  ;;  %8252 = vmatpush3.bf16.msra.mxu1 %v9998_v55 }
0x112f   :  { %8253 = vmatprep.subr.bf16.mxu1 %v11505_v25 }
0x1131   :  { %8226 = vmatpush1.bf16.msra.mxu0 %v9941_v21 }
0x1132   :  { %8228 = vmatprep.subr.bf16.mxu0 %v9944_v22  ;;  %8255 = vmatpush3.bf16.msra.mxu1 %v10002_v58 }
0x1133   :  { %8256 = vmatprep.subr.bf16.mxu1 %v11505_v25 }
0x1135   :  { %8230 = vmatpush1.bf16.msra.mxu0 %v9947_v29 }
0x1136   :  { %v2300_v60 = vpop.f32.mrb[24].mxu1  ;;  %8232 = vmatprep.subr.bf16.mxu0 %v9952_v31  ;;  %8258 = vmatpush3.bf16.msra.mxu1 %v10006_v61 }
0x1137   :  { %v6695_v5 = vpop.f32.mrb[25].mxu1  ;;  %8259 = vmatprep.subr.bf16.mxu1 %v11505_v25  ;;  %v2301_v18 = vadd.f32 %v2300_v60, %v10348_v12 }
0x1139   :  { %8234 = vmatpush1.bf16.msra.mxu0 %v9957_v36 }
0x113a   :  { %8236 = vmatprep.subr.bf16.mxu0 %v9960_v37  ;;  %8261 = vmatpush3.bf16.msra.mxu1 %v10010_v2 }
0x113b   :  { %8262 = vmatprep.subr.bf16.mxu1 %v11505_v25 }
0x113d   :  { %8238 = vmatpush1.bf16.msra.mxu0 %v9963_v42 }
0x113e   :  { %8240 = vmatprep.subr.bf16.mxu0 %v9966_v43  ;;  %8264 = vmatpush3.bf16.msra.mxu1 %v10014_v6 }
0x113f   :  { %8265 = vmatprep.subr.bf16.mxu1 %v11505_v25 }
0x1141   :  { %8242 = vmatpush1.bf16.msra.mxu0 %v9969_v48 }
0x1142   :  { %8244 = vmatprep.subr.bf16.mxu0 %v9972_v49  ;;  %8267 = vmatpush3.bf16.msra.mxu1 %v10018_v11 }
0x1143   :  { %8268 = vmatprep.subr.bf16.mxu1 %v11505_v25 }
0x1145   :  { %8246 = vmatpush1.bf16.msra.mxu0 %v9975_v52 }
0x1146   :  { %8270 = vmatpush3.bf16.msra.mxu1 %v10022_v14  ;;  %8272 = vmatprep.subr.bf16.mxu0 %v11577_v40 }
0x1147   :  { %8303 = vmatprep.subr.bf16.mxu1 %v11505_v25 }
0x11fb   :  { %v2370_v28 = vpop.f32.mrb[20].mxu0  ;;  %v2441_v45 = vpop.f32.mrb[26].mxu1 }
0x11fc   :  { %v9344_v23 = vadd.f32 %v10340_v39, %v2370_v28  ;;  %v2372_v4 = vpop.f32.mrb[21].mxu0  ;;  %v6730_v47 = vpop.f32.mrb[27].mxu1  ;;  %v2442_v8 = vadd.f32 %v2441_v45, %v10346_v34 }
0x11fd   :  { %v9346_v0 = vadd.f32 %v10342_v35, %v2372_v4 }
0x11fe   :  { %v5631_v54 = vmul.f32 -1.442695, %v9344_v23 }
0x11ff   :  { %v5632_v26 = vmul.f32 -1.442695, %v9346_v0 }
0x1200   :  { %9498 = vpow2.f32 %v5631_v54 }
0x1201   :  { %9500 = vpow2.f32 %v5632_v26 }
0x120a   :  { %v9499_v53 = vpop.eup %9498 }
0x120b   :  { %v2449_v41 = vadd.f32 1.0, %v9499_v53  ;;  %v9501_v20 = vpop.eup %9500 }
0x120c   :  { %v2456_v5 = vadd.f32 1.0, %v9501_v20 }
0x120d   :  { %9502 = vrcp.f32 %v2449_v41 }
0x120e   :  { %9504 = vrcp.f32 %v2456_v5 }
0x1217   :  { %v9503_v40 = vpop.eup %9502 }
0x1218   :  { %v2459_v1 = vmul.f32 %v9503_v40, %v2442_v8  ;;  %v9505_v23 = vpop.eup %9504 }
0x1219   :  { %v2462_v47 = vsub.f32 1.0, %v9505_v23  ;;  %v2464_v0 = vmul.f32 %v9505_v23, %v10619_v32 }
0x121a   :  { %v2460_v28 = vadd.f32 %v2459_v1, %v2301_v18 }
0x121c   :  { %9506 = vtanh.f32 %v2460_v28 }
0x1226   :  { %v9507_v4 = vpop.eup %9506 }
0x1227   :  { %v2463_v54 = vmul.f32 %v9507_v4, %v2462_v47 }
0x1229   :  { %v2465_v26 = vadd.f32 %v2464_v0, %v2463_v54 }
0x122b   :  { %2532 = vmatmul.mubr.f32.vlgmr.msra.gmra.mrb[22].mxu0 %v2465_v26  ;;  %2466 = vst [vmem:[#allocation11 + $0x10] sm:$0xff] %v2465_v26 }
0x122c   :  { %8274 = vmatpush1.bf16.msra.mxu0 %v9929_v9  ;;  %2691 = vmatprep.mubr.f32.mxu0 %v11514_v62 }
0x122d   :  { %8276 = vmatprep.subr.bf16.mxu0 %v9931_v10 }
0x1230   :  { %8278 = vmatpush1.bf16.msra.mxu0 %v9935_v15 }
0x1231   :  { %8280 = vmatprep.subr.bf16.mxu0 %v9938_v16 }
0x1234   :  { %8282 = vmatpush1.bf16.msra.mxu0 %v9941_v21 }
0x1235   :  { %8284 = vmatprep.subr.bf16.mxu0 %v9944_v22 }
0x1238   :  { %8286 = vmatpush1.bf16.msra.mxu0 %v9947_v29 }
0x1239   :  { %8288 = vmatprep.subr.bf16.mxu0 %v9952_v31 }
0x123c   :  { %8290 = vmatpush1.bf16.msra.mxu0 %v9957_v36 }
0x123d   :  { %8292 = vmatprep.subr.bf16.mxu0 %v9960_v37 }
0x1240   :  { %8294 = vmatpush1.bf16.msra.mxu0 %v9963_v42 }
0x1241   :  { %8296 = vmatprep.subr.bf16.mxu0 %v9966_v43 }
0x1244   :  { %8298 = vmatpush1.bf16.msra.mxu0 %v9969_v48 }
0x1245   :  { %8300 = vmatprep.subr.bf16.mxu0 %v9972_v49 }
0x1248   :  { %8302 = vmatpush1.bf16.msra.mxu0 %v9975_v52 }
0x1249   :  { %8328 = vmatprep.subr.bf16.mxu0 %v10119_v46 }
0x12fe   :  { %v2533_v1 = vpop.f32.mrb[22].mxu0 }
0x12ff   :  { %v5633_v18 = vmul.f32 -1.442695, %v2533_v1  ;;  %v2535_v32 = vpop.f32.mrb[23].mxu0 }
0x1300   :  { %v5634_v53 = vmul.f32 -1.442695, %v2535_v32  ;;  %v11594_v32 = vld [vmem:[#allocation18_spill] sm:$0xff] }
0x1301   :  { %9508 = vpow2.f32 %v5633_v18 }
0x130b   :  { %v9509_v40 = vpop.eup %9508 }
0x130c   :  { %v2544_v8 = vadd.f32 1.0, %v9509_v40  ;;  %v11595_v40 = vld [vmem:[#allocation19_spill] sm:$0xff] }
0x130e   :  { %9510 = vrcp.f32 %v2544_v8  ;;  %v11596_v8 = vld [vmem:[#allocation20_spill] sm:$0xff] }
0x130f   :  { %9512 = vpow2.f32 %v5634_v53  ;;  %v11599_v53 = vld [vmem:[#allocation23_spill] sm:$0xff] }
0x1318   :  { %v9511_v60 = vpop.eup %9510 }
0x1319   :  { %v2550_v45 = vmul.f32 %v9511_v60, %v2465_v26  ;;  %v9513_v41 = vpop.eup %9512  ;;  %v11597_v60 = vld [vmem:[#allocation21_spill] sm:$0xff] }
0x131a   :  { %v2545_v20 = vadd.f32 1.0, %v9513_v41  ;;  %v11600_v41 = vld [vmem:[#allocation24_spill] sm:$0xff] }
0x131b   :  { %6764 = vmatmul.mubr.f32.vlgmr.msra.gmra.mrb[28].mxu1 %v2550_v45  ;;  %v11598_v45 = vld [vmem:[#allocation22_spill] sm:$0xff] }
0x131c   :  { %8305 = vmatpush3.bf16.msra.mxu1 %v9949_v30  ;;  %6798 = vmatprep.mubr.msk.f32.mxu1 %vm9811_vm0, %v11514_v62  ;;  %9514 = vrcp.f32 %v2545_v20  ;;  %v11601_v20 = vld [vmem:[#allocation37_spill] sm:$0xff] }
0x131d   :  { %8306 = vmatprep.subr.bf16.mxu1 %v11505_v25 }
0x1320   :  { %8308 = vmatpush3.bf16.msra.mxu1 %v9998_v55 }
0x1321   :  { %8309 = vmatprep.subr.bf16.mxu1 %v11505_v25 }
0x1324   :  { %8311 = vmatpush3.bf16.msra.mxu1 %v10002_v58 }
0x1325   :  { %8312 = vmatprep.subr.bf16.mxu1 %v11505_v25 }
0x1326   :  { %v9515_v23 = vpop.eup %9514 }
0x1327   :  { %v2622_v47 = vsub.f32 1.0, %v9515_v23  ;;  %v11604_v23 = vld [vmem:[#allocation41_spill] sm:$0xff] }
0x1328   :  { %8314 = vmatpush3.bf16.msra.mxu1 %v10006_v61 }
0x1329   :  { %8315 = vmatprep.subr.bf16.mxu1 %v11505_v25  ;;  %v2623_v54 = vmul.f32 0.25, %v2622_v47  ;;  %v11605_v47 = vld [vmem:[#allocation43_spill] sm:$0xff] }
0x132c   :  { %8317 = vmatpush3.bf16.msra.mxu1 %v10010_v2 }
0x132d   :  { %8318 = vmatprep.subr.bf16.mxu1 %v11505_v25 }
0x1330   :  { %8320 = vmatpush3.bf16.msra.mxu1 %v10014_v6 }
0x1331   :  { %8321 = vmatprep.subr.bf16.mxu1 %v11505_v25 }
0x1334   :  { %8323 = vmatpush3.bf16.msra.mxu1 %v10018_v11 }
0x1335   :  { %8324 = vmatprep.subr.bf16.mxu1 %v11505_v25 }
0x1338   :  { %8326 = vmatpush3.bf16.msra.mxu1 %v10022_v14 }
0x1339   :  { %8359 = vmatprep.subr.bf16.mxu1 %v11505_v25 }
0x13ee   :  { %v2617_v5 = vpop.f32.mrb[28].mxu1 }
0x13ef   :  { %9516 = vtanh.f32 %v2617_v5  ;;  %v6765_v28 = vpop.f32.mrb[29].mxu1  ;;  %v11602_v5 = vld [vmem:[#allocation38_spill] sm:$0xff] }
0x13f0   :  { %v11603_v28 = vld [vmem:[#allocation40_spill] sm:$0xff] }
0x13f9   :  { %v9517_v4 = vpop.eup %9516 }
0x13fa   :  { %v2624_v0 = vsub.f32 %v9517_v4, %v2465_v26  ;;  %v11606_v4 = vld [vmem:[#allocation44_spill] sm:$0xff] }
0x13fc   :  { %v2625_v1 = vmul.f32 %v2624_v0, %v2623_v54  ;;  %v11607_v54 = vld [vmem:[#allocation46_spill] sm:$0xff]  ;;  %v11608_v0 = vld [vmem:[#allocation47_spill] sm:$0xff] }
0x13fe   :  { %v10698_v18 = vadd.f32 %v2625_v1, %v2465_v26  ;;  %v2787_v26 = vld [vmem:[#allocation2 + $0x18] sm:$0xff]  ;;  %v11609_v1 = vld [vmem:[#allocation16_spill] sm:$0xff] }
0x1400   :  { %2692 = vmatmul.mubr.f32.vlgmr.msra.gmra.mrb[24].mxu0 %v10698_v18 }
0x1401   :  { %8330 = vmatpush1.bf16.msra.mxu0 %v10121_v50  ;;  %2852 = vmatprep.mubr.f32.mxu0 %v11514_v62 }
0x1402   :  { %8332 = vmatprep.subr.bf16.mxu0 %v10124_v56 }
0x1405   :  { %8334 = vmatpush1.bf16.msra.mxu0 %v10127_v59 }
0x1406   :  { %8336 = vmatprep.subr.bf16.mxu0 %v10130_v63 }
0x1409   :  { %8338 = vmatpush1.bf16.msra.mxu0 %v10133_v7 }
0x140a   :  { %8340 = vmatprep.subr.bf16.mxu0 %v10136_v13 }
0x140d   :  { %8342 = vmatpush1.bf16.msra.mxu0 %v10139_v19 }
0x140e   :  { %8344 = vmatprep.subr.bf16.mxu0 %v10142_v24 }
0x1411   :  { %8346 = vmatpush1.bf16.msra.mxu0 %v10145_v27 }
0x1412   :  { %8348 = vmatprep.subr.bf16.mxu0 %v10148_v33 }
0x1415   :  { %8350 = vmatpush1.bf16.msra.mxu0 %v10151_v38 }
0x1416   :  { %8352 = vmatprep.subr.bf16.mxu0 %v10154_v44 }
0x1419   :  { %8354 = vmatpush1.bf16.msra.mxu0 %v10157_v51 }
0x141a   :  { %8356 = vmatprep.subr.bf16.mxu0 %v10160_v57 }
0x141d   :  { %8358 = vmatpush1.bf16.msra.mxu0 %v10163_v3 }
0x141e   :  { %8384 = vmatprep.subr.bf16.mxu0 %v11529_v17 }
0x1420   :  { %2853 = vmatmul.mubr.f32.vlgmr.msra.gmra.mrb[26].mxu0 %v2787_v26 }
0x1421   :  { %8386 = vmatpush1.bf16.msra.mxu0 %v11594_v32  ;;  %2993 = vmatprep.mubr.f32.mxu0 %v11514_v62 }
0x1422   :  { %8388 = vmatprep.subr.bf16.mxu0 %v11595_v40 }
0x1425   :  { %8390 = vmatpush1.bf16.msra.mxu0 %v11596_v8 }
0x1426   :  { %8392 = vmatprep.subr.bf16.mxu0 %v11597_v60 }
0x1429   :  { %8394 = vmatpush1.bf16.msra.mxu0 %v11598_v45 }
0x142a   :  { %8396 = vmatprep.subr.bf16.mxu0 %v11599_v53 }
0x142d   :  { %8398 = vmatpush1.bf16.msra.mxu0 %v11600_v41 }
0x142e   :  { %8400 = vmatprep.subr.bf16.mxu0 %v11601_v20 }
0x1431   :  { %8402 = vmatpush1.bf16.msra.mxu0 %v11602_v5 }
0x1432   :  { %8404 = vmatprep.subr.bf16.mxu0 %v11603_v28 }
0x1435   :  { %8406 = vmatpush1.bf16.msra.mxu0 %v11604_v23 }
0x1436   :  { %8408 = vmatprep.subr.bf16.mxu0 %v11605_v47  ;;  %v11610_v47 = vld [vmem:[#allocation25_spill] sm:$0xff] }
0x1439   :  { %8410 = vmatpush1.bf16.msra.mxu0 %v11606_v4 }
0x143a   :  { %8412 = vmatprep.subr.bf16.mxu0 %v11607_v54 }
0x143d   :  { %8414 = vmatpush1.bf16.msra.mxu0 %v11608_v0  ;;  %v11611_v0 = vld [vmem:[#allocation26_spill] sm:$0xff] }
0x143e   :  { %8440 = vmatprep.subr.bf16.mxu0 %v11609_v1 }
0x14d3   :  { %v2693_v53 = vpop.f32.mrb[24].mxu0 }
0x14d4   :  { %v5635_v41 = vmul.f32 -1.442695, %v2693_v53  ;;  %v2695_v45 = vpop.f32.mrb[25].mxu0  ;;  %v11612_v53 = vld [vmem:[#allocation27_spill] sm:$0xff] }
0x14d6   :  { %9518 = vpow2.f32 %v5635_v41  ;;  %v11613_v41 = vld [vmem:[#allocation28_spill] sm:$0xff] }
0x14e0   :  { %v9519_v20 = vpop.eup %9518 }
0x14e1   :  { %v2704_v5 = vadd.f32 1.0, %v9519_v20  ;;  %v11614_v20 = vld [vmem:[#allocation29_spill] sm:$0xff] }
0x14e3   :  { %9520 = vrcp.f32 %v2704_v5  ;;  %v11615_v5 = vld [vmem:[#allocation30_spill] sm:$0xff] }
0x14ed   :  { %v9521_v28 = vpop.eup %9520 }
0x14ee   :  { %v2710_v23 = vmul.f32 %v9521_v28, %v10698_v18  ;;  %v11616_v28 = vld [vmem:[#allocation31_spill] sm:$0xff] }
0x14f0   :  { %6799 = vmatmul.mubr.f32.vlgmr.msra.gmra.mrb[30].mxu1 %v2710_v23  ;;  %v11617_v23 = vld [vmem:[#allocation32_spill] sm:$0xff] }
0x14f1   :  { %8361 = vmatpush3.bf16.msra.mxu1 %v11610_v47  ;;  %6833 = vmatprep.mubr.msk.f32.mxu1 %vm9811_vm0, %v11514_v62 }
0x14f2   :  { %8362 = vmatprep.subr.bf16.mxu1 %v11505_v25 }
0x14f5   :  { %8364 = vmatpush3.bf16.msra.mxu1 %v11611_v0 }
0x14f6   :  { %8365 = vmatprep.subr.bf16.mxu1 %v11505_v25 }
0x14f9   :  { %8367 = vmatpush3.bf16.msra.mxu1 %v11612_v53 }
0x14fa   :  { %8368 = vmatprep.subr.bf16.mxu1 %v11505_v25 }
0x14fd   :  { %8370 = vmatpush3.bf16.msra.mxu1 %v11613_v41  ;;  %v11618_v41 = vld [vmem:[#allocation33_spill] sm:$0xff] }
0x14fe   :  { %8371 = vmatprep.subr.bf16.mxu1 %v11505_v25 }
0x1501   :  { %8373 = vmatpush3.bf16.msra.mxu1 %v11614_v20  ;;  %v11619_v20 = vld [vmem:[#allocation34_spill] sm:$0xff] }
0x1502   :  { %8374 = vmatprep.subr.bf16.mxu1 %v11505_v25 }
0x1505   :  { %8376 = vmatpush3.bf16.msra.mxu1 %v11615_v5  ;;  %v11620_v5 = vld [vmem:[#allocation35_spill] sm:$0xff] }
0x1506   :  { %8377 = vmatprep.subr.bf16.mxu1 %v11505_v25 }
0x1509   :  { %8379 = vmatpush3.bf16.msra.mxu1 %v11616_v28  ;;  %v11621_v28 = vld [vmem:[#allocation36_spill] sm:$0xff] }
0x150a   :  { %8380 = vmatprep.subr.bf16.mxu1 %v11505_v25 }
0x150d   :  { %8382 = vmatpush3.bf16.msra.mxu1 %v11617_v23  ;;  %v11624_v23 = vld [vmem:[#allocation45_spill] sm:$0xff] }
0x150e   :  { %8415 = vmatprep.subr.bf16.mxu1 %v11505_v25 }
0x1510   :  { %6834 = vmatmul.mubr.f32.vlgmr.msra.gmra.mrb[32].mxu1 %v2787_v26  ;;  %v11622_v26 = vld [vmem:[#allocation39_spill] sm:$0xff] }
0x1511   :  { %8417 = vmatpush3.bf16.msra.mxu1 %v11618_v41  ;;  %6868 = vmatprep.mubr.msk.f32.mxu1 %vm9811_vm0, %v11514_v62  ;;  %v11623_v41 = vld [vmem:[#allocation42_spill] sm:$0xff] }
0x1512   :  { %8418 = vmatprep.subr.bf16.mxu1 %v11505_v25 }
0x1515   :  { %8420 = vmatpush3.bf16.msra.mxu1 %v11619_v20  ;;  %v11625_v20 = vld [vmem:[#allocation48_spill] sm:$0xff] }
0x1516   :  { %8421 = vmatprep.subr.bf16.mxu1 %v11505_v25 }
0x1519   :  { %8423 = vmatpush3.bf16.msra.mxu1 %v11620_v5  ;;  %v5636_v5 = vmul.f32 -1.442695, %v2695_v45 }
0x151a   :  { %8424 = vmatprep.subr.bf16.mxu1 %v11505_v25 }
0x151b   :  { %9522 = vpow2.f32 %v5636_v5 }
0x151d   :  { %8426 = vmatpush3.bf16.msra.mxu1 %v11621_v28 }
0x151e   :  { %8427 = vmatprep.subr.bf16.mxu1 %v11505_v25 }
0x1521   :  { %8429 = vmatpush3.bf16.msra.mxu1 %v11622_v26 }
0x1522   :  { %8430 = vmatprep.subr.bf16.mxu1 %v11505_v25 }
0x1525   :  { %8432 = vmatpush3.bf16.msra.mxu1 %v11623_v41  ;;  %v9523_v28 = vpop.eup %9522 }
0x1526   :  { %8433 = vmatprep.subr.bf16.mxu1 %v11505_v25  ;;  %v2705_v53 = vadd.f32 1.0, %v9523_v28 }
0x1528   :  { %9524 = vrcp.f32 %v2705_v53 }
0x1529   :  { %8435 = vmatpush3.bf16.msra.mxu1 %v11624_v23 }
0x152a   :  { %8436 = vmatprep.subr.bf16.mxu1 %v11505_v25 }
0x152d   :  { %8438 = vmatpush3.bf16.msra.mxu1 %v11625_v20 }
0x152e   :  { %8471 = vmatprep.subr.bf16.mxu1 %v11505_v25 }
0x1532   :  { %v9525_v47 = vpop.eup %9524 }
0x1533   :  { %v2782_v41 = vsub.f32 1.0, %v9525_v47 }
0x1535   :  { %v2783_v4 = vmul.f32 0.25, %v2782_v41 }
0x15c3   :  { %v2777_v26 = vpop.f32.mrb[30].mxu1 }
0x15c4   :  { %9526 = vtanh.f32 %v2777_v26  ;;  %v6800_v0 = vpop.f32.mrb[31].mxu1 }
0x15ce   :  { %v9527_v54 = vpop.eup %9526 }
0x15cf   :  { %v2784_v23 = vsub.f32 %v9527_v54, %v10698_v18 }
0x15d1   :  { %v2785_v60 = vmul.f32 %v2784_v23, %v2783_v4 }
0x15d3   :  { %v10774_v8 = vadd.f32 %v2785_v60, %v10698_v18 }
0x15d5   :  { %2994 = vmatmul.mubr.f32.vlgmr.msra.gmra.mrb[26].mxu0 %v10774_v8  ;;  %6869 = vmatmul.mubr.f32.vlgmr.msra.gmra.mrb[34].mxu1 %v10774_v8 }
0x15d6   :  { %8442 = vmatpush1.bf16.msra.mxu0 %v9929_v9  ;;  %3156 = vmatprep.mubr.f32.mxu0 %v11514_v62 }
0x15d7   :  { %8444 = vmatprep.subr.bf16.mxu0 %v9931_v10  ;;  %8473 = vmatpush3.bf16.msra.mxu1 %v9949_v30 }
0x15d8   :  { %8474 = vmatprep.subr.bf16.mxu1 %v11505_v25  ;;  %6903 = vmatprep.mubr.msk.f32.mxu1 %vm9811_vm0, %v11514_v62 }
0x15da   :  { %8446 = vmatpush1.bf16.msra.mxu0 %v9935_v15 }
0x15db   :  { %8448 = vmatprep.subr.bf16.mxu0 %v9938_v16  ;;  %8476 = vmatpush3.bf16.msra.mxu1 %v9998_v55 }
0x15dc   :  { %8477 = vmatprep.subr.bf16.mxu1 %v11505_v25 }
0x15de   :  { %8450 = vmatpush1.bf16.msra.mxu0 %v9941_v21 }
0x15df   :  { %8452 = vmatprep.subr.bf16.mxu0 %v9944_v22  ;;  %8479 = vmatpush3.bf16.msra.mxu1 %v10002_v58 }
0x15e0   :  { %8480 = vmatprep.subr.bf16.mxu1 %v11505_v25 }
0x15e2   :  { %8454 = vmatpush1.bf16.msra.mxu0 %v9947_v29 }
0x15e3   :  { %v2925_v18 = vpop.f32.mrb[32].mxu1  ;;  %8456 = vmatprep.subr.bf16.mxu0 %v9952_v31  ;;  %8482 = vmatpush3.bf16.msra.mxu1 %v10006_v61 }
0x15e4   :  { %v6835_v60 = vpop.f32.mrb[33].mxu1  ;;  %8483 = vmatprep.subr.bf16.mxu1 %v11505_v25  ;;  %v2926_v40 = vadd.f32 %v2925_v18, %v10348_v12 }
0x15e6   :  { %8458 = vmatpush1.bf16.msra.mxu0 %v9957_v36 }
0x15e7   :  { %8460 = vmatprep.subr.bf16.mxu0 %v9960_v37  ;;  %8485 = vmatpush3.bf16.msra.mxu1 %v10010_v2 }
0x15e8   :  { %8486 = vmatprep.subr.bf16.mxu1 %v11505_v25 }
0x15ea   :  { %8462 = vmatpush1.bf16.msra.mxu0 %v9963_v42 }
0x15eb   :  { %8464 = vmatprep.subr.bf16.mxu0 %v9966_v43  ;;  %8488 = vmatpush3.bf16.msra.mxu1 %v10014_v6 }
0x15ec   :  { %8489 = vmatprep.subr.bf16.mxu1 %v11505_v25 }
0x15ee   :  { %8466 = vmatpush1.bf16.msra.mxu0 %v9969_v48 }
0x15ef   :  { %8468 = vmatprep.subr.bf16.mxu0 %v9972_v49  ;;  %8491 = vmatpush3.bf16.msra.mxu1 %v10018_v11 }
0x15f0   :  { %8492 = vmatprep.subr.bf16.mxu1 %v11505_v25 }
0x15f2   :  { %8470 = vmatpush1.bf16.msra.mxu0 %v9975_v52 }
0x15f3   :  { %8494 = vmatpush3.bf16.msra.mxu1 %v10022_v14  ;;  %8496 = vmatprep.subr.bf16.mxu0 %v11609_v1 }
0x15f4   :  { %8527 = vmatprep.subr.bf16.mxu1 %v11505_v25 }
0x16a8   :  { %v2995_v45 = vpop.f32.mrb[26].mxu0  ;;  %v3066_v47 = vpop.f32.mrb[34].mxu1 }
0x16a9   :  { %v9348_v4 = vadd.f32 %v10340_v39, %v2995_v45  ;;  %v2997_v54 = vpop.f32.mrb[27].mxu0  ;;  %v6870_v0 = vpop.f32.mrb[35].mxu1  ;;  %v3067_v20 = vadd.f32 %v3066_v47, %v10346_v34 }
0x16aa   :  { %v9350_v41 = vadd.f32 %v10342_v35, %v2997_v54 }
0x16ab   :  { %v5637_v53 = vmul.f32 -1.442695, %v9348_v4 }
0x16ac   :  { %v5638_v5 = vmul.f32 -1.442695, %v9350_v41 }
0x16ad   :  { %9528 = vpow2.f32 %v5637_v53 }
0x16ae   :  { %9530 = vpow2.f32 %v5638_v5 }
0x16b7   :  { %v9529_v28 = vpop.eup %9528 }
0x16b8   :  { %v3074_v23 = vadd.f32 1.0, %v9529_v28  ;;  %v9531_v26 = vpop.eup %9530 }
0x16b9   :  { %v3081_v60 = vadd.f32 1.0, %v9531_v26 }
0x16ba   :  { %9532 = vrcp.f32 %v3074_v23 }
0x16bb   :  { %9534 = vrcp.f32 %v3081_v60 }
0x16c4   :  { %v9533_v1 = vpop.eup %9532 }
0x16c5   :  { %v3084_v32 = vmul.f32 %v9533_v1, %v3067_v20  ;;  %v9535_v4 = vpop.eup %9534 }
0x16c6   :  { %v3087_v0 = vsub.f32 1.0, %v9535_v4  ;;  %v3089_v41 = vmul.f32 %v9535_v4, %v10774_v8 }
0x16c7   :  { %v3085_v45 = vadd.f32 %v3084_v32, %v2926_v40 }
0x16c9   :  { %9536 = vtanh.f32 %v3085_v45 }
0x16d3   :  { %v9537_v54 = vpop.eup %9536 }
0x16d4   :  { %v3088_v53 = vmul.f32 %v9537_v54, %v3087_v0 }
0x16d6   :  { %v3090_v5 = vadd.f32 %v3089_v41, %v3088_v53 }
0x16d8   :  { %3157 = vmatmul.mubr.f32.vlgmr.msra.gmra.mrb[28].mxu0 %v3090_v5  ;;  %3091 = vst [vmem:[#allocation11 + $0x18] sm:$0xff] %v3090_v5 }
0x16d9   :  { %8498 = vmatpush1.bf16.msra.mxu0 %v9929_v9  ;;  %3316 = vmatprep.mubr.f32.mxu0 %v11514_v62 }
0x16da   :  { %8500 = vmatprep.subr.bf16.mxu0 %v9931_v10 }
0x16dd   :  { %8502 = vmatpush1.bf16.msra.mxu0 %v9935_v15 }
0x16de   :  { %8504 = vmatprep.subr.bf16.mxu0 %v9938_v16 }
0x16e1   :  { %8506 = vmatpush1.bf16.msra.mxu0 %v9941_v21 }
0x16e2   :  { %8508 = vmatprep.subr.bf16.mxu0 %v9944_v22 }
0x16e5   :  { %8510 = vmatpush1.bf16.msra.mxu0 %v9947_v29 }
0x16e6   :  { %8512 = vmatprep.subr.bf16.mxu0 %v9952_v31 }
0x16e9   :  { %8514 = vmatpush1.bf16.msra.mxu0 %v9957_v36 }
0x16ea   :  { %8516 = vmatprep.subr.bf16.mxu0 %v9960_v37 }
0x16ed   :  { %8518 = vmatpush1.bf16.msra.mxu0 %v9963_v42 }
0x16ee   :  { %8520 = vmatprep.subr.bf16.mxu0 %v9966_v43 }
0x16f1   :  { %8522 = vmatpush1.bf16.msra.mxu0 %v9969_v48 }
0x16f2   :  { %8524 = vmatprep.subr.bf16.mxu0 %v9972_v49 }
0x16f5   :  { %8526 = vmatpush1.bf16.msra.mxu0 %v9975_v52 }
0x16f6   :  { %8552 = vmatprep.subr.bf16.mxu0 %v10119_v46 }
0x17ab   :  { %v3158_v32 = vpop.f32.mrb[28].mxu0 }
0x17ac   :  { %v5639_v40 = vmul.f32 -1.442695, %v3158_v32  ;;  %v3160_v8 = vpop.f32.mrb[29].mxu0 }
0x17ad   :  { %v5640_v28 = vmul.f32 -1.442695, %v3160_v8  ;;  %v11626_v8 = vld [vmem:[#allocation18_spill] sm:$0xff] }
0x17ae   :  { %9538 = vpow2.f32 %v5639_v40 }
0x17b8   :  { %v9539_v1 = vpop.eup %9538 }
0x17b9   :  { %v3169_v20 = vadd.f32 1.0, %v9539_v1  ;;  %v11627_v1 = vld [vmem:[#allocation19_spill] sm:$0xff] }
0x17bb   :  { %9540 = vrcp.f32 %v3169_v20  ;;  %v11628_v20 = vld [vmem:[#allocation20_spill] sm:$0xff] }
0x17bc   :  { %9542 = vpow2.f32 %v5640_v28  ;;  %v11631_v28 = vld [vmem:[#allocation23_spill] sm:$0xff] }
0x17c5   :  { %v9541_v18 = vpop.eup %9540 }
0x17c6   :  { %v3175_v47 = vmul.f32 %v9541_v18, %v3090_v5  ;;  %v9543_v23 = vpop.eup %9542  ;;  %v11629_v18 = vld [vmem:[#allocation21_spill] sm:$0xff] }
0x17c7   :  { %v3170_v26 = vadd.f32 1.0, %v9543_v23  ;;  %v11632_v23 = vld [vmem:[#allocation24_spill] sm:$0xff] }
0x17c8   :  { %6904 = vmatmul.mubr.f32.vlgmr.msra.gmra.mrb[36].mxu1 %v3175_v47  ;;  %v11630_v47 = vld [vmem:[#allocation22_spill] sm:$0xff] }
0x17c9   :  { %8529 = vmatpush3.bf16.msra.mxu1 %v9949_v30  ;;  %6938 = vmatprep.mubr.msk.f32.mxu1 %vm9811_vm0, %v11514_v62  ;;  %9544 = vrcp.f32 %v3170_v26  ;;  %v11633_v26 = vld [vmem:[#allocation37_spill] sm:$0xff] }
0x17ca   :  { %8530 = vmatprep.subr.bf16.mxu1 %v11505_v25 }
0x17cd   :  { %8532 = vmatpush3.bf16.msra.mxu1 %v9998_v55 }
0x17ce   :  { %8533 = vmatprep.subr.bf16.mxu1 %v11505_v25 }
0x17d1   :  { %8535 = vmatpush3.bf16.msra.mxu1 %v10002_v58 }
0x17d2   :  { %8536 = vmatprep.subr.bf16.mxu1 %v11505_v25 }
0x17d3   :  { %v9545_v4 = vpop.eup %9544 }
0x17d4   :  { %v3247_v0 = vsub.f32 1.0, %v9545_v4  ;;  %v11636_v4 = vld [vmem:[#allocation41_spill] sm:$0xff] }
0x17d5   :  { %8538 = vmatpush3.bf16.msra.mxu1 %v10006_v61 }
0x17d6   :  { %8539 = vmatprep.subr.bf16.mxu1 %v11505_v25  ;;  %v3248_v53 = vmul.f32 0.25, %v3247_v0  ;;  %v11637_v0 = vld [vmem:[#allocation43_spill] sm:$0xff] }
0x17d9   :  { %8541 = vmatpush3.bf16.msra.mxu1 %v10010_v2 }
0x17da   :  { %8542 = vmatprep.subr.bf16.mxu1 %v11505_v25 }
0x17dd   :  { %8544 = vmatpush3.bf16.msra.mxu1 %v10014_v6 }
0x17de   :  { %8545 = vmatprep.subr.bf16.mxu1 %v11505_v25 }
0x17e1   :  { %8547 = vmatpush3.bf16.msra.mxu1 %v10018_v11 }
0x17e2   :  { %8548 = vmatprep.subr.bf16.mxu1 %v11505_v25 }
0x17e5   :  { %8550 = vmatpush3.bf16.msra.mxu1 %v10022_v14 }
0x17e6   :  { %8583 = vmatprep.subr.bf16.mxu1 %v11505_v25 }
0x189b   :  { %v3242_v60 = vpop.f32.mrb[36].mxu1 }
0x189c   :  { %9546 = vtanh.f32 %v3242_v60  ;;  %v6905_v45 = vpop.f32.mrb[37].mxu1  ;;  %v11634_v60 = vld [vmem:[#allocation38_spill] sm:$0xff] }
0x189d   :  { %v11635_v45 = vld [vmem:[#allocation40_spill] sm:$0xff] }
0x18a6   :  { %v9547_v54 = vpop.eup %9546 }
0x18a7   :  { %v3249_v41 = vsub.f32 %v9547_v54, %v3090_v5  ;;  %v11638_v54 = vld [vmem:[#allocation44_spill] sm:$0xff] }
0x18a9   :  { %v3250_v32 = vmul.f32 %v3249_v41, %v3248_v53  ;;  %v11639_v53 = vld [vmem:[#allocation46_spill] sm:$0xff]  ;;  %v11640_v41 = vld [vmem:[#allocation47_spill] sm:$0xff] }
0x18ab   :  { %v10853_v40 = vadd.f32 %v3250_v32, %v3090_v5  ;;  %v3412_v5 = vld [vmem:[#allocation2 + $0x20] sm:$0xff] }
0x18ac   :  { %v11641_v32 = vld [vmem:[#allocation16_spill] sm:$0xff] }
0x18ad   :  { %3317 = vmatmul.mubr.f32.vlgmr.msra.gmra.mrb[30].mxu0 %v10853_v40 }
0x18ae   :  { %8554 = vmatpush1.bf16.msra.mxu0 %v10121_v50  ;;  %3477 = vmatprep.mubr.f32.mxu0 %v11514_v62 }
0x18af   :  { %8556 = vmatprep.subr.bf16.mxu0 %v10124_v56 }
0x18b2   :  { %8558 = vmatpush1.bf16.msra.mxu0 %v10127_v59 }
0x18b3   :  { %8560 = vmatprep.subr.bf16.mxu0 %v10130_v63 }
0x18b6   :  { %8562 = vmatpush1.bf16.msra.mxu0 %v10133_v7 }
0x18b7   :  { %8564 = vmatprep.subr.bf16.mxu0 %v10136_v13 }
0x18ba   :  { %8566 = vmatpush1.bf16.msra.mxu0 %v10139_v19 }
0x18bb   :  { %8568 = vmatprep.subr.bf16.mxu0 %v10142_v24 }
0x18be   :  { %8570 = vmatpush1.bf16.msra.mxu0 %v10145_v27 }
0x18bf   :  { %8572 = vmatprep.subr.bf16.mxu0 %v10148_v33 }
0x18c2   :  { %8574 = vmatpush1.bf16.msra.mxu0 %v10151_v38 }
0x18c3   :  { %8576 = vmatprep.subr.bf16.mxu0 %v10154_v44 }
0x18c6   :  { %8578 = vmatpush1.bf16.msra.mxu0 %v10157_v51 }
0x18c7   :  { %8580 = vmatprep.subr.bf16.mxu0 %v10160_v57 }
0x18ca   :  { %8582 = vmatpush1.bf16.msra.mxu0 %v10163_v3 }
0x18cb   :  { %8608 = vmatprep.subr.bf16.mxu0 %v11529_v17 }
0x18cd   :  { %3478 = vmatmul.mubr.f32.vlgmr.msra.gmra.mrb[32].mxu0 %v3412_v5 }
0x18ce   :  { %8610 = vmatpush1.bf16.msra.mxu0 %v11626_v8  ;;  %3618 = vmatprep.mubr.f32.mxu0 %v11514_v62 }
0x18cf   :  { %8612 = vmatprep.subr.bf16.mxu0 %v11627_v1 }
0x18d2   :  { %8614 = vmatpush1.bf16.msra.mxu0 %v11628_v20 }
0x18d3   :  { %8616 = vmatprep.subr.bf16.mxu0 %v11629_v18 }
0x18d6   :  { %8618 = vmatpush1.bf16.msra.mxu0 %v11630_v47 }
0x18d7   :  { %8620 = vmatprep.subr.bf16.mxu0 %v11631_v28 }
0x18da   :  { %8622 = vmatpush1.bf16.msra.mxu0 %v11632_v23 }
0x18db   :  { %8624 = vmatprep.subr.bf16.mxu0 %v11633_v26 }
0x18de   :  { %8626 = vmatpush1.bf16.msra.mxu0 %v11634_v60 }
0x18df   :  { %8628 = vmatprep.subr.bf16.mxu0 %v11635_v45 }
0x18e2   :  { %8630 = vmatpush1.bf16.msra.mxu0 %v11636_v4 }
0x18e3   :  { %8632 = vmatprep.subr.bf16.mxu0 %v11637_v0  ;;  %v11642_v0 = vld [vmem:[#allocation25_spill] sm:$0xff] }
0x18e6   :  { %8634 = vmatpush1.bf16.msra.mxu0 %v11638_v54 }
0x18e7   :  { %8636 = vmatprep.subr.bf16.mxu0 %v11639_v53 }
0x18ea   :  { %8638 = vmatpush1.bf16.msra.mxu0 %v11640_v41  ;;  %v11643_v41 = vld [vmem:[#allocation26_spill] sm:$0xff] }
0x18eb   :  { %8664 = vmatprep.subr.bf16.mxu0 %v11641_v32 }
0x1980   :  { %v3318_v28 = vpop.f32.mrb[30].mxu0 }
0x1981   :  { %v5641_v23 = vmul.f32 -1.442695, %v3318_v28  ;;  %v3320_v47 = vpop.f32.mrb[31].mxu0  ;;  %v11644_v28 = vld [vmem:[#allocation27_spill] sm:$0xff] }
0x1983   :  { %9548 = vpow2.f32 %v5641_v23  ;;  %v11645_v23 = vld [vmem:[#allocation28_spill] sm:$0xff] }
0x198d   :  { %v9549_v26 = vpop.eup %9548 }
0x198e   :  { %v3329_v60 = vadd.f32 1.0, %v9549_v26  ;;  %v11646_v26 = vld [vmem:[#allocation29_spill] sm:$0xff] }
0x1990   :  { %9550 = vrcp.f32 %v3329_v60  ;;  %v11647_v60 = vld [vmem:[#allocation30_spill] sm:$0xff] }
0x199a   :  { %v9551_v45 = vpop.eup %9550 }
0x199b   :  { %v3335_v4 = vmul.f32 %v9551_v45, %v10853_v40  ;;  %v11648_v45 = vld [vmem:[#allocation31_spill] sm:$0xff] }
0x199d   :  { %6939 = vmatmul.mubr.f32.vlgmr.msra.gmra.mrb[38].mxu1 %v3335_v4  ;;  %v11649_v4 = vld [vmem:[#allocation32_spill] sm:$0xff] }
0x199e   :  { %8585 = vmatpush3.bf16.msra.mxu1 %v11642_v0  ;;  %6973 = vmatprep.mubr.msk.f32.mxu1 %vm9811_vm0, %v11514_v62 }
0x199f   :  { %8586 = vmatprep.subr.bf16.mxu1 %v11505_v25 }
0x19a2   :  { %8588 = vmatpush3.bf16.msra.mxu1 %v11643_v41 }
0x19a3   :  { %8589 = vmatprep.subr.bf16.mxu1 %v11505_v25 }
0x19a6   :  { %8591 = vmatpush3.bf16.msra.mxu1 %v11644_v28 }
0x19a7   :  { %8592 = vmatprep.subr.bf16.mxu1 %v11505_v25 }
0x19aa   :  { %8594 = vmatpush3.bf16.msra.mxu1 %v11645_v23  ;;  %v11650_v23 = vld [vmem:[#allocation33_spill] sm:$0xff] }
0x19ab   :  { %8595 = vmatprep.subr.bf16.mxu1 %v11505_v25 }
0x19ae   :  { %8597 = vmatpush3.bf16.msra.mxu1 %v11646_v26  ;;  %v11651_v26 = vld [vmem:[#allocation34_spill] sm:$0xff] }
0x19af   :  { %8598 = vmatprep.subr.bf16.mxu1 %v11505_v25 }
0x19b2   :  { %8600 = vmatpush3.bf16.msra.mxu1 %v11647_v60  ;;  %v11652_v60 = vld [vmem:[#allocation35_spill] sm:$0xff] }
0x19b3   :  { %8601 = vmatprep.subr.bf16.mxu1 %v11505_v25 }
0x19b6   :  { %8603 = vmatpush3.bf16.msra.mxu1 %v11648_v45  ;;  %v11653_v45 = vld [vmem:[#allocation36_spill] sm:$0xff] }
0x19b7   :  { %8604 = vmatprep.subr.bf16.mxu1 %v11505_v25 }
0x19ba   :  { %8606 = vmatpush3.bf16.msra.mxu1 %v11649_v4  ;;  %v11656_v4 = vld [vmem:[#allocation45_spill] sm:$0xff] }
0x19bb   :  { %8639 = vmatprep.subr.bf16.mxu1 %v11505_v25 }
0x19bd   :  { %6974 = vmatmul.mubr.f32.vlgmr.msra.gmra.mrb[40].mxu1 %v3412_v5  ;;  %v11654_v5 = vld [vmem:[#allocation39_spill] sm:$0xff] }
0x19be   :  { %8641 = vmatpush3.bf16.msra.mxu1 %v11650_v23  ;;  %7008 = vmatprep.mubr.msk.f32.mxu1 %vm9811_vm0, %v11514_v62  ;;  %v11655_v23 = vld [vmem:[#allocation42_spill] sm:$0xff] }
0x19bf   :  { %8642 = vmatprep.subr.bf16.mxu1 %v11505_v25 }
0x19c2   :  { %8644 = vmatpush3.bf16.msra.mxu1 %v11651_v26  ;;  %v11657_v26 = vld [vmem:[#allocation48_spill] sm:$0xff] }
0x19c3   :  { %8645 = vmatprep.subr.bf16.mxu1 %v11505_v25 }
0x19c6   :  { %8647 = vmatpush3.bf16.msra.mxu1 %v11652_v60  ;;  %v5642_v60 = vmul.f32 -1.442695, %v3320_v47 }
0x19c7   :  { %8648 = vmatprep.subr.bf16.mxu1 %v11505_v25 }
0x19c8   :  { %9552 = vpow2.f32 %v5642_v60 }
0x19ca   :  { %8650 = vmatpush3.bf16.msra.mxu1 %v11653_v45 }
0x19cb   :  { %8651 = vmatprep.subr.bf16.mxu1 %v11505_v25 }
0x19ce   :  { %8653 = vmatpush3.bf16.msra.mxu1 %v11654_v5 }
0x19cf   :  { %8654 = vmatprep.subr.bf16.mxu1 %v11505_v25 }
0x19d2   :  { %8656 = vmatpush3.bf16.msra.mxu1 %v11655_v23  ;;  %v9553_v45 = vpop.eup %9552 }
0x19d3   :  { %8657 = vmatprep.subr.bf16.mxu1 %v11505_v25  ;;  %v3330_v28 = vadd.f32 1.0, %v9553_v45 }
0x19d5   :  { %9554 = vrcp.f32 %v3330_v28 }
0x19d6   :  { %8659 = vmatpush3.bf16.msra.mxu1 %v11656_v4 }
0x19d7   :  { %8660 = vmatprep.subr.bf16.mxu1 %v11505_v25 }
0x19da   :  { %8662 = vmatpush3.bf16.msra.mxu1 %v11657_v26 }
0x19db   :  { %8695 = vmatprep.subr.bf16.mxu1 %v11505_v25 }
0x19df   :  { %v9555_v0 = vpop.eup %9554 }
0x19e0   :  { %v3407_v23 = vsub.f32 1.0, %v9555_v0 }
0x19e2   :  { %v3408_v54 = vmul.f32 0.25, %v3407_v23 }
0x1a70   :  { %v3402_v5 = vpop.f32.mrb[38].mxu1 }
0x1a71   :  { %9556 = vtanh.f32 %v3402_v5  ;;  %v6940_v41 = vpop.f32.mrb[39].mxu1 }
0x1a7b   :  { %v9557_v53 = vpop.eup %9556 }
0x1a7c   :  { %v3409_v4 = vsub.f32 %v9557_v53, %v10853_v40 }
0x1a7e   :  { %v3410_v18 = vmul.f32 %v3409_v4, %v3408_v54 }
0x1a80   :  { %v10929_v20 = vadd.f32 %v3410_v18, %v10853_v40 }
0x1a82   :  { %3619 = vmatmul.mubr.f32.vlgmr.msra.gmra.mrb[32].mxu0 %v10929_v20  ;;  %7009 = vmatmul.mubr.f32.vlgmr.msra.gmra.mrb[42].mxu1 %v10929_v20 }
0x1a83   :  { %8666 = vmatpush1.bf16.msra.mxu0 %v9929_v9  ;;  %3781 = vmatprep.mubr.f32.mxu0 %v11514_v62 }
0x1a84   :  { %8668 = vmatprep.subr.bf16.mxu0 %v9931_v10  ;;  %8697 = vmatpush3.bf16.msra.mxu1 %v9949_v30 }
0x1a85   :  { %8698 = vmatprep.subr.bf16.mxu1 %v11505_v25  ;;  %7043 = vmatprep.mubr.msk.f32.mxu1 %vm9811_vm0, %v11514_v62 }
0x1a87   :  { %8670 = vmatpush1.bf16.msra.mxu0 %v9935_v15 }
0x1a88   :  { %8672 = vmatprep.subr.bf16.mxu0 %v9938_v16  ;;  %8700 = vmatpush3.bf16.msra.mxu1 %v9998_v55 }
0x1a89   :  { %8701 = vmatprep.subr.bf16.mxu1 %v11505_v25 }
0x1a8b   :  { %8674 = vmatpush1.bf16.msra.mxu0 %v9941_v21 }
0x1a8c   :  { %8676 = vmatprep.subr.bf16.mxu0 %v9944_v22  ;;  %8703 = vmatpush3.bf16.msra.mxu1 %v10002_v58 }
0x1a8d   :  { %8704 = vmatprep.subr.bf16.mxu1 %v11505_v25 }
0x1a8f   :  { %8678 = vmatpush1.bf16.msra.mxu0 %v9947_v29 }
0x1a90   :  { %v3550_v40 = vpop.f32.mrb[40].mxu1  ;;  %8680 = vmatprep.subr.bf16.mxu0 %v9952_v31  ;;  %8706 = vmatpush3.bf16.msra.mxu1 %v10006_v61 }
0x1a91   :  { %v6975_v18 = vpop.f32.mrb[41].mxu1  ;;  %8707 = vmatprep.subr.bf16.mxu1 %v11505_v25  ;;  %v3551_v1 = vadd.f32 %v3550_v40, %v10348_v12 }
0x1a93   :  { %8682 = vmatpush1.bf16.msra.mxu0 %v9957_v36 }
0x1a94   :  { %8684 = vmatprep.subr.bf16.mxu0 %v9960_v37  ;;  %8709 = vmatpush3.bf16.msra.mxu1 %v10010_v2 }
0x1a95   :  { %8710 = vmatprep.subr.bf16.mxu1 %v11505_v25 }
0x1a97   :  { %8686 = vmatpush1.bf16.msra.mxu0 %v9963_v42 }
0x1a98   :  { %8688 = vmatprep.subr.bf16.mxu0 %v9966_v43  ;;  %8712 = vmatpush3.bf16.msra.mxu1 %v10014_v6 }
0x1a99   :  { %8713 = vmatprep.subr.bf16.mxu1 %v11505_v25 }
0x1a9b   :  { %8690 = vmatpush1.bf16.msra.mxu0 %v9969_v48 }
0x1a9c   :  { %8692 = vmatprep.subr.bf16.mxu0 %v9972_v49  ;;  %8715 = vmatpush3.bf16.msra.mxu1 %v10018_v11 }
0x1a9d   :  { %8716 = vmatprep.subr.bf16.mxu1 %v11505_v25 }
0x1a9f   :  { %8694 = vmatpush1.bf16.msra.mxu0 %v9975_v52 }
0x1aa0   :  { %8718 = vmatpush3.bf16.msra.mxu1 %v10022_v14  ;;  %8720 = vmatprep.subr.bf16.mxu0 %v11641_v32 }
0x1aa1   :  { %8751 = vmatprep.subr.bf16.mxu1 %v11505_v25 }
0x1b55   :  { %v3620_v47 = vpop.f32.mrb[32].mxu0  ;;  %v3691_v0 = vpop.f32.mrb[42].mxu1 }
0x1b56   :  { %v9352_v54 = vadd.f32 %v10340_v39, %v3620_v47  ;;  %v3622_v53 = vpop.f32.mrb[33].mxu0  ;;  %v7010_v41 = vpop.f32.mrb[43].mxu1  ;;  %v3692_v26 = vadd.f32 %v3691_v0, %v10346_v34 }
0x1b57   :  { %v9354_v23 = vadd.f32 %v10342_v35, %v3622_v53 }
0x1b58   :  { %v5643_v28 = vmul.f32 -1.442695, %v9352_v54 }
0x1b59   :  { %v5644_v60 = vmul.f32 -1.442695, %v9354_v23 }
0x1b5a   :  { %9558 = vpow2.f32 %v5643_v28 }
0x1b5b   :  { %9560 = vpow2.f32 %v5644_v60 }
0x1b64   :  { %v9559_v45 = vpop.eup %9558 }
0x1b65   :  { %v3699_v4 = vadd.f32 1.0, %v9559_v45  ;;  %v9561_v5 = vpop.eup %9560 }
0x1b66   :  { %v3706_v18 = vadd.f32 1.0, %v9561_v5 }
0x1b67   :  { %9562 = vrcp.f32 %v3699_v4 }
0x1b68   :  { %9564 = vrcp.f32 %v3706_v18 }
0x1b71   :  { %v9563_v32 = vpop.eup %9562 }
0x1b72   :  { %v3709_v8 = vmul.f32 %v9563_v32, %v3692_v26  ;;  %v9565_v54 = vpop.eup %9564 }
0x1b73   :  { %v3712_v41 = vsub.f32 1.0, %v9565_v54  ;;  %v3714_v23 = vmul.f32 %v9565_v54, %v10929_v20 }
0x1b74   :  { %v3710_v47 = vadd.f32 %v3709_v8, %v3551_v1 }
0x1b76   :  { %9566 = vtanh.f32 %v3710_v47 }
0x1b80   :  { %v9567_v53 = vpop.eup %9566 }
0x1b81   :  { %v3713_v28 = vmul.f32 %v9567_v53, %v3712_v41 }
0x1b83   :  { %v3715_v60 = vadd.f32 %v3714_v23, %v3713_v28 }
0x1b85   :  { %3782 = vmatmul.mubr.f32.vlgmr.msra.gmra.mrb[34].mxu0 %v3715_v60  ;;  %3716 = vst [vmem:[#allocation11 + $0x20] sm:$0xff] %v3715_v60 }
0x1b86   :  { %8722 = vmatpush1.bf16.msra.mxu0 %v9929_v9  ;;  %3941 = vmatprep.mubr.f32.mxu0 %v11514_v62 }
0x1b87   :  { %8724 = vmatprep.subr.bf16.mxu0 %v9931_v10 }
0x1b8a   :  { %8726 = vmatpush1.bf16.msra.mxu0 %v9935_v15 }
0x1b8b   :  { %8728 = vmatprep.subr.bf16.mxu0 %v9938_v16 }
0x1b8e   :  { %8730 = vmatpush1.bf16.msra.mxu0 %v9941_v21 }
0x1b8f   :  { %8732 = vmatprep.subr.bf16.mxu0 %v9944_v22 }
0x1b92   :  { %8734 = vmatpush1.bf16.msra.mxu0 %v9947_v29 }
0x1b93   :  { %8736 = vmatprep.subr.bf16.mxu0 %v9952_v31 }
0x1b96   :  { %8738 = vmatpush1.bf16.msra.mxu0 %v9957_v36 }
0x1b97   :  { %8740 = vmatprep.subr.bf16.mxu0 %v9960_v37 }
0x1b9a   :  { %8742 = vmatpush1.bf16.msra.mxu0 %v9963_v42 }
0x1b9b   :  { %8744 = vmatprep.subr.bf16.mxu0 %v9966_v43 }
0x1b9e   :  { %8746 = vmatpush1.bf16.msra.mxu0 %v9969_v48 }
0x1b9f   :  { %8748 = vmatprep.subr.bf16.mxu0 %v9972_v49 }
0x1ba2   :  { %8750 = vmatpush1.bf16.msra.mxu0 %v9975_v52 }
0x1ba3   :  { %8776 = vmatprep.subr.bf16.mxu0 %v10119_v46 }
0x1c58   :  { %v3783_v8 = vpop.f32.mrb[34].mxu0 }
0x1c59   :  { %v5645_v1 = vmul.f32 -1.442695, %v3783_v8  ;;  %v3785_v20 = vpop.f32.mrb[35].mxu0 }
0x1c5a   :  { %v5646_v45 = vmul.f32 -1.442695, %v3785_v20  ;;  %v11658_v20 = vld [vmem:[#allocation18_spill] sm:$0xff] }
0x1c5b   :  { %9568 = vpow2.f32 %v5645_v1 }
0x1c65   :  { %v9569_v32 = vpop.eup %9568 }
0x1c66   :  { %v3794_v26 = vadd.f32 1.0, %v9569_v32  ;;  %v11659_v32 = vld [vmem:[#allocation19_spill] sm:$0xff] }
0x1c68   :  { %9570 = vrcp.f32 %v3794_v26  ;;  %v11660_v26 = vld [vmem:[#allocation20_spill] sm:$0xff] }
0x1c69   :  { %9572 = vpow2.f32 %v5646_v45  ;;  %v11663_v45 = vld [vmem:[#allocation23_spill] sm:$0xff] }
0x1c72   :  { %v9571_v40 = vpop.eup %9570 }
0x1c73   :  { %v3800_v0 = vmul.f32 %v9571_v40, %v3715_v60  ;;  %v9573_v4 = vpop.eup %9572  ;;  %v11661_v40 = vld [vmem:[#allocation21_spill] sm:$0xff] }
0x1c74   :  { %v3795_v5 = vadd.f32 1.0, %v9573_v4  ;;  %v11664_v4 = vld [vmem:[#allocation24_spill] sm:$0xff] }
0x1c75   :  { %7044 = vmatmul.mubr.f32.vlgmr.msra.gmra.mrb[44].mxu1 %v3800_v0  ;;  %v11662_v0 = vld [vmem:[#allocation22_spill] sm:$0xff] }
0x1c76   :  { %8753 = vmatpush3.bf16.msra.mxu1 %v9949_v30  ;;  %7078 = vmatprep.mubr.msk.f32.mxu1 %vm9811_vm0, %v11514_v62  ;;  %9574 = vrcp.f32 %v3795_v5  ;;  %v11665_v5 = vld [vmem:[#allocation37_spill] sm:$0xff] }
0x1c77   :  { %8754 = vmatprep.subr.bf16.mxu1 %v11505_v25 }
0x1c7a   :  { %8756 = vmatpush3.bf16.msra.mxu1 %v9998_v55 }
0x1c7b   :  { %8757 = vmatprep.subr.bf16.mxu1 %v11505_v25 }
0x1c7e   :  { %8759 = vmatpush3.bf16.msra.mxu1 %v10002_v58 }
0x1c7f   :  { %8760 = vmatprep.subr.bf16.mxu1 %v11505_v25 }
0x1c80   :  { %v9575_v54 = vpop.eup %9574 }
0x1c81   :  { %v3872_v41 = vsub.f32 1.0, %v9575_v54  ;;  %v11668_v54 = vld [vmem:[#allocation41_spill] sm:$0xff] }
0x1c82   :  { %8762 = vmatpush3.bf16.msra.mxu1 %v10006_v61 }
0x1c83   :  { %8763 = vmatprep.subr.bf16.mxu1 %v11505_v25  ;;  %v3873_v28 = vmul.f32 0.25, %v3872_v41  ;;  %v11669_v41 = vld [vmem:[#allocation43_spill] sm:$0xff] }
0x1c86   :  { %8765 = vmatpush3.bf16.msra.mxu1 %v10010_v2 }
0x1c87   :  { %8766 = vmatprep.subr.bf16.mxu1 %v11505_v25 }
0x1c8a   :  { %8768 = vmatpush3.bf16.msra.mxu1 %v10014_v6 }
0x1c8b   :  { %8769 = vmatprep.subr.bf16.mxu1 %v11505_v25 }
0x1c8e   :  { %8771 = vmatpush3.bf16.msra.mxu1 %v10018_v11 }
0x1c8f   :  { %8772 = vmatprep.subr.bf16.mxu1 %v11505_v25 }
0x1c92   :  { %8774 = vmatpush3.bf16.msra.mxu1 %v10022_v14 }
0x1c93   :  { %8807 = vmatprep.subr.bf16.mxu1 %v11505_v25 }
0x1d48   :  { %v3867_v18 = vpop.f32.mrb[44].mxu1 }
0x1d49   :  { %9576 = vtanh.f32 %v3867_v18  ;;  %v7045_v47 = vpop.f32.mrb[45].mxu1  ;;  %v11666_v18 = vld [vmem:[#allocation38_spill] sm:$0xff] }
0x1d4a   :  { %v11667_v47 = vld [vmem:[#allocation40_spill] sm:$0xff] }
0x1d53   :  { %v9577_v53 = vpop.eup %9576 }
0x1d54   :  { %v3874_v23 = vsub.f32 %v9577_v53, %v3715_v60  ;;  %v11670_v53 = vld [vmem:[#allocation44_spill] sm:$0xff] }
0x1d56   :  { %v3875_v8 = vmul.f32 %v3874_v23, %v3873_v28  ;;  %v11671_v28 = vld [vmem:[#allocation46_spill] sm:$0xff]  ;;  %v11672_v23 = vld [vmem:[#allocation47_spill] sm:$0xff] }
0x1d58   :  { %v11008_v1 = vadd.f32 %v3875_v8, %v3715_v60  ;;  %v4037_v60 = vld [vmem:[#allocation2 + $0x28] sm:$0xff]  ;;  %v11673_v8 = vld [vmem:[#allocation16_spill] sm:$0xff] }
0x1d5a   :  { %3942 = vmatmul.mubr.f32.vlgmr.msra.gmra.mrb[36].mxu0 %v11008_v1 }
0x1d5b   :  { %8778 = vmatpush1.bf16.msra.mxu0 %v10121_v50  ;;  %4102 = vmatprep.mubr.f32.mxu0 %v11514_v62 }
0x1d5c   :  { %8780 = vmatprep.subr.bf16.mxu0 %v10124_v56 }
0x1d5f   :  { %8782 = vmatpush1.bf16.msra.mxu0 %v10127_v59 }
0x1d60   :  { %8784 = vmatprep.subr.bf16.mxu0 %v10130_v63 }
0x1d63   :  { %8786 = vmatpush1.bf16.msra.mxu0 %v10133_v7 }
0x1d64   :  { %8788 = vmatprep.subr.bf16.mxu0 %v10136_v13 }
0x1d67   :  { %8790 = vmatpush1.bf16.msra.mxu0 %v10139_v19 }
0x1d68   :  { %8792 = vmatprep.subr.bf16.mxu0 %v10142_v24 }
0x1d6b   :  { %8794 = vmatpush1.bf16.msra.mxu0 %v10145_v27 }
0x1d6c   :  { %8796 = vmatprep.subr.bf16.mxu0 %v10148_v33 }
0x1d6f   :  { %8798 = vmatpush1.bf16.msra.mxu0 %v10151_v38 }
0x1d70   :  { %8800 = vmatprep.subr.bf16.mxu0 %v10154_v44 }
0x1d73   :  { %8802 = vmatpush1.bf16.msra.mxu0 %v10157_v51 }
0x1d74   :  { %8804 = vmatprep.subr.bf16.mxu0 %v10160_v57 }
0x1d77   :  { %8806 = vmatpush1.bf16.msra.mxu0 %v10163_v3 }
0x1d78   :  { %8832 = vmatprep.subr.bf16.mxu0 %v11529_v17 }
0x1d7a   :  { %4103 = vmatmul.mubr.f32.vlgmr.msra.gmra.mrb[38].mxu0 %v4037_v60 }
0x1d7b   :  { %8834 = vmatpush1.bf16.msra.mxu0 %v11658_v20  ;;  %4243 = vmatprep.mubr.f32.mxu0 %v11514_v62 }
0x1d7c   :  { %8836 = vmatprep.subr.bf16.mxu0 %v11659_v32 }
0x1d7f   :  { %8838 = vmatpush1.bf16.msra.mxu0 %v11660_v26 }
0x1d80   :  { %8840 = vmatprep.subr.bf16.mxu0 %v11661_v40 }
0x1d83   :  { %8842 = vmatpush1.bf16.msra.mxu0 %v11662_v0 }
0x1d84   :  { %8844 = vmatprep.subr.bf16.mxu0 %v11663_v45 }
0x1d87   :  { %8846 = vmatpush1.bf16.msra.mxu0 %v11664_v4 }
0x1d88   :  { %8848 = vmatprep.subr.bf16.mxu0 %v11665_v5 }
0x1d8b   :  { %8850 = vmatpush1.bf16.msra.mxu0 %v11666_v18 }
0x1d8c   :  { %8852 = vmatprep.subr.bf16.mxu0 %v11667_v47 }
0x1d8f   :  { %8854 = vmatpush1.bf16.msra.mxu0 %v11668_v54 }
0x1d90   :  { %8856 = vmatprep.subr.bf16.mxu0 %v11669_v41  ;;  %v11674_v41 = vld [vmem:[#allocation25_spill] sm:$0xff] }
0x1d93   :  { %8858 = vmatpush1.bf16.msra.mxu0 %v11670_v53 }
0x1d94   :  { %8860 = vmatprep.subr.bf16.mxu0 %v11671_v28 }
0x1d97   :  { %8862 = vmatpush1.bf16.msra.mxu0 %v11672_v23  ;;  %v11675_v23 = vld [vmem:[#allocation26_spill] sm:$0xff] }
0x1d98   :  { %8888 = vmatprep.subr.bf16.mxu0 %v11673_v8 }
0x1e2d   :  { %v3943_v45 = vpop.f32.mrb[36].mxu0 }
0x1e2e   :  { %v5647_v4 = vmul.f32 -1.442695, %v3943_v45  ;;  %v3945_v0 = vpop.f32.mrb[37].mxu0  ;;  %v11676_v45 = vld [vmem:[#allocation27_spill] sm:$0xff] }
0x1e30   :  { %9578 = vpow2.f32 %v5647_v4  ;;  %v11677_v4 = vld [vmem:[#allocation28_spill] sm:$0xff] }
0x1e3a   :  { %v9579_v5 = vpop.eup %9578 }
0x1e3b   :  { %v3954_v18 = vadd.f32 1.0, %v9579_v5  ;;  %v11678_v5 = vld [vmem:[#allocation29_spill] sm:$0xff] }
0x1e3d   :  { %9580 = vrcp.f32 %v3954_v18  ;;  %v11679_v18 = vld [vmem:[#allocation30_spill] sm:$0xff] }
0x1e47   :  { %v9581_v47 = vpop.eup %9580 }
0x1e48   :  { %v3960_v54 = vmul.f32 %v9581_v47, %v11008_v1  ;;  %v11680_v47 = vld [vmem:[#allocation31_spill] sm:$0xff] }
0x1e4a   :  { %7079 = vmatmul.mubr.f32.vlgmr.msra.gmra.mrb[46].mxu1 %v3960_v54  ;;  %v11681_v54 = vld [vmem:[#allocation32_spill] sm:$0xff] }
0x1e4b   :  { %8809 = vmatpush3.bf16.msra.mxu1 %v11674_v41  ;;  %7113 = vmatprep.mubr.msk.f32.mxu1 %vm9811_vm0, %v11514_v62 }
0x1e4c   :  { %8810 = vmatprep.subr.bf16.mxu1 %v11505_v25 }
0x1e4f   :  { %8812 = vmatpush3.bf16.msra.mxu1 %v11675_v23 }
0x1e50   :  { %8813 = vmatprep.subr.bf16.mxu1 %v11505_v25 }
0x1e53   :  { %8815 = vmatpush3.bf16.msra.mxu1 %v11676_v45 }
0x1e54   :  { %8816 = vmatprep.subr.bf16.mxu1 %v11505_v25 }
0x1e57   :  { %8818 = vmatpush3.bf16.msra.mxu1 %v11677_v4  ;;  %v11682_v4 = vld [vmem:[#allocation33_spill] sm:$0xff] }
0x1e58   :  { %8819 = vmatprep.subr.bf16.mxu1 %v11505_v25 }
0x1e5b   :  { %8821 = vmatpush3.bf16.msra.mxu1 %v11678_v5  ;;  %v11683_v5 = vld [vmem:[#allocation34_spill] sm:$0xff] }
0x1e5c   :  { %8822 = vmatprep.subr.bf16.mxu1 %v11505_v25 }
0x1e5f   :  { %8824 = vmatpush3.bf16.msra.mxu1 %v11679_v18  ;;  %v11684_v18 = vld [vmem:[#allocation35_spill] sm:$0xff] }
0x1e60   :  { %8825 = vmatprep.subr.bf16.mxu1 %v11505_v25 }
0x1e63   :  { %8827 = vmatpush3.bf16.msra.mxu1 %v11680_v47  ;;  %v11685_v47 = vld [vmem:[#allocation36_spill] sm:$0xff] }
0x1e64   :  { %8828 = vmatprep.subr.bf16.mxu1 %v11505_v25 }
0x1e67   :  { %8830 = vmatpush3.bf16.msra.mxu1 %v11681_v54  ;;  %v11688_v54 = vld [vmem:[#allocation45_spill] sm:$0xff] }
0x1e68   :  { %8863 = vmatprep.subr.bf16.mxu1 %v11505_v25 }
0x1e6a   :  { %7114 = vmatmul.mubr.f32.vlgmr.msra.gmra.mrb[48].mxu1 %v4037_v60  ;;  %v11686_v60 = vld [vmem:[#allocation39_spill] sm:$0xff] }
0x1e6b   :  { %8865 = vmatpush3.bf16.msra.mxu1 %v11682_v4  ;;  %7148 = vmatprep.mubr.msk.f32.mxu1 %vm9811_vm0, %v11514_v62  ;;  %v11687_v4 = vld [vmem:[#allocation42_spill] sm:$0xff] }
0x1e6c   :  { %8866 = vmatprep.subr.bf16.mxu1 %v11505_v25 }
0x1e6f   :  { %8868 = vmatpush3.bf16.msra.mxu1 %v11683_v5  ;;  %v11689_v5 = vld [vmem:[#allocation48_spill] sm:$0xff] }
0x1e70   :  { %8869 = vmatprep.subr.bf16.mxu1 %v11505_v25 }
0x1e73   :  { %8871 = vmatpush3.bf16.msra.mxu1 %v11684_v18  ;;  %v5648_v18 = vmul.f32 -1.442695, %v3945_v0 }
0x1e74   :  { %8872 = vmatprep.subr.bf16.mxu1 %v11505_v25 }
0x1e75   :  { %9582 = vpow2.f32 %v5648_v18 }
0x1e77   :  { %8874 = vmatpush3.bf16.msra.mxu1 %v11685_v47 }
0x1e78   :  { %8875 = vmatprep.subr.bf16.mxu1 %v11505_v25 }
0x1e7b   :  { %8877 = vmatpush3.bf16.msra.mxu1 %v11686_v60 }
0x1e7c   :  { %8878 = vmatprep.subr.bf16.mxu1 %v11505_v25 }
0x1e7f   :  { %8880 = vmatpush3.bf16.msra.mxu1 %v11687_v4  ;;  %v9583_v47 = vpop.eup %9582 }
0x1e80   :  { %8881 = vmatprep.subr.bf16.mxu1 %v11505_v25  ;;  %v3955_v45 = vadd.f32 1.0, %v9583_v47 }
0x1e82   :  { %9584 = vrcp.f32 %v3955_v45 }
0x1e83   :  { %8883 = vmatpush3.bf16.msra.mxu1 %v11688_v54 }
0x1e84   :  { %8884 = vmatprep.subr.bf16.mxu1 %v11505_v25 }
0x1e87   :  { %8886 = vmatpush3.bf16.msra.mxu1 %v11689_v5 }
0x1e88   :  { %8919 = vmatprep.subr.bf16.mxu1 %v11505_v25 }
0x1e8c   :  { %v9585_v41 = vpop.eup %9584 }
0x1e8d   :  { %v4032_v4 = vsub.f32 1.0, %v9585_v41 }
0x1e8f   :  { %v4033_v53 = vmul.f32 0.25, %v4032_v4 }
0x1f1d   :  { %v4027_v60 = vpop.f32.mrb[46].mxu1 }
0x1f1e   :  { %9586 = vtanh.f32 %v4027_v60  ;;  %v7080_v23 = vpop.f32.mrb[47].mxu1 }
0x1f28   :  { %v9587_v28 = vpop.eup %9586 }
0x1f29   :  { %v4034_v54 = vsub.f32 %v9587_v28, %v11008_v1 }
0x1f2b   :  { %v4035_v40 = vmul.f32 %v4034_v54, %v4033_v53 }
0x1f2d   :  { %v11084_v26 = vadd.f32 %v4035_v40, %v11008_v1 }
0x1f2f   :  { %4244 = vmatmul.mubr.f32.vlgmr.msra.gmra.mrb[38].mxu0 %v11084_v26  ;;  %7149 = vmatmul.mubr.f32.vlgmr.msra.gmra.mrb[50].mxu1 %v11084_v26 }
0x1f30   :  { %8890 = vmatpush1.bf16.msra.mxu0 %v9929_v9  ;;  %4406 = vmatprep.mubr.f32.mxu0 %v11514_v62 }
0x1f31   :  { %8892 = vmatprep.subr.bf16.mxu0 %v9931_v10  ;;  %8921 = vmatpush3.bf16.msra.mxu1 %v9949_v30 }
0x1f32   :  { %8922 = vmatprep.subr.bf16.mxu1 %v11505_v25  ;;  %7183 = vmatprep.mubr.msk.f32.mxu1 %vm9811_vm0, %v11514_v62 }
0x1f34   :  { %8894 = vmatpush1.bf16.msra.mxu0 %v9935_v15 }
0x1f35   :  { %8896 = vmatprep.subr.bf16.mxu0 %v9938_v16  ;;  %8924 = vmatpush3.bf16.msra.mxu1 %v9998_v55 }
0x1f36   :  { %8925 = vmatprep.subr.bf16.mxu1 %v11505_v25 }
0x1f38   :  { %8898 = vmatpush1.bf16.msra.mxu0 %v9941_v21 }
0x1f39   :  { %8900 = vmatprep.subr.bf16.mxu0 %v9944_v22  ;;  %8927 = vmatpush3.bf16.msra.mxu1 %v10002_v58 }
0x1f3a   :  { %8928 = vmatprep.subr.bf16.mxu1 %v11505_v25 }
0x1f3c   :  { %8902 = vmatpush1.bf16.msra.mxu0 %v9947_v29 }
0x1f3d   :  { %v4175_v1 = vpop.f32.mrb[48].mxu1  ;;  %8904 = vmatprep.subr.bf16.mxu0 %v9952_v31  ;;  %8930 = vmatpush3.bf16.msra.mxu1 %v10006_v61 }
0x1f3e   :  { %v7115_v40 = vpop.f32.mrb[49].mxu1  ;;  %8931 = vmatprep.subr.bf16.mxu1 %v11505_v25  ;;  %v4176_v32 = vadd.f32 %v4175_v1, %v10348_v12 }
0x1f40   :  { %8906 = vmatpush1.bf16.msra.mxu0 %v9957_v36 }
0x1f41   :  { %8908 = vmatprep.subr.bf16.mxu0 %v9960_v37  ;;  %8933 = vmatpush3.bf16.msra.mxu1 %v10010_v2 }
0x1f42   :  { %8934 = vmatprep.subr.bf16.mxu1 %v11505_v25 }
0x1f44   :  { %8910 = vmatpush1.bf16.msra.mxu0 %v9963_v42 }
0x1f45   :  { %8912 = vmatprep.subr.bf16.mxu0 %v9966_v43  ;;  %8936 = vmatpush3.bf16.msra.mxu1 %v10014_v6 }
0x1f46   :  { %8937 = vmatprep.subr.bf16.mxu1 %v11505_v25 }
0x1f48   :  { %8914 = vmatpush1.bf16.msra.mxu0 %v9969_v48 }
0x1f49   :  { %8916 = vmatprep.subr.bf16.mxu0 %v9972_v49  ;;  %8939 = vmatpush3.bf16.msra.mxu1 %v10018_v11 }
0x1f4a   :  { %8940 = vmatprep.subr.bf16.mxu1 %v11505_v25 }
0x1f4c   :  { %8918 = vmatpush1.bf16.msra.mxu0 %v9975_v52 }
0x1f4d   :  { %8942 = vmatpush3.bf16.msra.mxu1 %v10022_v14  ;;  %8944 = vmatprep.subr.bf16.mxu0 %v11673_v8 }
0x1f4e   :  { %8975 = vmatprep.subr.bf16.mxu1 %v11505_v25 }
0x2002   :  { %v4245_v0 = vpop.f32.mrb[38].mxu0  ;;  %v4316_v41 = vpop.f32.mrb[50].mxu1 }
0x2003   :  { %v9356_v53 = vadd.f32 %v10340_v39, %v4245_v0  ;;  %v4247_v28 = vpop.f32.mrb[39].mxu0  ;;  %v7150_v23 = vpop.f32.mrb[51].mxu1  ;;  %v4317_v5 = vadd.f32 %v4316_v41, %v10346_v34 }
0x2004   :  { %v9358_v4 = vadd.f32 %v10342_v35, %v4247_v28 }
0x2005   :  { %v5649_v45 = vmul.f32 -1.442695, %v9356_v53 }
0x2006   :  { %v5650_v18 = vmul.f32 -1.442695, %v9358_v4 }
0x2007   :  { %9588 = vpow2.f32 %v5649_v45 }
0x2008   :  { %9590 = vpow2.f32 %v5650_v18 }
0x2011   :  { %v9589_v47 = vpop.eup %9588 }
0x2012   :  { %v4324_v54 = vadd.f32 1.0, %v9589_v47  ;;  %v9591_v60 = vpop.eup %9590 }
0x2013   :  { %v4331_v40 = vadd.f32 1.0, %v9591_v60 }
0x2014   :  { %9592 = vrcp.f32 %v4324_v54 }
0x2015   :  { %9594 = vrcp.f32 %v4331_v40 }
0x201e   :  { %v9593_v8 = vpop.eup %9592 }
0x201f   :  { %v4334_v20 = vmul.f32 %v9593_v8, %v4317_v5  ;;  %v9595_v53 = vpop.eup %9594 }
0x2020   :  { %v4337_v23 = vsub.f32 1.0, %v9595_v53  ;;  %v4339_v4 = vmul.f32 %v9595_v53, %v11084_v26 }
0x2021   :  { %v4335_v0 = vadd.f32 %v4334_v20, %v4176_v32 }
0x2023   :  { %9596 = vtanh.f32 %v4335_v0 }
0x202d   :  { %v9597_v28 = vpop.eup %9596 }
0x202e   :  { %v4338_v45 = vmul.f32 %v9597_v28, %v4337_v23 }
0x2030   :  { %v4340_v18 = vadd.f32 %v4339_v4, %v4338_v45 }
0x2032   :  { %4407 = vmatmul.mubr.f32.vlgmr.msra.gmra.mrb[40].mxu0 %v4340_v18  ;;  %4341 = vst [vmem:[#allocation11 + $0x28] sm:$0xff] %v4340_v18 }
0x2033   :  { %8946 = vmatpush1.bf16.msra.mxu0 %v9929_v9  ;;  %4566 = vmatprep.mubr.f32.mxu0 %v11514_v62 }
0x2034   :  { %8948 = vmatprep.subr.bf16.mxu0 %v9931_v10 }
0x2037   :  { %8950 = vmatpush1.bf16.msra.mxu0 %v9935_v15 }
0x2038   :  { %8952 = vmatprep.subr.bf16.mxu0 %v9938_v16 }
0x203b   :  { %8954 = vmatpush1.bf16.msra.mxu0 %v9941_v21 }
0x203c   :  { %8956 = vmatprep.subr.bf16.mxu0 %v9944_v22 }
0x203f   :  { %8958 = vmatpush1.bf16.msra.mxu0 %v9947_v29 }
0x2040   :  { %8960 = vmatprep.subr.bf16.mxu0 %v9952_v31 }
0x2043   :  { %8962 = vmatpush1.bf16.msra.mxu0 %v9957_v36 }
0x2044   :  { %8964 = vmatprep.subr.bf16.mxu0 %v9960_v37 }
0x2047   :  { %8966 = vmatpush1.bf16.msra.mxu0 %v9963_v42 }
0x2048   :  { %8968 = vmatprep.subr.bf16.mxu0 %v9966_v43 }
0x204b   :  { %8970 = vmatpush1.bf16.msra.mxu0 %v9969_v48 }
0x204c   :  { %8972 = vmatprep.subr.bf16.mxu0 %v9972_v49 }
0x204f   :  { %8974 = vmatpush1.bf16.msra.mxu0 %v9975_v52 }
0x2050   :  { %9000 = vmatprep.subr.bf16.mxu0 %v10119_v46 }
0x2105   :  { %v4408_v20 = vpop.f32.mrb[40].mxu0 }
0x2106   :  { %v5651_v32 = vmul.f32 -1.442695, %v4408_v20  ;;  %v4410_v26 = vpop.f32.mrb[41].mxu0 }
0x2107   :  { %v5652_v47 = vmul.f32 -1.442695, %v4410_v26  ;;  %v11690_v26 = vld [vmem:[#allocation18_spill] sm:$0xff] }
0x2108   :  { %9598 = vpow2.f32 %v5651_v32 }
0x2112   :  { %v9599_v8 = vpop.eup %9598 }
0x2113   :  { %v4419_v5 = vadd.f32 1.0, %v9599_v8  ;;  %v11691_v8 = vld [vmem:[#allocation19_spill] sm:$0xff] }
0x2115   :  { %9600 = vrcp.f32 %v4419_v5  ;;  %v11692_v5 = vld [vmem:[#allocation20_spill] sm:$0xff] }
0x2116   :  { %9602 = vpow2.f32 %v5652_v47  ;;  %v11695_v47 = vld [vmem:[#allocation23_spill] sm:$0xff] }
0x211f   :  { %v9601_v1 = vpop.eup %9600 }
0x2120   :  { %v4425_v41 = vmul.f32 %v9601_v1, %v4340_v18  ;;  %v9603_v54 = vpop.eup %9602  ;;  %v11693_v1 = vld [vmem:[#allocation21_spill] sm:$0xff] }
0x2121   :  { %v4420_v60 = vadd.f32 1.0, %v9603_v54  ;;  %v11696_v54 = vld [vmem:[#allocation24_spill] sm:$0xff] }
0x2122   :  { %7184 = vmatmul.mubr.f32.vlgmr.msra.gmra.mrb[52].mxu1 %v4425_v41  ;;  %v11694_v41 = vld [vmem:[#allocation22_spill] sm:$0xff] }
0x2123   :  { %8977 = vmatpush3.bf16.msra.mxu1 %v9949_v30  ;;  %7218 = vmatprep.mubr.msk.f32.mxu1 %vm9811_vm0, %v11514_v62  ;;  %9604 = vrcp.f32 %v4420_v60  ;;  %v11697_v60 = vld [vmem:[#allocation37_spill] sm:$0xff] }
0x2124   :  { %8978 = vmatprep.subr.bf16.mxu1 %v11505_v25 }
0x2127   :  { %8980 = vmatpush3.bf16.msra.mxu1 %v9998_v55 }
0x2128   :  { %8981 = vmatprep.subr.bf16.mxu1 %v11505_v25 }
0x212b   :  { %8983 = vmatpush3.bf16.msra.mxu1 %v10002_v58 }
0x212c   :  { %8984 = vmatprep.subr.bf16.mxu1 %v11505_v25 }
0x212d   :  { %v9605_v53 = vpop.eup %9604 }
0x212e   :  { %v4497_v23 = vsub.f32 1.0, %v9605_v53  ;;  %v11700_v53 = vld [vmem:[#allocation41_spill] sm:$0xff] }
0x212f   :  { %8986 = vmatpush3.bf16.msra.mxu1 %v10006_v61 }
0x2130   :  { %8987 = vmatprep.subr.bf16.mxu1 %v11505_v25  ;;  %v4498_v45 = vmul.f32 0.25, %v4497_v23  ;;  %v11701_v23 = vld [vmem:[#allocation43_spill] sm:$0xff] }
0x2133   :  { %8989 = vmatpush3.bf16.msra.mxu1 %v10010_v2 }
0x2134   :  { %8990 = vmatprep.subr.bf16.mxu1 %v11505_v25 }
0x2137   :  { %8992 = vmatpush3.bf16.msra.mxu1 %v10014_v6 }
0x2138   :  { %8993 = vmatprep.subr.bf16.mxu1 %v11505_v25 }
0x213b   :  { %8995 = vmatpush3.bf16.msra.mxu1 %v10018_v11 }
0x213c   :  { %8996 = vmatprep.subr.bf16.mxu1 %v11505_v25 }
0x213f   :  { %8998 = vmatpush3.bf16.msra.mxu1 %v10022_v14 }
0x2140   :  { %9031 = vmatprep.subr.bf16.mxu1 %v11505_v25 }
0x21f5   :  { %v4492_v40 = vpop.f32.mrb[52].mxu1 }
0x21f6   :  { %9606 = vtanh.f32 %v4492_v40  ;;  %v7185_v0 = vpop.f32.mrb[53].mxu1  ;;  %v11698_v40 = vld [vmem:[#allocation38_spill] sm:$0xff] }
0x21f7   :  { %v11699_v0 = vld [vmem:[#allocation40_spill] sm:$0xff] }
0x2200   :  { %v9607_v28 = vpop.eup %9606 }
0x2201   :  { %v4499_v4 = vsub.f32 %v9607_v28, %v4340_v18  ;;  %v11702_v28 = vld [vmem:[#allocation44_spill] sm:$0xff] }
0x2203   :  { %v4500_v20 = vmul.f32 %v4499_v4, %v4498_v45  ;;  %v11703_v45 = vld [vmem:[#allocation46_spill] sm:$0xff]  ;;  %v11704_v4 = vld [vmem:[#allocation47_spill] sm:$0xff] }
0x2205   :  { %v11163_v32 = vadd.f32 %v4500_v20, %v4340_v18  ;;  %v4662_v18 = vld [vmem:[#allocation2 + $0x30] sm:$0xff]  ;;  %v11705_v20 = vld [vmem:[#allocation16_spill] sm:$0xff] }
0x2207   :  { %4567 = vmatmul.mubr.f32.vlgmr.msra.gmra.mrb[42].mxu0 %v11163_v32 }
0x2208   :  { %9002 = vmatpush1.bf16.msra.mxu0 %v10121_v50  ;;  %4727 = vmatprep.mubr.f32.mxu0 %v11514_v62 }
0x2209   :  { %9004 = vmatprep.subr.bf16.mxu0 %v10124_v56 }
0x220c   :  { %9006 = vmatpush1.bf16.msra.mxu0 %v10127_v59 }
0x220d   :  { %9008 = vmatprep.subr.bf16.mxu0 %v10130_v63 }
0x2210   :  { %9010 = vmatpush1.bf16.msra.mxu0 %v10133_v7 }
0x2211   :  { %9012 = vmatprep.subr.bf16.mxu0 %v10136_v13 }
0x2214   :  { %9014 = vmatpush1.bf16.msra.mxu0 %v10139_v19 }
0x2215   :  { %9016 = vmatprep.subr.bf16.mxu0 %v10142_v24 }
0x2218   :  { %9018 = vmatpush1.bf16.msra.mxu0 %v10145_v27 }
0x2219   :  { %9020 = vmatprep.subr.bf16.mxu0 %v10148_v33 }
0x221c   :  { %9022 = vmatpush1.bf16.msra.mxu0 %v10151_v38 }
0x221d   :  { %9024 = vmatprep.subr.bf16.mxu0 %v10154_v44 }
0x2220   :  { %9026 = vmatpush1.bf16.msra.mxu0 %v10157_v51 }
0x2221   :  { %9028 = vmatprep.subr.bf16.mxu0 %v10160_v57 }
0x2224   :  { %9030 = vmatpush1.bf16.msra.mxu0 %v10163_v3 }
0x2225   :  { %9056 = vmatprep.subr.bf16.mxu0 %v11529_v17 }
0x2227   :  { %4728 = vmatmul.mubr.f32.vlgmr.msra.gmra.mrb[44].mxu0 %v4662_v18 }
0x2228   :  { %9058 = vmatpush1.bf16.msra.mxu0 %v11690_v26  ;;  %4868 = vmatprep.mubr.f32.mxu0 %v11514_v62 }
0x2229   :  { %9060 = vmatprep.subr.bf16.mxu0 %v11691_v8 }
0x222c   :  { %9062 = vmatpush1.bf16.msra.mxu0 %v11692_v5 }
0x222d   :  { %9064 = vmatprep.subr.bf16.mxu0 %v11693_v1 }
0x2230   :  { %9066 = vmatpush1.bf16.msra.mxu0 %v11694_v41 }
0x2231   :  { %9068 = vmatprep.subr.bf16.mxu0 %v11695_v47 }
0x2234   :  { %9070 = vmatpush1.bf16.msra.mxu0 %v11696_v54 }
0x2235   :  { %9072 = vmatprep.subr.bf16.mxu0 %v11697_v60 }
0x2238   :  { %9074 = vmatpush1.bf16.msra.mxu0 %v11698_v40 }
0x2239   :  { %9076 = vmatprep.subr.bf16.mxu0 %v11699_v0 }
0x223c   :  { %9078 = vmatpush1.bf16.msra.mxu0 %v11700_v53 }
0x223d   :  { %9080 = vmatprep.subr.bf16.mxu0 %v11701_v23  ;;  %v11706_v23 = vld [vmem:[#allocation25_spill] sm:$0xff] }
0x2240   :  { %9082 = vmatpush1.bf16.msra.mxu0 %v11702_v28 }
0x2241   :  { %9084 = vmatprep.subr.bf16.mxu0 %v11703_v45 }
0x2244   :  { %9086 = vmatpush1.bf16.msra.mxu0 %v11704_v4  ;;  %v11707_v4 = vld [vmem:[#allocation26_spill] sm:$0xff] }
0x2245   :  { %9112 = vmatprep.subr.bf16.mxu0 %v11705_v20 }
0x22da   :  { %v4568_v47 = vpop.f32.mrb[42].mxu0 }
0x22db   :  { %v5653_v54 = vmul.f32 -1.442695, %v4568_v47  ;;  %v4570_v41 = vpop.f32.mrb[43].mxu0  ;;  %v11708_v47 = vld [vmem:[#allocation27_spill] sm:$0xff] }
0x22dd   :  { %9608 = vpow2.f32 %v5653_v54  ;;  %v11709_v54 = vld [vmem:[#allocation28_spill] sm:$0xff] }
0x22e7   :  { %v9609_v60 = vpop.eup %9608 }
0x22e8   :  { %v4579_v40 = vadd.f32 1.0, %v9609_v60  ;;  %v11710_v60 = vld [vmem:[#allocation29_spill] sm:$0xff] }
0x22ea   :  { %9610 = vrcp.f32 %v4579_v40  ;;  %v11711_v40 = vld [vmem:[#allocation30_spill] sm:$0xff] }
0x22f4   :  { %v9611_v0 = vpop.eup %9610 }
0x22f5   :  { %v4585_v53 = vmul.f32 %v9611_v0, %v11163_v32  ;;  %v11712_v0 = vld [vmem:[#allocation31_spill] sm:$0xff] }
0x22f7   :  { %7219 = vmatmul.mubr.f32.vlgmr.msra.gmra.mrb[54].mxu1 %v4585_v53  ;;  %v11713_v53 = vld [vmem:[#allocation32_spill] sm:$0xff] }
0x22f8   :  { %9033 = vmatpush3.bf16.msra.mxu1 %v11706_v23  ;;  %7253 = vmatprep.mubr.msk.f32.mxu1 %vm9811_vm0, %v11514_v62 }
0x22f9   :  { %9034 = vmatprep.subr.bf16.mxu1 %v11505_v25 }
0x22fc   :  { %9036 = vmatpush3.bf16.msra.mxu1 %v11707_v4 }
0x22fd   :  { %9037 = vmatprep.subr.bf16.mxu1 %v11505_v25 }
0x2300   :  { %9039 = vmatpush3.bf16.msra.mxu1 %v11708_v47 }
0x2301   :  { %9040 = vmatprep.subr.bf16.mxu1 %v11505_v25 }
0x2304   :  { %9042 = vmatpush3.bf16.msra.mxu1 %v11709_v54  ;;  %v11714_v54 = vld [vmem:[#allocation33_spill] sm:$0xff] }
0x2305   :  { %9043 = vmatprep.subr.bf16.mxu1 %v11505_v25 }
0x2308   :  { %9045 = vmatpush3.bf16.msra.mxu1 %v11710_v60  ;;  %v11715_v60 = vld [vmem:[#allocation34_spill] sm:$0xff] }
0x2309   :  { %9046 = vmatprep.subr.bf16.mxu1 %v11505_v25 }
0x230c   :  { %9048 = vmatpush3.bf16.msra.mxu1 %v11711_v40  ;;  %v11716_v40 = vld [vmem:[#allocation35_spill] sm:$0xff] }
0x230d   :  { %9049 = vmatprep.subr.bf16.mxu1 %v11505_v25 }
0x2310   :  { %9051 = vmatpush3.bf16.msra.mxu1 %v11712_v0  ;;  %v11717_v0 = vld [vmem:[#allocation36_spill] sm:$0xff] }
0x2311   :  { %9052 = vmatprep.subr.bf16.mxu1 %v11505_v25 }
0x2314   :  { %9054 = vmatpush3.bf16.msra.mxu1 %v11713_v53  ;;  %v11720_v53 = vld [vmem:[#allocation45_spill] sm:$0xff] }
0x2315   :  { %9087 = vmatprep.subr.bf16.mxu1 %v11505_v25 }
0x2317   :  { %7254 = vmatmul.mubr.f32.vlgmr.msra.gmra.mrb[56].mxu1 %v4662_v18  ;;  %v11718_v18 = vld [vmem:[#allocation39_spill] sm:$0xff] }
0x2318   :  { %9089 = vmatpush3.bf16.msra.mxu1 %v11714_v54  ;;  %7288 = vmatprep.mubr.msk.f32.mxu1 %vm9811_vm0, %v11514_v62  ;;  %v11719_v54 = vld [vmem:[#allocation42_spill] sm:$0xff] }
0x2319   :  { %9090 = vmatprep.subr.bf16.mxu1 %v11505_v25 }
0x231c   :  { %9092 = vmatpush3.bf16.msra.mxu1 %v11715_v60  ;;  %v11721_v60 = vld [vmem:[#allocation48_spill] sm:$0xff] }
0x231d   :  { %9093 = vmatprep.subr.bf16.mxu1 %v11505_v25 }
0x2320   :  { %9095 = vmatpush3.bf16.msra.mxu1 %v11716_v40  ;;  %v5654_v40 = vmul.f32 -1.442695, %v4570_v41 }
0x2321   :  { %9096 = vmatprep.subr.bf16.mxu1 %v11505_v25 }
0x2322   :  { %9612 = vpow2.f32 %v5654_v40 }
0x2324   :  { %9098 = vmatpush3.bf16.msra.mxu1 %v11717_v0 }
0x2325   :  { %9099 = vmatprep.subr.bf16.mxu1 %v11505_v25 }
0x2328   :  { %9101 = vmatpush3.bf16.msra.mxu1 %v11718_v18 }
0x2329   :  { %9102 = vmatprep.subr.bf16.mxu1 %v11505_v25 }
0x232c   :  { %9104 = vmatpush3.bf16.msra.mxu1 %v11719_v54  ;;  %v9613_v0 = vpop.eup %9612 }
0x232d   :  { %9105 = vmatprep.subr.bf16.mxu1 %v11505_v25  ;;  %v4580_v47 = vadd.f32 1.0, %v9613_v0 }
0x232f   :  { %9614 = vrcp.f32 %v4580_v47 }
0x2330   :  { %9107 = vmatpush3.bf16.msra.mxu1 %v11720_v53 }
0x2331   :  { %9108 = vmatprep.subr.bf16.mxu1 %v11505_v25 }
0x2334   :  { %9110 = vmatpush3.bf16.msra.mxu1 %v11721_v60 }
0x2335   :  { %9143 = vmatprep.subr.bf16.mxu1 %v11505_v25 }
0x2339   :  { %v9615_v23 = vpop.eup %9614 }
0x233a   :  { %v4657_v54 = vsub.f32 1.0, %v9615_v23 }
0x233c   :  { %v4658_v28 = vmul.f32 0.25, %v4657_v54 }
0x23ca   :  { %v4652_v18 = vpop.f32.mrb[54].mxu1 }
0x23cb   :  { %9616 = vtanh.f32 %v4652_v18  ;;  %v7220_v4 = vpop.f32.mrb[55].mxu1 }
0x23d5   :  { %v9617_v45 = vpop.eup %9616 }
0x23d6   :  { %v4659_v53 = vsub.f32 %v9617_v45, %v11163_v32 }
0x23d8   :  { %v4660_v1 = vmul.f32 %v4659_v53, %v4658_v28 }
0x23da   :  { %v11239_v5 = vadd.f32 %v4660_v1, %v11163_v32 }
0x23dc   :  { %4869 = vmatmul.mubr.f32.vlgmr.msra.gmra.mrb[44].mxu0 %v11239_v5  ;;  %7289 = vmatmul.mubr.f32.vlgmr.msra.gmra.mrb[58].mxu1 %v11239_v5 }
0x23dd   :  { %9114 = vmatpush1.bf16.msra.mxu0 %v9929_v9  ;;  %5031 = vmatprep.mubr.f32.mxu0 %v11514_v62 }
0x23de   :  { %9116 = vmatprep.subr.bf16.mxu0 %v9931_v10  ;;  %9145 = vmatpush3.bf16.msra.mxu1 %v9949_v30 }
0x23df   :  { %9146 = vmatprep.subr.bf16.mxu1 %v11505_v25  ;;  %7323 = vmatprep.mubr.msk.f32.mxu1 %vm9811_vm0, %v11514_v62 }
0x23e1   :  { %9118 = vmatpush1.bf16.msra.mxu0 %v9935_v15 }
0x23e2   :  { %9120 = vmatprep.subr.bf16.mxu0 %v9938_v16  ;;  %9148 = vmatpush3.bf16.msra.mxu1 %v9998_v55 }
0x23e3   :  { %9149 = vmatprep.subr.bf16.mxu1 %v11505_v25 }
0x23e5   :  { %9122 = vmatpush1.bf16.msra.mxu0 %v9941_v21 }
0x23e6   :  { %9124 = vmatprep.subr.bf16.mxu0 %v9944_v22  ;;  %9151 = vmatpush3.bf16.msra.mxu1 %v10002_v58 }
0x23e7   :  { %9152 = vmatprep.subr.bf16.mxu1 %v11505_v25 }
0x23e9   :  { %9126 = vmatpush1.bf16.msra.mxu0 %v9947_v29 }
0x23ea   :  { %v4800_v32 = vpop.f32.mrb[56].mxu1  ;;  %9128 = vmatprep.subr.bf16.mxu0 %v9952_v31  ;;  %9154 = vmatpush3.bf16.msra.mxu1 %v10006_v61 }
0x23eb   :  { %v7255_v1 = vpop.f32.mrb[57].mxu1  ;;  %9155 = vmatprep.subr.bf16.mxu1 %v11505_v25  ;;  %v4801_v8 = vadd.f32 %v4800_v32, %v10348_v12  ;;  %v11739_v32 = vld [vmem:[#allocation27_spill] sm:$0xff] }
0x23ed   :  { %9130 = vmatpush1.bf16.msra.mxu0 %v9957_v36 }
0x23ee   :  { %9132 = vmatprep.subr.bf16.mxu0 %v9960_v37  ;;  %9157 = vmatpush3.bf16.msra.mxu1 %v10010_v2 }
0x23ef   :  { %9158 = vmatprep.subr.bf16.mxu1 %v11505_v25 }
0x23f1   :  { %9134 = vmatpush1.bf16.msra.mxu0 %v9963_v42 }
0x23f2   :  { %9136 = vmatprep.subr.bf16.mxu0 %v9966_v43  ;;  %9160 = vmatpush3.bf16.msra.mxu1 %v10014_v6 }
0x23f3   :  { %9161 = vmatprep.subr.bf16.mxu1 %v11505_v25 }
0x23f5   :  { %9138 = vmatpush1.bf16.msra.mxu0 %v9969_v48 }
0x23f6   :  { %9140 = vmatprep.subr.bf16.mxu0 %v9972_v49  ;;  %9163 = vmatpush3.bf16.msra.mxu1 %v10018_v11 }
0x23f7   :  { %9164 = vmatprep.subr.bf16.mxu1 %v11505_v25 }
0x23f9   :  { %9142 = vmatpush1.bf16.msra.mxu0 %v9975_v52 }
0x23fa   :  { %9166 = vmatpush3.bf16.msra.mxu1 %v10022_v14  ;;  %9168 = vmatprep.subr.bf16.mxu0 %v11705_v20 }
0x23fb   :  { %9199 = vmatprep.subr.bf16.mxu1 %v11505_v25 }
0x24af   :  { %v4870_v41 = vpop.f32.mrb[44].mxu0  ;;  %v4941_v23 = vpop.f32.mrb[58].mxu1 }
0x24b0   :  { %v9360_v28 = vadd.f32 %v10340_v39, %v4870_v41  ;;  %v4872_v45 = vpop.f32.mrb[45].mxu0  ;;  %v7290_v4 = vpop.f32.mrb[59].mxu1  ;;  %v4942_v20 = vadd.f32 %v4941_v23, %v10346_v34  ;;  %v11740_v23 = vld [vmem:[#allocation28_spill] sm:$0xff] }
0x24b1   :  { %v9362_v54 = vadd.f32 %v10342_v35, %v4872_v45 }
0x24b2   :  { %v5655_v47 = vmul.f32 -1.442695, %v9360_v28 }
0x24b3   :  { %v5656_v40 = vmul.f32 -1.442695, %v9362_v54 }
0x24b4   :  { %9618 = vpow2.f32 %v5655_v47 }
0x24b5   :  { %9620 = vpow2.f32 %v5656_v40 }
0x24be   :  { %v9619_v0 = vpop.eup %9618 }
0x24bf   :  { %v4949_v53 = vadd.f32 1.0, %v9619_v0  ;;  %v9621_v18 = vpop.eup %9620  ;;  %v11741_v0 = vld [vmem:[#allocation29_spill] sm:$0xff] }
0x24c0   :  { %v4956_v1 = vadd.f32 1.0, %v9621_v18  ;;  %v11743_v18 = vld [vmem:[#allocation31_spill] sm:$0xff] }
0x24c1   :  { %9622 = vrcp.f32 %v4949_v53  ;;  %v11742_v53 = vld [vmem:[#allocation30_spill] sm:$0xff] }
0x24c2   :  { %9624 = vrcp.f32 %v4956_v1  ;;  %v11744_v1 = vld [vmem:[#allocation32_spill] sm:$0xff] }
0x24cb   :  { %v9623_v60 = vpop.eup %9622 }
0x24cc   :  { %v4959_v26 = vmul.f32 %v9623_v60, %v4942_v20  ;;  %v9625_v28 = vpop.eup %9624  ;;  %v11738_v60 = vld [vmem:[#allocation26_spill] sm:$0xff]  ;;  %v11745_v20 = vld [vmem:[#allocation33_spill] sm:$0xff] }
0x24cd   :  { %v4962_v4 = vsub.f32 1.0, %v9625_v28  ;;  %v4964_v54 = vmul.f32 %v9625_v28, %v11239_v5  ;;  %v11737_v5 = vld [vmem:[#allocation25_spill] sm:$0xff]  ;;  %v11747_v28 = vld [vmem:[#allocation35_spill] sm:$0xff] }
0x24ce   :  { %v4960_v41 = vadd.f32 %v4959_v26, %v4801_v8 }
0x24d0   :  { %9626 = vtanh.f32 %v4960_v41  ;;  %v11746_v41 = vld [vmem:[#allocation34_spill] sm:$0xff] }
0x24da   :  { %v9627_v45 = vpop.eup %9626 }
0x24db   :  { %v4963_v47 = vmul.f32 %v9627_v45, %v4962_v4  ;;  %v11748_v4 = vld [vmem:[#allocation36_spill] sm:$0xff]  ;;  %v11749_v45 = vld [vmem:[#allocation39_spill] sm:$0xff] }
0x24dd   :  { %v4965_v40 = vadd.f32 %v4964_v54, %v4963_v47  ;;  %v11750_v47 = vld [vmem:[#allocation42_spill] sm:$0xff]  ;;  %v11752_v54 = vld [vmem:[#allocation48_spill] sm:$0xff] }
0x24df   :  { %5032 = vmatmul.mubr.f32.vlgmr.msra.gmra.mrb[46].mxu0 %v4965_v40  ;;  %4966 = vst [vmem:[#allocation11 + $0x30] sm:$0xff] %v4965_v40 }
0x24e0   :  { %9170 = vmatpush1.bf16.msra.mxu0 %v9929_v9  ;;  %5191 = vmatprep.mubr.f32.mxu0 %v11514_v62 }
0x24e1   :  { %9172 = vmatprep.subr.bf16.mxu0 %v9931_v10 }
0x24e4   :  { %9174 = vmatpush1.bf16.msra.mxu0 %v9935_v15 }
0x24e5   :  { %9176 = vmatprep.subr.bf16.mxu0 %v9938_v16 }
0x24e8   :  { %9178 = vmatpush1.bf16.msra.mxu0 %v9941_v21 }
0x24e9   :  { %9180 = vmatprep.subr.bf16.mxu0 %v9944_v22 }
0x24ec   :  { %9182 = vmatpush1.bf16.msra.mxu0 %v9947_v29 }
0x24ed   :  { %9184 = vmatprep.subr.bf16.mxu0 %v9952_v31 }
0x24f0   :  { %9186 = vmatpush1.bf16.msra.mxu0 %v9957_v36 }
0x24f1   :  { %9188 = vmatprep.subr.bf16.mxu0 %v9960_v37 }
0x24f4   :  { %9190 = vmatpush1.bf16.msra.mxu0 %v9963_v42 }
0x24f5   :  { %9192 = vmatprep.subr.bf16.mxu0 %v9966_v43 }
0x24f8   :  { %9194 = vmatpush1.bf16.msra.mxu0 %v9969_v48 }
0x24f9   :  { %9196 = vmatprep.subr.bf16.mxu0 %v9972_v49 }
0x24fc   :  { %9198 = vmatpush1.bf16.msra.mxu0 %v9975_v52 }
0x24fd   :  { %9224 = vmatprep.subr.bf16.mxu0 %v10119_v46  ;;  %v11725_v46 = vld [vmem:[#allocation21_spill] sm:$0xff] }
0x25b2   :  { %v5033_v9 = vpop.f32.mrb[46].mxu0 }
0x25b3   :  { %v5657_v10 = vmul.f32 -1.442695, %v5033_v9  ;;  %v5035_v15 = vpop.f32.mrb[47].mxu0 }
0x25b5   :  { %9628 = vpow2.f32 %v5657_v10 }
0x25bf   :  { %v9629_v16 = vpop.eup %9628 }
0x25c0   :  { %v5044_v21 = vadd.f32 1.0, %v9629_v16 }
0x25c2   :  { %9630 = vrcp.f32 %v5044_v21 }
0x25cc   :  { %v9631_v22 = vpop.eup %9630 }
0x25cd   :  { %v5050_v29 = vmul.f32 %v9631_v22, %v4965_v40 }
0x25cf   :  { %7324 = vmatmul.mubr.f32.vlgmr.msra.gmra.mrb[60].mxu1 %v5050_v29 }
0x25d0   :  { %9201 = vmatpush3.bf16.msra.mxu1 %v9949_v30  ;;  %7358 = vmatprep.mubr.msk.f32.mxu1 %vm9811_vm0, %v11514_v62  ;;  %v5658_v30 = vmul.f32 -1.442695, %v5035_v15 }
0x25d1   :  { %9202 = vmatprep.subr.bf16.mxu1 %v11505_v25 }
0x25d2   :  { %9632 = vpow2.f32 %v5658_v30 }
0x25d4   :  { %9204 = vmatpush3.bf16.msra.mxu1 %v9998_v55 }
0x25d5   :  { %9205 = vmatprep.subr.bf16.mxu1 %v11505_v25 }
0x25d8   :  { %9207 = vmatpush3.bf16.msra.mxu1 %v10002_v58 }
0x25d9   :  { %9208 = vmatprep.subr.bf16.mxu1 %v11505_v25 }
0x25dc   :  { %9210 = vmatpush3.bf16.msra.mxu1 %v10006_v61  ;;  %v9633_v31 = vpop.eup %9632 }
0x25dd   :  { %9211 = vmatprep.subr.bf16.mxu1 %v11505_v25  ;;  %v5045_v36 = vadd.f32 1.0, %v9633_v31 }
0x25df   :  { %9634 = vrcp.f32 %v5045_v36 }
0x25e0   :  { %9213 = vmatpush3.bf16.msra.mxu1 %v10010_v2  ;;  %v5287_v2 = vld [vmem:[#allocation2 + $0x38] sm:$0xff] }
0x25e1   :  { %9214 = vmatprep.subr.bf16.mxu1 %v11505_v25 }
0x25e4   :  { %9216 = vmatpush3.bf16.msra.mxu1 %v10014_v6  ;;  %v11722_v6 = vld [vmem:[#allocation18_spill] sm:$0xff] }
0x25e5   :  { %9217 = vmatprep.subr.bf16.mxu1 %v11505_v25 }
0x25e8   :  { %9219 = vmatpush3.bf16.msra.mxu1 %v10018_v11  ;;  %v11723_v11 = vld [vmem:[#allocation19_spill] sm:$0xff] }
0x25e9   :  { %9220 = vmatprep.subr.bf16.mxu1 %v11505_v25  ;;  %v9635_v43 = vpop.eup %9634 }
0x25ea   :  { %v5122_v48 = vsub.f32 1.0, %v9635_v43 }
0x25ec   :  { %9222 = vmatpush3.bf16.msra.mxu1 %v10022_v14  ;;  %v5123_v52 = vmul.f32 0.25, %v5122_v48  ;;  %v11724_v14 = vld [vmem:[#allocation20_spill] sm:$0xff] }
0x25ed   :  { %9255 = vmatprep.subr.bf16.mxu1 %v11505_v25 }
0x26a2   :  { %v5117_v37 = vpop.f32.mrb[60].mxu1 }
0x26a3   :  { %9636 = vtanh.f32 %v5117_v37  ;;  %v7325_v42 = vpop.f32.mrb[61].mxu1 }
0x26ad   :  { %v9637_v49 = vpop.eup %9636 }
0x26ae   :  { %v5124_v55 = vsub.f32 %v9637_v49, %v4965_v40 }
0x26b0   :  { %v5125_v58 = vmul.f32 %v5124_v55, %v5123_v52 }
0x26b2   :  { %v11318_v61 = vadd.f32 %v5125_v58, %v4965_v40 }
0x26b4   :  { %5192 = vmatmul.mubr.f32.vlgmr.msra.gmra.mrb[48].mxu0 %v11318_v61 }
0x26b5   :  { %9226 = vmatpush1.bf16.msra.mxu0 %v10121_v50  ;;  %5352 = vmatprep.mubr.f32.mxu0 %v11514_v62  ;;  %v11726_v50 = vld [vmem:[#allocation22_spill] sm:$0xff] }
0x26b6   :  { %9228 = vmatprep.subr.bf16.mxu0 %v10124_v56  ;;  %v11727_v56 = vld [vmem:[#allocation23_spill] sm:$0xff] }
0x26b9   :  { %9230 = vmatpush1.bf16.msra.mxu0 %v10127_v59  ;;  %v11728_v59 = vld [vmem:[#allocation24_spill] sm:$0xff] }
0x26ba   :  { %9232 = vmatprep.subr.bf16.mxu0 %v10130_v63  ;;  %v11729_v63 = vld [vmem:[#allocation37_spill] sm:$0xff] }
0x26bd   :  { %9234 = vmatpush1.bf16.msra.mxu0 %v10133_v7  ;;  %v11730_v7 = vld [vmem:[#allocation38_spill] sm:$0xff] }
0x26be   :  { %9236 = vmatprep.subr.bf16.mxu0 %v10136_v13  ;;  %v11731_v13 = vld [vmem:[#allocation40_spill] sm:$0xff] }
0x26c1   :  { %9238 = vmatpush1.bf16.msra.mxu0 %v10139_v19  ;;  %v11732_v19 = vld [vmem:[#allocation41_spill] sm:$0xff] }
0x26c2   :  { %9240 = vmatprep.subr.bf16.mxu0 %v10142_v24  ;;  %v11733_v24 = vld [vmem:[#allocation43_spill] sm:$0xff] }
0x26c5   :  { %9242 = vmatpush1.bf16.msra.mxu0 %v10145_v27  ;;  %v11734_v27 = vld [vmem:[#allocation44_spill] sm:$0xff] }
0x26c6   :  { %9244 = vmatprep.subr.bf16.mxu0 %v10148_v33  ;;  %v11735_v33 = vld [vmem:[#allocation46_spill] sm:$0xff] }
0x26c9   :  { %9246 = vmatpush1.bf16.msra.mxu0 %v10151_v38  ;;  %v11736_v38 = vld [vmem:[#allocation47_spill] sm:$0xff] }
0x26ca   :  { %9248 = vmatprep.subr.bf16.mxu0 %v10154_v44 }
0x26cd   :  { %9250 = vmatpush1.bf16.msra.mxu0 %v10157_v51 }
0x26ce   :  { %9252 = vmatprep.subr.bf16.mxu0 %v10160_v57 }
0x26d1   :  { %9254 = vmatpush1.bf16.msra.mxu0 %v10163_v3 }
0x26d2   :  { %9280 = vmatprep.subr.bf16.mxu0 %v11529_v17 }
0x26d4   :  { %5353 = vmatmul.mubr.f32.vlgmr.msra.gmra.mrb[50].mxu0 %v5287_v2 }
0x26d5   :  { %9282 = vmatpush1.bf16.msra.mxu0 %v11722_v6  ;;  %5493 = vmatprep.mubr.f32.mxu0 %v11514_v62 }
0x26d6   :  { %9284 = vmatprep.subr.bf16.mxu0 %v11723_v11 }
0x26d9   :  { %9286 = vmatpush1.bf16.msra.mxu0 %v11724_v14 }
0x26da   :  { %9288 = vmatprep.subr.bf16.mxu0 %v11725_v46 }
0x26dd   :  { %9290 = vmatpush1.bf16.msra.mxu0 %v11726_v50 }
0x26de   :  { %9292 = vmatprep.subr.bf16.mxu0 %v11727_v56 }
0x26e1   :  { %9294 = vmatpush1.bf16.msra.mxu0 %v11728_v59 }
0x26e2   :  { %9296 = vmatprep.subr.bf16.mxu0 %v11729_v63 }
0x26e5   :  { %9298 = vmatpush1.bf16.msra.mxu0 %v11730_v7 }
0x26e6   :  { %9300 = vmatprep.subr.bf16.mxu0 %v11731_v13 }
0x26e9   :  { %9302 = vmatpush1.bf16.msra.mxu0 %v11732_v19 }
0x26ea   :  { %9304 = vmatprep.subr.bf16.mxu0 %v11733_v24 }
0x26ed   :  { %9306 = vmatpush1.bf16.msra.mxu0 %v11734_v27 }
0x26ee   :  { %9308 = vmatprep.subr.bf16.mxu0 %v11735_v33 }
0x26f1   :  { %9310 = vmatpush1.bf16.msra.mxu0 %v11736_v38 }
0x2787   :  { %v5193_v44 = vpop.f32.mrb[48].mxu0 }
0x2788   :  { %v5659_v51 = vmul.f32 -1.442695, %v5193_v44  ;;  %v5195_v57 = vpop.f32.mrb[49].mxu0 }
0x2789   :  { %v5660_v40 = vmul.f32 -1.442695, %v5195_v57 }
0x278a   :  { %9638 = vpow2.f32 %v5659_v51 }
0x2794   :  { %v9639_v3 = vpop.eup %9638 }
0x2795   :  { %v5204_v17 = vadd.f32 1.0, %v9639_v3 }
0x2797   :  { %9640 = vrcp.f32 %v5204_v17 }
0x2798   :  { %9642 = vpow2.f32 %v5660_v40 }
0x27a1   :  { %v9641_v26 = vpop.eup %9640 }
0x27a2   :  { %v5210_v8 = vmul.f32 %v9641_v26, %v11318_v61  ;;  %v9643_v9 = vpop.eup %9642 }
0x27a3   :  { %v5205_v10 = vadd.f32 1.0, %v9643_v9 }
0x27a4   :  { %7359 = vmatmul.mubr.f32.vlgmr.msra.gmra.mrb[62].mxu1 %v5210_v8 }
0x27a5   :  { %9257 = vmatpush3.bf16.msra.mxu1 %v11737_v5  ;;  %7393 = vmatprep.mubr.msk.f32.mxu1 %vm9811_vm0, %v11514_v62  ;;  %9644 = vrcp.f32 %v5205_v10 }
0x27a6   :  { %9258 = vmatprep.subr.bf16.mxu1 %v11505_v25 }
0x27a9   :  { %9260 = vmatpush3.bf16.msra.mxu1 %v11738_v60 }
0x27aa   :  { %9261 = vmatprep.subr.bf16.mxu1 %v11505_v25 }
0x27ad   :  { %9263 = vmatpush3.bf16.msra.mxu1 %v11739_v32 }
0x27ae   :  { %9264 = vmatprep.subr.bf16.mxu1 %v11505_v25 }
0x27af   :  { %v9645_v21 = vpop.eup %9644 }
0x27b0   :  { %v5282_v22 = vsub.f32 1.0, %v9645_v21 }
0x27b1   :  { %9266 = vmatpush3.bf16.msra.mxu1 %v11740_v23 }
0x27b2   :  { %9267 = vmatprep.subr.bf16.mxu1 %v11505_v25  ;;  %v5283_v30 = vmul.f32 0.25, %v5282_v22 }
0x27b5   :  { %9269 = vmatpush3.bf16.msra.mxu1 %v11741_v0 }
0x27b6   :  { %9270 = vmatprep.subr.bf16.mxu1 %v11505_v25 }
0x27b9   :  { %9272 = vmatpush3.bf16.msra.mxu1 %v11742_v53 }
0x27ba   :  { %9273 = vmatprep.subr.bf16.mxu1 %v11505_v25 }
0x27bd   :  { %9275 = vmatpush3.bf16.msra.mxu1 %v11743_v18 }
0x27be   :  { %9276 = vmatprep.subr.bf16.mxu1 %v11505_v25 }
0x27c1   :  { %9278 = vmatpush3.bf16.msra.mxu1 %v11744_v1 }
0x27c2   :  { %9311 = vmatprep.subr.bf16.mxu1 %v11505_v25 }
0x27c4   :  { %7394 = vmatmul.mubr.f32.vlgmr.msra.gmra.mrb[64].mxu1 %v5287_v2 }
0x27c5   :  { %9313 = vmatpush3.bf16.msra.mxu1 %v11745_v20  ;;  %7428 = vmatprep.mubr.msk.f32.mxu1 %vm9811_vm0, %v11514_v62  ;;  %v11751_v62 = vld [vmem:[#allocation45_spill] sm:$0xff] }
0x27c6   :  { %9314 = vmatprep.subr.bf16.mxu1 %v11505_v25 }
0x27c9   :  { %9316 = vmatpush3.bf16.msra.mxu1 %v11746_v41 }
0x27ca   :  { %9317 = vmatprep.subr.bf16.mxu1 %v11505_v25 }
0x27cd   :  { %9319 = vmatpush3.bf16.msra.mxu1 %v11747_v28 }
0x27ce   :  { %9320 = vmatprep.subr.bf16.mxu1 %v11505_v25 }
0x27d1   :  { %9322 = vmatpush3.bf16.msra.mxu1 %v11748_v4 }
0x27d2   :  { %9323 = vmatprep.subr.bf16.mxu1 %v11505_v25 }
0x27d5   :  { %9325 = vmatpush3.bf16.msra.mxu1 %v11749_v45 }
0x27d6   :  { %9326 = vmatprep.subr.bf16.mxu1 %v11505_v25 }
0x27d9   :  { %9328 = vmatpush3.bf16.msra.mxu1 %v11750_v47 }
0x27da   :  { %9329 = vmatprep.subr.bf16.mxu1 %v11505_v25 }
0x27dd   :  { %9331 = vmatpush3.bf16.msra.mxu1 %v11751_v62 }
0x27de   :  { %9332 = vmatprep.subr.bf16.mxu1 %v11505_v25 }
0x27e1   :  { %9334 = vmatpush3.bf16.msra.mxu1 %v11752_v54 }
0x2877   :  { %v5277_v15 = vpop.f32.mrb[62].mxu1 }
0x2878   :  { %9646 = vtanh.f32 %v5277_v15  ;;  %v7360_v16 = vpop.f32.mrb[63].mxu1 }
0x2882   :  { %v9647_v29 = vpop.eup %9646 }
0x2883   :  { %v5284_v31 = vsub.f32 %v9647_v29, %v11318_v61 }
0x2885   :  { %v5285_v36 = vmul.f32 %v5284_v31, %v5283_v30 }
0x2887   :  { %v5286_v37 = vadd.f32 %v5285_v36, %v11318_v61 }
0x2889   :  { %5494 = vmatmul.mubr.f32.vlgmr.msra.gmra.mrb[50].mxu0 %v5286_v37  ;;  %7429 = vmatmul.mubr.f32.vlgmr.msra.gmra.mrb[66].mxu1 %v5286_v37 }
0x2897   :  { %v5425_v25 = vpop.f32.mrb[64].mxu1 }
0x2898   :  { %v7395_v42 = vpop.f32.mrb[65].mxu1  ;;  %v5426_v59 = vadd.f32 %v5425_v25, %v10348_v12 }
0x295c   :  { %v5495_v43 = vpop.f32.mrb[50].mxu0  ;;  %v5566_v48 = vpop.f32.mrb[66].mxu1 }
0x295d   :  { %v9364_v49 = vadd.f32 %v10340_v39, %v5495_v43  ;;  %v5497_v52 = vpop.f32.mrb[51].mxu0  ;;  %v7430_v55 = vpop.f32.mrb[67].mxu1  ;;  %v5567_v50 = vadd.f32 %v5566_v48, %v10346_v34 }
0x295e   :  { %v9366_v2 = vadd.f32 %v10342_v35, %v5497_v52 }
0x295f   :  { %v5661_v58 = vmul.f32 -1.442695, %v9364_v49 }
0x2960   :  { %v5662_v6 = vmul.f32 -1.442695, %v9366_v2 }
0x2961   :  { %9648 = vpow2.f32 %v5661_v58 }
0x2962   :  { %9650 = vpow2.f32 %v5662_v6 }
0x296b   :  { %v9649_v11 = vpop.eup %9648 }
0x296c   :  { %v5574_v14 = vadd.f32 1.0, %v9649_v11  ;;  %v9651_v61 = vpop.eup %9650 }
0x296d   :  { %v5581_v46 = vadd.f32 1.0, %v9651_v61 }
0x296e   :  { %9652 = vrcp.f32 %v5574_v14 }
0x296f   :  { %9654 = vrcp.f32 %v5581_v46 }
0x2978   :  { %v9653_v56 = vpop.eup %9652 }
0x2979   :  { %v5584_v63 = vmul.f32 %v9653_v56, %v5567_v50  ;;  %v9655_v7 = vpop.eup %9654 }
0x297a   :  { %v5587_v13 = vsub.f32 1.0, %v9655_v7  ;;  %v5589_v24 = vmul.f32 %v9655_v7, %v5286_v37 }
0x297b   :  { %v5585_v39 = vadd.f32 %v5584_v63, %v5426_v59 }
0x297d   :  { %9656 = vtanh.f32 %v5585_v39 }
0x2987   :  { %v9657_v35 = vpop.eup %9656 }
0x2988   :  { %v5588_v19 = vmul.f32 %v9657_v35, %v5587_v13 }
0x298a   :  { %v5590_v27 = vadd.f32 %v5589_v24, %v5588_v19 }
0x298c   :  { %5591 = vst [vmem:[#allocation11 + $0x38] sm:$0xff] %v5590_v27 }
0x298d   :  { %9779 = shalt.err (!%p9776_p2)
}
0x298e   :  { %s9780_s23 = scalar_lea.hbm %s11418_s7, 1024 }
0x298f   :  { %p9781_p3 = scmp.ne.s32.totalorder %s11418_s7, %s9780_s23  ;;  %p9784_p4 = scmp.lt.u32.totalorder %s9780_s23, %s11418_s7 }
0x2991   :  { %p9786_p5 = pnand %p9784_p4, %p9781_p3 }
0x2993   :  { %9789 = shalt.err (!%p9786_p5)
}
0x2994   :  { %5603 = dma.vmem_to_hbm [thread:$0]  %s5598_s6, 1024, %s11418_s7, [#allocation4], %s9805_s3, %s9805_s3, %s9806_s15  }
0x2995   :  { %9796 = dma.done.wait [#allocation4], 1024  }
0x2996   :  { %9797 = vsyncadd [#allocation4], 4294966272 }
0x2997   :  { %5607 = vsyncpa [#allocation3], 1 }
0x2998   :  { %5608 = vsyncpa [#allocation6], 1 }
0x2999   :  { %5609 = vsyncpa [#allocation9], 1 }
0x299a   :  { %5610 = vsyncpa [#allocation4], 1 }

</bundles_post_ra>
